<compile_context>
chip_gen: v7x
topology: tpu7x:2x2x1
jax: 0.10.0
libtpu: 0.0.40
codegen_flags: <defaults>
</compile_context>

<pallas_src>
import jax
import jax.numpy as jnp
from jax.experimental import pallas as pl
from jax.experimental.pallas import tpu as pltpu


def rpn_forward(x_nchw, params, num_anchors, *, chunk_rows=128):
    """Eval-mode forward: returns (anchor_objectnesses (B,HWA,2), anchor_transformers (B,HWA,4))."""
    w1, b1, wobj, bobj, wtrf, btrf = params
    B, Cin, H, W = x_nchw.shape
    Cmid = w1.shape[-1]
    co = num_anchors * 2
    ct = num_anchors * 4
    n_head = co + ct
    n_head_pad = 128 * pl.cdiv(n_head, 128)   # lane-dense fused head width

    wp = W + 2                  # padded row length
    n_pix = H * wp              # rows produced per image (2 wrap cols/row discarded later)
    p_rows = (H + 3) * wp       # flattened padded rows per image (1 extra halo row at bottom)

    # ---------------- wrapper glue (layout only, 1x data) ----------------
    x = jnp.transpose(x_nchw, (0, 2, 3, 1)).astype(jnp.bfloat16)        # NHWC bf16
    xp = jnp.pad(x, ((0, 0), (1, 2), (1, 1), (0, 0)))                    # (B, H+3, W+2, Cin)
    x_flat = xp.reshape(B, p_rows, Cin)

    w1_taps = w1.reshape(9, Cin, Cmid).astype(jnp.bfloat16)              # tap k = dy*3+dx
    b1_row = b1.reshape(1, Cmid).astype(jnp.float32)
    w_head = jnp.concatenate([wobj, wtrf], axis=1)                       # (Cmid, co+ct)
    w_head = jnp.pad(w_head, ((0, 0), (0, n_head_pad - n_head))).astype(jnp.bfloat16)
    b_head = jnp.concatenate([bobj.reshape(1, -1), btrf.reshape(1, -1)], axis=1)
    b_head = jnp.pad(b_head, ((0, 0), (0, n_head_pad - n_head))).astype(jnp.float32)

    # ---------------- kernel ----------------
    def kernel(x_ref, w1_ref, b1_ref, wh_ref, bh_ref, out_ref):
        # Weights/biases are small and resident; load once.
        w_taps = [w1_ref[k] for k in range(9)]          # each (Cin, Cmid) bf16
        b1_v = b1_ref[...]                              # (1, Cmid) f32
        wh_v = wh_ref[...]                              # (Cmid, n_head_pad) bf16
        bh_v = bh_ref[...]                              # (1, n_head_pad) f32

        # Chunk the pixel axis to bound the live fp32 accumulator (chunk_rows x Cmid).
        for m0 in range(0, n_pix, chunk_rows):
            rows = min(chunk_rows, n_pix - m0)
            acc = jnp.zeros((rows, Cmid), jnp.float32)
            for dy in range(3):
                for dx in range(3):
                    # 3x3 conv as 9 shifted-row matmuls (implicit im2col in VMEM).
                    xs = x_ref[0, pl.ds(m0 + dy * wp + dx, rows), :]     # (rows, Cin) bf16
                    acc = acc + jnp.dot(xs, w_taps[dy * 3 + dx],
                                        preferred_element_type=jnp.float32)
            feat = jnp.maximum(acc + b1_v, 0.0).astype(jnp.bfloat16)     # bias + ReLU
            head = jnp.dot(feat, wh_v, preferred_element_type=jnp.float32) + bh_v
            out_ref[0, pl.ds(m0, rows), :] = head

    out = pl.pallas_call(
        kernel,
        out_shape=jax.ShapeDtypeStruct((B, n_pix, n_head_pad), jnp.float32),
        grid_spec=pltpu.PrefetchScalarGridSpec(
            num_scalar_prefetch=0,
            grid=(B,),
            in_specs=[
                pl.BlockSpec((1, p_rows, Cin), lambda b: (b, 0, 0)),      # flattened padded image
                pl.BlockSpec((9, Cin, Cmid), lambda b: (0, 0, 0)),        # 3x3 conv weight taps
                pl.BlockSpec((1, Cmid), lambda b: (0, 0)),                # conv bias
                pl.BlockSpec((Cmid, n_head_pad), lambda b: (0, 0)),       # fused head weight (padded)
                pl.BlockSpec((1, n_head_pad), lambda b: (0, 0)),          # fused head bias  (padded)
            ],
            out_specs=pl.BlockSpec((1, n_pix, n_head_pad), lambda b: (b, 0, 0)),
        ),
        compiler_params=pltpu.CompilerParams(dimension_semantics=("parallel",)),
    )(x_flat, w1_taps, b1_row, w_head, b_head)

    # Drop the 2 wrap columns per row and the zero-padded head lanes; split heads.
    out = out.reshape(B, H, wp, n_head_pad)[:, :, :W, :n_head]
    # NHWC flat == permute(0,2,3,1).contiguous().view(B, -1, 2/4)
    anchor_objectnesses = out[..., :co].reshape(B, H * W * num_anchors, 2)
    anchor_transformers = out[..., co:].reshape(B, H * W * num_anchors, 4)
    return anchor_objectnesses, anchor_transformers


def _reference(x_nchw, params, num_anchors, *, emulate_bf16=False):
    """Pure-JAX reference (lax conv). emulate_bf16=True mirrors the kernel's
    bf16-input / fp32-accumulate precision for a tight comparison."""
    w1, b1, wobj, bobj, wtrf, btrf = params
    B, Cin, H, W = x_nchw.shape
    if emulate_bf16:
        rnd = lambda a: a.astype(jnp.bfloat16).astype(jnp.float32)
    else:
        rnd = lambda a: a.astype(jnp.float32)
    x = rnd(jnp.transpose(x_nchw, (0, 2, 3, 1)))
    w1_hwio = rnd(w1).reshape(3, 3, Cin, -1)
    feat = jax.lax.conv_general_dilated(
        x, w1_hwio, window_strides=(1, 1), padding='SAME',
        dimension_numbers=('NHWC', 'HWIO', 'NHWC')) + b1.reshape(1, 1, 1, -1)
    feat = rnd(jnp.maximum(feat, 0.0))
    obj = jnp.einsum('bhwc,co->bhwo', feat, rnd(wobj)) + bobj.reshape(1, 1, 1, -1)
    trf = jnp.einsum('bhwc,co->bhwo', feat, rnd(wtrf)) + btrf.reshape(1, 1, 1, -1)
    return obj.reshape(B, -1, 2), trf.reshape(B, -1, 4)


if __name__ == "__main__":
    # Small, module-consistent shapes.
    B, Cin, H, W = 2, 4, 16, 16
    anchor_ratios = [(1, 1), (2, 1), (1, 2)]
    anchor_sizes = [128]
    num_anchors = len(anchor_ratios) * len(anchor_sizes)   # 3
    Cmid = 512

    key = jax.random.PRNGKey(0)
    ks = jax.random.split(key, 7)
    x = jax.random.normal(ks[0], (B, Cin, H, W), jnp.float32)

    # Deterministic synthetic parameters (shapes mirror the nn.Conv2d layers).
    w1 = jax.random.normal(ks[1], (9 * Cin, Cmid), jnp.float32) * 0.05      # 3x3 conv, (kh*kw*Cin, 512)
    b1 = jax.random.normal(ks[2], (1, Cmid), jnp.float32) * 0.05
    wobj = jax.random.normal(ks[3], (Cmid, num_anchors * 2), jnp.float32) * 0.05
    bobj = jax.random.normal(ks[4], (1, num_anchors * 2), jnp.float32) * 0.05
    wtrf = jax.random.normal(ks[5], (Cmid, num_anchors * 4), jnp.float32) * 0.05
    btrf = jax.random.normal(ks[6], (1, num_anchors * 4), jnp.float32) * 0.05
    params = (w1, b1, wobj, bobj, wtrf, btrf)

    obj, trf = rpn_forward(x, params, num_anchors)
    jax.block_until_ready((obj, trf))

    assert obj.shape == (B, H * W * num_anchors, 2)
    assert trf.shape == (B, H * W * num_anchors, 4)

    # Tight check vs a reference with matched (bf16-in / fp32-accumulate) precision.
    obj_m, trf_m = _reference(x, params, num_anchors, emulate_bf16=True)
    assert jnp.allclose(obj, obj_m, atol=2e-3, rtol=2e-3)
    assert jnp.allclose(trf, trf_m, atol=2e-3, rtol=2e-3)

    # Loose check vs the full-fp32 module semantics (bf16 MXU inputs vs fp32 math).
    obj_f, trf_f = _reference(x, params, num_anchors, emulate_bf16=False)
    assert jnp.allclose(obj, obj_f, atol=3e-2, rtol=3e-2)
    assert jnp.allclose(trf, trf_f, atol=3e-2, rtol=3e-2)

    print("KERNEL_OK")
</pallas_src>

<mosaic_0001>
module attributes {stable_mosaic.version = 11 : i64} {
  func.func @kernel(%arg0: i32, %arg1: memref<1x342x4xbf16, #tpu.memory_space<vmem>>, %arg2: memref<9x4x512xbf16, #tpu.memory_space<vmem>>, %arg3: memref<1x512xf32, #tpu.memory_space<vmem>>, %arg4: memref<512x128xbf16, #tpu.memory_space<vmem>>, %arg5: memref<1x128xf32, #tpu.memory_space<vmem>>, %arg6: memref<1x288x128xf32, #tpu.memory_space<vmem>>) attributes {dimension_semantics = [#tpu.dimension_semantics<parallel>], iteration_bounds = array<i64: 2>, scalar_prefetch = 0 : i64, scratch_operands = 0 : i64, tpu.core_type = #tpu.core_type<tc>, window_params = [{transform_indices = @transform_0, window_bounds = array<i64: 1, 342, 4>}, {pipeline_mode = #tpu.pipeline_mode<synchronous>, transform_indices = @transform_1, window_bounds = array<i64: 9, 4, 512>}, {pipeline_mode = #tpu.pipeline_mode<synchronous>, transform_indices = @transform_2, window_bounds = array<i64: 1, 512>}, {pipeline_mode = #tpu.pipeline_mode<synchronous>, transform_indices = @transform_3, window_bounds = array<i64: 512, 128>}, {pipeline_mode = #tpu.pipeline_mode<synchronous>, transform_indices = @transform_4, window_bounds = array<i64: 1, 128>}, {transform_indices = @transform_5, window_bounds = array<i64: 1, 288, 128>}]} {
    %c0 = arith.constant 0 : index
    %c0_0 = arith.constant 0 : index
    %c0_1 = arith.constant 0 : index
    %0 = vector.load %arg2[%c0, %c0_0, %c0_1] : memref<9x4x512xbf16, #tpu.memory_space<vmem>>, vector<1x4x512xbf16>
    %1 = vector.shape_cast %0 : vector<1x4x512xbf16> to vector<4x512xbf16>
    %c1 = arith.constant 1 : index
    %c0_2 = arith.constant 0 : index
    %c0_3 = arith.constant 0 : index
    %2 = vector.load %arg2[%c1, %c0_2, %c0_3] : memref<9x4x512xbf16, #tpu.memory_space<vmem>>, vector<1x4x512xbf16>
    %3 = vector.shape_cast %2 : vector<1x4x512xbf16> to vector<4x512xbf16>
    %c2 = arith.constant 2 : index
    %c0_4 = arith.constant 0 : index
    %c0_5 = arith.constant 0 : index
    %4 = vector.load %arg2[%c2, %c0_4, %c0_5] : memref<9x4x512xbf16, #tpu.memory_space<vmem>>, vector<1x4x512xbf16>
    %5 = vector.shape_cast %4 : vector<1x4x512xbf16> to vector<4x512xbf16>
    %c3 = arith.constant 3 : index
    %c0_6 = arith.constant 0 : index
    %c0_7 = arith.constant 0 : index
    %6 = vector.load %arg2[%c3, %c0_6, %c0_7] : memref<9x4x512xbf16, #tpu.memory_space<vmem>>, vector<1x4x512xbf16>
    %7 = vector.shape_cast %6 : vector<1x4x512xbf16> to vector<4x512xbf16>
    %c4 = arith.constant 4 : index
    %c0_8 = arith.constant 0 : index
    %c0_9 = arith.constant 0 : index
    %8 = vector.load %arg2[%c4, %c0_8, %c0_9] : memref<9x4x512xbf16, #tpu.memory_space<vmem>>, vector<1x4x512xbf16>
    %9 = vector.shape_cast %8 : vector<1x4x512xbf16> to vector<4x512xbf16>
    %c5 = arith.constant 5 : index
    %c0_10 = arith.constant 0 : index
    %c0_11 = arith.constant 0 : index
    %10 = vector.load %arg2[%c5, %c0_10, %c0_11] : memref<9x4x512xbf16, #tpu.memory_space<vmem>>, vector<1x4x512xbf16>
    %11 = vector.shape_cast %10 : vector<1x4x512xbf16> to vector<4x512xbf16>
    %c6 = arith.constant 6 : index
    %c0_12 = arith.constant 0 : index
    %c0_13 = arith.constant 0 : index
    %12 = vector.load %arg2[%c6, %c0_12, %c0_13] : memref<9x4x512xbf16, #tpu.memory_space<vmem>>, vector<1x4x512xbf16>
    %13 = vector.shape_cast %12 : vector<1x4x512xbf16> to vector<4x512xbf16>
    %c7 = arith.constant 7 : index
    %c0_14 = arith.constant 0 : index
    %c0_15 = arith.constant 0 : index
    %14 = vector.load %arg2[%c7, %c0_14, %c0_15] : memref<9x4x512xbf16, #tpu.memory_space<vmem>>, vector<1x4x512xbf16>
    %15 = vector.shape_cast %14 : vector<1x4x512xbf16> to vector<4x512xbf16>
    %c8 = arith.constant 8 : index
    %c0_16 = arith.constant 0 : index
    %c0_17 = arith.constant 0 : index
    %16 = vector.load %arg2[%c8, %c0_16, %c0_17] : memref<9x4x512xbf16, #tpu.memory_space<vmem>>, vector<1x4x512xbf16>
    %17 = vector.shape_cast %16 : vector<1x4x512xbf16> to vector<4x512xbf16>
    %c0_18 = arith.constant 0 : index
    %c0_19 = arith.constant 0 : index
    %18 = vector.load %arg3[%c0_18, %c0_19] : memref<1x512xf32, #tpu.memory_space<vmem>>, vector<1x512xf32>
    %c0_20 = arith.constant 0 : index
    %c0_21 = arith.constant 0 : index
    %19 = vector.load %arg4[%c0_20, %c0_21] : memref<512x128xbf16, #tpu.memory_space<vmem>>, vector<512x128xbf16>
    %c0_22 = arith.constant 0 : index
    %c0_23 = arith.constant 0 : index
    %20 = vector.load %arg5[%c0_22, %c0_23] : memref<1x128xf32, #tpu.memory_space<vmem>>, vector<1x128xf32>
    %cst = arith.constant 0.000000e+00 : f32
    %21 = vector.broadcast %cst : f32 to vector<128x512xf32>
    %c0_24 = arith.constant 0 : index
    %c0_25 = arith.constant 0 : index
    %c0_26 = arith.constant 0 : index
    %22 = vector.load %arg1[%c0_24, %c0_25, %c0_26] : memref<1x342x4xbf16, #tpu.memory_space<vmem>>, vector<1x128x4xbf16>
    %23 = vector.shape_cast %22 : vector<1x128x4xbf16> to vector<128x4xbf16>
    %cst_27 = arith.constant dense<0.000000e+00> : vector<128x512xf32>
    %24 = tpu.matmul %23, %1, %cst_27 {dimension_numbers = #tpu.dot_dimension_numbers<[1], [0], [0], [1], [0, 0, 1, 1], [], []>} : vector<128x4xbf16>, vector<4x512xbf16>, vector<128x512xf32> -> vector<128x512xf32>
    %25 = arith.addf %21, %24 : vector<128x512xf32>
    %c0_28 = arith.constant 0 : index
    %c1_29 = arith.constant 1 : index
    %c0_30 = arith.constant 0 : index
    %26 = vector.load %arg1[%c0_28, %c1_29, %c0_30] : memref<1x342x4xbf16, #tpu.memory_space<vmem>>, vector<1x128x4xbf16>
    %27 = vector.shape_cast %26 : vector<1x128x4xbf16> to vector<128x4xbf16>
    %cst_31 = arith.constant dense<0.000000e+00> : vector<128x512xf32>
    %28 = tpu.matmul %27, %3, %cst_31 {dimension_numbers = #tpu.dot_dimension_numbers<[1], [0], [0], [1], [0, 0, 1, 1], [], []>} : vector<128x4xbf16>, vector<4x512xbf16>, vector<128x512xf32> -> vector<128x512xf32>
    %29 = arith.addf %25, %28 : vector<128x512xf32>
    %c0_32 = arith.constant 0 : index
    %c2_33 = arith.constant 2 : index
    %c0_34 = arith.constant 0 : index
    %30 = vector.load %arg1[%c0_32, %c2_33, %c0_34] : memref<1x342x4xbf16, #tpu.memory_space<vmem>>, vector<1x128x4xbf16>
    %31 = vector.shape_cast %30 : vector<1x128x4xbf16> to vector<128x4xbf16>
    %cst_35 = arith.constant dense<0.000000e+00> : vector<128x512xf32>
    %32 = tpu.matmul %31, %5, %cst_35 {dimension_numbers = #tpu.dot_dimension_numbers<[1], [0], [0], [1], [0, 0, 1, 1], [], []>} : vector<128x4xbf16>, vector<4x512xbf16>, vector<128x512xf32> -> vector<128x512xf32>
    %33 = arith.addf %29, %32 : vector<128x512xf32>
    %c0_36 = arith.constant 0 : index
    %c18 = arith.constant 18 : index
    %c0_37 = arith.constant 0 : index
    %34 = vector.load %arg1[%c0_36, %c18, %c0_37] : memref<1x342x4xbf16, #tpu.memory_space<vmem>>, vector<1x128x4xbf16>
    %35 = vector.shape_cast %34 : vector<1x128x4xbf16> to vector<128x4xbf16>
    %cst_38 = arith.constant dense<0.000000e+00> : vector<128x512xf32>
    %36 = tpu.matmul %35, %7, %cst_38 {dimension_numbers = #tpu.dot_dimension_numbers<[1], [0], [0], [1], [0, 0, 1, 1], [], []>} : vector<128x4xbf16>, vector<4x512xbf16>, vector<128x512xf32> -> vector<128x512xf32>
    %37 = arith.addf %33, %36 : vector<128x512xf32>
    %c0_39 = arith.constant 0 : index
    %c19 = arith.constant 19 : index
    %c0_40 = arith.constant 0 : index
    %38 = vector.load %arg1[%c0_39, %c19, %c0_40] : memref<1x342x4xbf16, #tpu.memory_space<vmem>>, vector<1x128x4xbf16>
    %39 = vector.shape_cast %38 : vector<1x128x4xbf16> to vector<128x4xbf16>
    %cst_41 = arith.constant dense<0.000000e+00> : vector<128x512xf32>
    %40 = tpu.matmul %39, %9, %cst_41 {dimension_numbers = #tpu.dot_dimension_numbers<[1], [0], [0], [1], [0, 0, 1, 1], [], []>} : vector<128x4xbf16>, vector<4x512xbf16>, vector<128x512xf32> -> vector<128x512xf32>
    %41 = arith.addf %37, %40 : vector<128x512xf32>
    %c0_42 = arith.constant 0 : index
    %c20 = arith.constant 20 : index
    %c0_43 = arith.constant 0 : index
    %42 = vector.load %arg1[%c0_42, %c20, %c0_43] : memref<1x342x4xbf16, #tpu.memory_space<vmem>>, vector<1x128x4xbf16>
    %43 = vector.shape_cast %42 : vector<1x128x4xbf16> to vector<128x4xbf16>
    %cst_44 = arith.constant dense<0.000000e+00> : vector<128x512xf32>
    %44 = tpu.matmul %43, %11, %cst_44 {dimension_numbers = #tpu.dot_dimension_numbers<[1], [0], [0], [1], [0, 0, 1, 1], [], []>} : vector<128x4xbf16>, vector<4x512xbf16>, vector<128x512xf32> -> vector<128x512xf32>
    %45 = arith.addf %41, %44 : vector<128x512xf32>
    %c0_45 = arith.constant 0 : index
    %c36 = arith.constant 36 : index
    %c0_46 = arith.constant 0 : index
    %46 = vector.load %arg1[%c0_45, %c36, %c0_46] : memref<1x342x4xbf16, #tpu.memory_space<vmem>>, vector<1x128x4xbf16>
    %47 = vector.shape_cast %46 : vector<1x128x4xbf16> to vector<128x4xbf16>
    %cst_47 = arith.constant dense<0.000000e+00> : vector<128x512xf32>
    %48 = tpu.matmul %47, %13, %cst_47 {dimension_numbers = #tpu.dot_dimension_numbers<[1], [0], [0], [1], [0, 0, 1, 1], [], []>} : vector<128x4xbf16>, vector<4x512xbf16>, vector<128x512xf32> -> vector<128x512xf32>
    %49 = arith.addf %45, %48 : vector<128x512xf32>
    %c0_48 = arith.constant 0 : index
    %c37 = arith.constant 37 : index
    %c0_49 = arith.constant 0 : index
    %50 = vector.load %arg1[%c0_48, %c37, %c0_49] : memref<1x342x4xbf16, #tpu.memory_space<vmem>>, vector<1x128x4xbf16>
    %51 = vector.shape_cast %50 : vector<1x128x4xbf16> to vector<128x4xbf16>
    %cst_50 = arith.constant dense<0.000000e+00> : vector<128x512xf32>
    %52 = tpu.matmul %51, %15, %cst_50 {dimension_numbers = #tpu.dot_dimension_numbers<[1], [0], [0], [1], [0, 0, 1, 1], [], []>} : vector<128x4xbf16>, vector<4x512xbf16>, vector<128x512xf32> -> vector<128x512xf32>
    %53 = arith.addf %49, %52 : vector<128x512xf32>
    %c0_51 = arith.constant 0 : index
    %c38 = arith.constant 38 : index
    %c0_52 = arith.constant 0 : index
    %54 = vector.load %arg1[%c0_51, %c38, %c0_52] : memref<1x342x4xbf16, #tpu.memory_space<vmem>>, vector<1x128x4xbf16>
    %55 = vector.shape_cast %54 : vector<1x128x4xbf16> to vector<128x4xbf16>
    %cst_53 = arith.constant dense<0.000000e+00> : vector<128x512xf32>
    %56 = tpu.matmul %55, %17, %cst_53 {dimension_numbers = #tpu.dot_dimension_numbers<[1], [0], [0], [1], [0, 0, 1, 1], [], []>} : vector<128x4xbf16>, vector<4x512xbf16>, vector<128x512xf32> -> vector<128x512xf32>
    %57 = arith.addf %53, %56 : vector<128x512xf32>
    %58 = vector.broadcast %18 : vector<1x512xf32> to vector<128x512xf32>
    %59 = arith.addf %57, %58 : vector<128x512xf32>
    %cst_54 = arith.constant 0.000000e+00 : f32
    %60 = vector.broadcast %cst_54 : f32 to vector<128x512xf32>
    %61 = arith.maximumf %59, %60 : vector<128x512xf32>
    %62 = arith.truncf %61 : vector<128x512xf32> to vector<128x512xbf16>
    %cst_55 = arith.constant dense<0.000000e+00> : vector<128x128xf32>
    %63 = tpu.matmul %62, %19, %cst_55 {dimension_numbers = #tpu.dot_dimension_numbers<[1], [0], [0], [1], [0, 0, 1, 1], [], []>} : vector<128x512xbf16>, vector<512x128xbf16>, vector<128x128xf32> -> vector<128x128xf32>
    %64 = vector.broadcast %20 : vector<1x128xf32> to vector<128x128xf32>
    %65 = arith.addf %63, %64 : vector<128x128xf32>
    %c0_56 = arith.constant 0 : index
    %c0_57 = arith.constant 0 : index
    %c0_58 = arith.constant 0 : index
    %66 = vector.load %arg6[%c0_56, %c0_57, %c0_58] : memref<1x288x128xf32, #tpu.memory_space<vmem>>, vector<1x128x128xf32>
    %67 = vector.shape_cast %66 : vector<1x128x128xf32> to vector<128x128xf32>
    %68 = vector.shape_cast %65 : vector<128x128xf32> to vector<1x128x128xf32>
    tpu.vector_store %arg6[%c0_56, %c0_57, %c0_58], %68 {strides = array<i32>} : memref<1x288x128xf32, #tpu.memory_space<vmem>>, vector<1x128x128xf32>,
    %cst_59 = arith.constant 0.000000e+00 : f32
    %69 = vector.broadcast %cst_59 : f32 to vector<128x512xf32>
    %c0_60 = arith.constant 0 : index
    %c128 = arith.constant 128 : index
    %c0_61 = arith.constant 0 : index
    %70 = vector.load %arg1[%c0_60, %c128, %c0_61] : memref<1x342x4xbf16, #tpu.memory_space<vmem>>, vector<1x128x4xbf16>
    %71 = vector.shape_cast %70 : vector<1x128x4xbf16> to vector<128x4xbf16>
    %cst_62 = arith.constant dense<0.000000e+00> : vector<128x512xf32>
    %72 = tpu.matmul %71, %1, %cst_62 {dimension_numbers = #tpu.dot_dimension_numbers<[1], [0], [0], [1], [0, 0, 1, 1], [], []>} : vector<128x4xbf16>, vector<4x512xbf16>, vector<128x512xf32> -> vector<128x512xf32>
    %73 = arith.addf %69, %72 : vector<128x512xf32>
    %c0_63 = arith.constant 0 : index
    %c129 = arith.constant 129 : index
    %c0_64 = arith.constant 0 : index
    %74 = vector.load %arg1[%c0_63, %c129, %c0_64] : memref<1x342x4xbf16, #tpu.memory_space<vmem>>, vector<1x128x4xbf16>
    %75 = vector.shape_cast %74 : vector<1x128x4xbf16> to vector<128x4xbf16>
    %cst_65 = arith.constant dense<0.000000e+00> : vector<128x512xf32>
    %76 = tpu.matmul %75, %3, %cst_65 {dimension_numbers = #tpu.dot_dimension_numbers<[1], [0], [0], [1], [0, 0, 1, 1], [], []>} : vector<128x4xbf16>, vector<4x512xbf16>, vector<128x512xf32> -> vector<128x512xf32>
    %77 = arith.addf %73, %76 : vector<128x512xf32>
    %c0_66 = arith.constant 0 : index
    %c130 = arith.constant 130 : index
    %c0_67 = arith.constant 0 : index
    %78 = vector.load %arg1[%c0_66, %c130, %c0_67] : memref<1x342x4xbf16, #tpu.memory_space<vmem>>, vector<1x128x4xbf16>
    %79 = vector.shape_cast %78 : vector<1x128x4xbf16> to vector<128x4xbf16>
    %cst_68 = arith.constant dense<0.000000e+00> : vector<128x512xf32>
    %80 = tpu.matmul %79, %5, %cst_68 {dimension_numbers = #tpu.dot_dimension_numbers<[1], [0], [0], [1], [0, 0, 1, 1], [], []>} : vector<128x4xbf16>, vector<4x512xbf16>, vector<128x512xf32> -> vector<128x512xf32>
    %81 = arith.addf %77, %80 : vector<128x512xf32>
    %c0_69 = arith.constant 0 : index
    %c146 = arith.constant 146 : index
    %c0_70 = arith.constant 0 : index
    %82 = vector.load %arg1[%c0_69, %c146, %c0_70] : memref<1x342x4xbf16, #tpu.memory_space<vmem>>, vector<1x128x4xbf16>
    %83 = vector.shape_cast %82 : vector<1x128x4xbf16> to vector<128x4xbf16>
    %cst_71 = arith.constant dense<0.000000e+00> : vector<128x512xf32>
    %84 = tpu.matmul %83, %7, %cst_71 {dimension_numbers = #tpu.dot_dimension_numbers<[1], [0], [0], [1], [0, 0, 1, 1], [], []>} : vector<128x4xbf16>, vector<4x512xbf16>, vector<128x512xf32> -> vector<128x512xf32>
    %85 = arith.addf %81, %84 : vector<128x512xf32>
    %c0_72 = arith.constant 0 : index
    %c147 = arith.constant 147 : index
    %c0_73 = arith.constant 0 : index
    %86 = vector.load %arg1[%c0_72, %c147, %c0_73] : memref<1x342x4xbf16, #tpu.memory_space<vmem>>, vector<1x128x4xbf16>
    %87 = vector.shape_cast %86 : vector<1x128x4xbf16> to vector<128x4xbf16>
    %cst_74 = arith.constant dense<0.000000e+00> : vector<128x512xf32>
    %88 = tpu.matmul %87, %9, %cst_74 {dimension_numbers = #tpu.dot_dimension_numbers<[1], [0], [0], [1], [0, 0, 1, 1], [], []>} : vector<128x4xbf16>, vector<4x512xbf16>, vector<128x512xf32> -> vector<128x512xf32>
    %89 = arith.addf %85, %88 : vector<128x512xf32>
    %c0_75 = arith.constant 0 : index
    %c148 = arith.constant 148 : index
    %c0_76 = arith.constant 0 : index
    %90 = vector.load %arg1[%c0_75, %c148, %c0_76] : memref<1x342x4xbf16, #tpu.memory_space<vmem>>, vector<1x128x4xbf16>
    %91 = vector.shape_cast %90 : vector<1x128x4xbf16> to vector<128x4xbf16>
    %cst_77 = arith.constant dense<0.000000e+00> : vector<128x512xf32>
    %92 = tpu.matmul %91, %11, %cst_77 {dimension_numbers = #tpu.dot_dimension_numbers<[1], [0], [0], [1], [0, 0, 1, 1], [], []>} : vector<128x4xbf16>, vector<4x512xbf16>, vector<128x512xf32> -> vector<128x512xf32>
    %93 = arith.addf %89, %92 : vector<128x512xf32>
    %c0_78 = arith.constant 0 : index
    %c164 = arith.constant 164 : index
    %c0_79 = arith.constant 0 : index
    %94 = vector.load %arg1[%c0_78, %c164, %c0_79] : memref<1x342x4xbf16, #tpu.memory_space<vmem>>, vector<1x128x4xbf16>
    %95 = vector.shape_cast %94 : vector<1x128x4xbf16> to vector<128x4xbf16>
    %cst_80 = arith.constant dense<0.000000e+00> : vector<128x512xf32>
    %96 = tpu.matmul %95, %13, %cst_80 {dimension_numbers = #tpu.dot_dimension_numbers<[1], [0], [0], [1], [0, 0, 1, 1], [], []>} : vector<128x4xbf16>, vector<4x512xbf16>, vector<128x512xf32> -> vector<128x512xf32>
    %97 = arith.addf %93, %96 : vector<128x512xf32>
    %c0_81 = arith.constant 0 : index
    %c165 = arith.constant 165 : index
    %c0_82 = arith.constant 0 : index
    %98 = vector.load %arg1[%c0_81, %c165, %c0_82] : memref<1x342x4xbf16, #tpu.memory_space<vmem>>, vector<1x128x4xbf16>
    %99 = vector.shape_cast %98 : vector<1x128x4xbf16> to vector<128x4xbf16>
    %cst_83 = arith.constant dense<0.000000e+00> : vector<128x512xf32>
    %100 = tpu.matmul %99, %15, %cst_83 {dimension_numbers = #tpu.dot_dimension_numbers<[1], [0], [0], [1], [0, 0, 1, 1], [], []>} : vector<128x4xbf16>, vector<4x512xbf16>, vector<128x512xf32> -> vector<128x512xf32>
    %101 = arith.addf %97, %100 : vector<128x512xf32>
    %c0_84 = arith.constant 0 : index
    %c166 = arith.constant 166 : index
    %c0_85 = arith.constant 0 : index
    %102 = vector.load %arg1[%c0_84, %c166, %c0_85] : memref<1x342x4xbf16, #tpu.memory_space<vmem>>, vector<1x128x4xbf16>
    %103 = vector.shape_cast %102 : vector<1x128x4xbf16> to vector<128x4xbf16>
    %cst_86 = arith.constant dense<0.000000e+00> : vector<128x512xf32>
    %104 = tpu.matmul %103, %17, %cst_86 {dimension_numbers = #tpu.dot_dimension_numbers<[1], [0], [0], [1], [0, 0, 1, 1], [], []>} : vector<128x4xbf16>, vector<4x512xbf16>, vector<128x512xf32> -> vector<128x512xf32>
    %105 = arith.addf %101, %104 : vector<128x512xf32>
    %106 = vector.broadcast %18 : vector<1x512xf32> to vector<128x512xf32>
    %107 = arith.addf %105, %106 : vector<128x512xf32>
    %cst_87 = arith.constant 0.000000e+00 : f32
    %108 = vector.broadcast %cst_87 : f32 to vector<128x512xf32>
    %109 = arith.maximumf %107, %108 : vector<128x512xf32>
    %110 = arith.truncf %109 : vector<128x512xf32> to vector<128x512xbf16>
    %cst_88 = arith.constant dense<0.000000e+00> : vector<128x128xf32>
    %111 = tpu.matmul %110, %19, %cst_88 {dimension_numbers = #tpu.dot_dimension_numbers<[1], [0], [0], [1], [0, 0, 1, 1], [], []>} : vector<128x512xbf16>, vector<512x128xbf16>, vector<128x128xf32> -> vector<128x128xf32>
    %112 = vector.broadcast %20 : vector<1x128xf32> to vector<128x128xf32>
    %113 = arith.addf %111, %112 : vector<128x128xf32>
    %c0_89 = arith.constant 0 : index
    %c128_90 = arith.constant 128 : index
    %c0_91 = arith.constant 0 : index
    %114 = vector.load %arg6[%c0_89, %c128_90, %c0_91] : memref<1x288x128xf32, #tpu.memory_space<vmem>>, vector<1x128x128xf32>
    %115 = vector.shape_cast %114 : vector<1x128x128xf32> to vector<128x128xf32>
    %116 = vector.shape_cast %113 : vector<128x128xf32> to vector<1x128x128xf32>
    tpu.vector_store %arg6[%c0_89, %c128_90, %c0_91], %116 {strides = array<i32>} : memref<1x288x128xf32, #tpu.memory_space<vmem>>, vector<1x128x128xf32>,
    %cst_92 = arith.constant 0.000000e+00 : f32
    %117 = vector.broadcast %cst_92 : f32 to vector<32x512xf32>
    %c0_93 = arith.constant 0 : index
    %c256 = arith.constant 256 : index
    %c0_94 = arith.constant 0 : index
    %118 = vector.load %arg1[%c0_93, %c256, %c0_94] : memref<1x342x4xbf16, #tpu.memory_space<vmem>>, vector<1x32x4xbf16>
    %119 = vector.shape_cast %118 : vector<1x32x4xbf16> to vector<32x4xbf16>
    %cst_95 = arith.constant dense<0.000000e+00> : vector<32x512xf32>
    %120 = tpu.matmul %119, %1, %cst_95 {dimension_numbers = #tpu.dot_dimension_numbers<[1], [0], [0], [1], [0, 0, 1, 1], [], []>} : vector<32x4xbf16>, vector<4x512xbf16>, vector<32x512xf32> -> vector<32x512xf32>
    %121 = arith.addf %117, %120 : vector<32x512xf32>
    %c0_96 = arith.constant 0 : index
    %c257 = arith.constant 257 : index
    %c0_97 = arith.constant 0 : index
    %122 = vector.load %arg1[%c0_96, %c257, %c0_97] : memref<1x342x4xbf16, #tpu.memory_space<vmem>>, vector<1x32x4xbf16>
    %123 = vector.shape_cast %122 : vector<1x32x4xbf16> to vector<32x4xbf16>
    %cst_98 = arith.constant dense<0.000000e+00> : vector<32x512xf32>
    %124 = tpu.matmul %123, %3, %cst_98 {dimension_numbers = #tpu.dot_dimension_numbers<[1], [0], [0], [1], [0, 0, 1, 1], [], []>} : vector<32x4xbf16>, vector<4x512xbf16>, vector<32x512xf32> -> vector<32x512xf32>
    %125 = arith.addf %121, %124 : vector<32x512xf32>
    %c0_99 = arith.constant 0 : index
    %c258 = arith.constant 258 : index
    %c0_100 = arith.constant 0 : index
    %126 = vector.load %arg1[%c0_99, %c258, %c0_100] : memref<1x342x4xbf16, #tpu.memory_space<vmem>>, vector<1x32x4xbf16>
    %127 = vector.shape_cast %126 : vector<1x32x4xbf16> to vector<32x4xbf16>
    %cst_101 = arith.constant dense<0.000000e+00> : vector<32x512xf32>
    %128 = tpu.matmul %127, %5, %cst_101 {dimension_numbers = #tpu.dot_dimension_numbers<[1], [0], [0], [1], [0, 0, 1, 1], [], []>} : vector<32x4xbf16>, vector<4x512xbf16>, vector<32x512xf32> -> vector<32x512xf32>
    %129 = arith.addf %125, %128 : vector<32x512xf32>
    %c0_102 = arith.constant 0 : index
    %c274 = arith.constant 274 : index
    %c0_103 = arith.constant 0 : index
    %130 = vector.load %arg1[%c0_102, %c274, %c0_103] : memref<1x342x4xbf16, #tpu.memory_space<vmem>>, vector<1x32x4xbf16>
    %131 = vector.shape_cast %130 : vector<1x32x4xbf16> to vector<32x4xbf16>
    %cst_104 = arith.constant dense<0.000000e+00> : vector<32x512xf32>
    %132 = tpu.matmul %131, %7, %cst_104 {dimension_numbers = #tpu.dot_dimension_numbers<[1], [0], [0], [1], [0, 0, 1, 1], [], []>} : vector<32x4xbf16>, vector<4x512xbf16>, vector<32x512xf32> -> vector<32x512xf32>
    %133 = arith.addf %129, %132 : vector<32x512xf32>
    %c0_105 = arith.constant 0 : index
    %c275 = arith.constant 275 : index
    %c0_106 = arith.constant 0 : index
    %134 = vector.load %arg1[%c0_105, %c275, %c0_106] : memref<1x342x4xbf16, #tpu.memory_space<vmem>>, vector<1x32x4xbf16>
    %135 = vector.shape_cast %134 : vector<1x32x4xbf16> to vector<32x4xbf16>
    %cst_107 = arith.constant dense<0.000000e+00> : vector<32x512xf32>
    %136 = tpu.matmul %135, %9, %cst_107 {dimension_numbers = #tpu.dot_dimension_numbers<[1], [0], [0], [1], [0, 0, 1, 1], [], []>} : vector<32x4xbf16>, vector<4x512xbf16>, vector<32x512xf32> -> vector<32x512xf32>
    %137 = arith.addf %133, %136 : vector<32x512xf32>
    %c0_108 = arith.constant 0 : index
    %c276 = arith.constant 276 : index
    %c0_109 = arith.constant 0 : index
    %138 = vector.load %arg1[%c0_108, %c276, %c0_109] : memref<1x342x4xbf16, #tpu.memory_space<vmem>>, vector<1x32x4xbf16>
    %139 = vector.shape_cast %138 : vector<1x32x4xbf16> to vector<32x4xbf16>
    %cst_110 = arith.constant dense<0.000000e+00> : vector<32x512xf32>
    %140 = tpu.matmul %139, %11, %cst_110 {dimension_numbers = #tpu.dot_dimension_numbers<[1], [0], [0], [1], [0, 0, 1, 1], [], []>} : vector<32x4xbf16>, vector<4x512xbf16>, vector<32x512xf32> -> vector<32x512xf32>
    %141 = arith.addf %137, %140 : vector<32x512xf32>
    %c0_111 = arith.constant 0 : index
    %c292 = arith.constant 292 : index
    %c0_112 = arith.constant 0 : index
    %142 = vector.load %arg1[%c0_111, %c292, %c0_112] : memref<1x342x4xbf16, #tpu.memory_space<vmem>>, vector<1x32x4xbf16>
    %143 = vector.shape_cast %142 : vector<1x32x4xbf16> to vector<32x4xbf16>
    %cst_113 = arith.constant dense<0.000000e+00> : vector<32x512xf32>
    %144 = tpu.matmul %143, %13, %cst_113 {dimension_numbers = #tpu.dot_dimension_numbers<[1], [0], [0], [1], [0, 0, 1, 1], [], []>} : vector<32x4xbf16>, vector<4x512xbf16>, vector<32x512xf32> -> vector<32x512xf32>
    %145 = arith.addf %141, %144 : vector<32x512xf32>
    %c0_114 = arith.constant 0 : index
    %c293 = arith.constant 293 : index
    %c0_115 = arith.constant 0 : index
    %146 = vector.load %arg1[%c0_114, %c293, %c0_115] : memref<1x342x4xbf16, #tpu.memory_space<vmem>>, vector<1x32x4xbf16>
    %147 = vector.shape_cast %146 : vector<1x32x4xbf16> to vector<32x4xbf16>
    %cst_116 = arith.constant dense<0.000000e+00> : vector<32x512xf32>
    %148 = tpu.matmul %147, %15, %cst_116 {dimension_numbers = #tpu.dot_dimension_numbers<[1], [0], [0], [1], [0, 0, 1, 1], [], []>} : vector<32x4xbf16>, vector<4x512xbf16>, vector<32x512xf32> -> vector<32x512xf32>
    %149 = arith.addf %145, %148 : vector<32x512xf32>
    %c0_117 = arith.constant 0 : index
    %c294 = arith.constant 294 : index
    %c0_118 = arith.constant 0 : index
    %150 = vector.load %arg1[%c0_117, %c294, %c0_118] : memref<1x342x4xbf16, #tpu.memory_space<vmem>>, vector<1x32x4xbf16>
    %151 = vector.shape_cast %150 : vector<1x32x4xbf16> to vector<32x4xbf16>
    %cst_119 = arith.constant dense<0.000000e+00> : vector<32x512xf32>
    %152 = tpu.matmul %151, %17, %cst_119 {dimension_numbers = #tpu.dot_dimension_numbers<[1], [0], [0], [1], [0, 0, 1, 1], [], []>} : vector<32x4xbf16>, vector<4x512xbf16>, vector<32x512xf32> -> vector<32x512xf32>
    %153 = arith.addf %149, %152 : vector<32x512xf32>
    %154 = vector.broadcast %18 : vector<1x512xf32> to vector<32x512xf32>
    %155 = arith.addf %153, %154 : vector<32x512xf32>
    %cst_120 = arith.constant 0.000000e+00 : f32
    %156 = vector.broadcast %cst_120 : f32 to vector<32x512xf32>
    %157 = arith.maximumf %155, %156 : vector<32x512xf32>
    %158 = arith.truncf %157 : vector<32x512xf32> to vector<32x512xbf16>
    %cst_121 = arith.constant dense<0.000000e+00> : vector<32x128xf32>
    %159 = tpu.matmul %158, %19, %cst_121 {dimension_numbers = #tpu.dot_dimension_numbers<[1], [0], [0], [1], [0, 0, 1, 1], [], []>} : vector<32x512xbf16>, vector<512x128xbf16>, vector<32x128xf32> -> vector<32x128xf32>
    %160 = vector.broadcast %20 : vector<1x128xf32> to vector<32x128xf32>
    %161 = arith.addf %159, %160 : vector<32x128xf32>
    %c0_122 = arith.constant 0 : index
    %c256_123 = arith.constant 256 : index
    %c0_124 = arith.constant 0 : index
    %162 = vector.load %arg6[%c0_122, %c256_123, %c0_124] : memref<1x288x128xf32, #tpu.memory_space<vmem>>, vector<1x32x128xf32>
    %163 = vector.shape_cast %162 : vector<1x32x128xf32> to vector<32x128xf32>
    %164 = vector.shape_cast %161 : vector<32x128xf32> to vector<1x32x128xf32>
    tpu.vector_store %arg6[%c0_122, %c256_123, %c0_124], %164 {strides = array<i32>} : memref<1x288x128xf32, #tpu.memory_space<vmem>>, vector<1x32x128xf32>,
    return
  }
  func.func @transform_0(%arg0: i32) -> (i32, i32, i32) {
    %c0_i32 = arith.constant 0 : i32
    %c0_i32_0 = arith.constant 0 : i32
    %c0_i32_1 = arith.constant 0 : i32
    return %arg0, %c0_i32, %c0_i32_0 : i32, i32, i32
  }
  func.func @transform_1(%arg0: i32) -> (i32, i32, i32) {
    %c0_i32 = arith.constant 0 : i32
    %c0_i32_0 = arith.constant 0 : i32
    %c0_i32_1 = arith.constant 0 : i32
    %c0_i32_2 = arith.constant 0 : i32
    return %c0_i32, %c0_i32_0, %c0_i32_1 : i32, i32, i32
  }
  func.func @transform_2(%arg0: i32) -> (i32, i32) {
    %c0_i32 = arith.constant 0 : i32
    %c0_i32_0 = arith.constant 0 : i32
    %c0_i32_1 = arith.constant 0 : i32
    return %c0_i32, %c0_i32_0 : i32, i32
  }
  func.func @transform_3(%arg0: i32) -> (i32, i32) {
    %c0_i32 = arith.constant 0 : i32
    %c0_i32_0 = arith.constant 0 : i32
    %c0_i32_1 = arith.constant 0 : i32
    return %c0_i32, %c0_i32_0 : i32, i32
  }
  func.func @transform_4(%arg0: i32) -> (i32, i32) {
    %c0_i32 = arith.constant 0 : i32
    %c0_i32_0 = arith.constant 0 : i32
    %c0_i32_1 = arith.constant 0 : i32
    return %c0_i32, %c0_i32_0 : i32, i32
  }
  func.func @transform_5(%arg0: i32) -> (i32, i32, i32) {
    %c0_i32 = arith.constant 0 : i32
    %c0_i32_0 = arith.constant 0 : i32
    %c0_i32_1 = arith.constant 0 : i32
    return %arg0, %c0_i32, %c0_i32_0 : i32, i32, i32
  }
}

</mosaic_0001>

<bundles_post_ra>
// kernel: tpu_custom_call.1
= control target key start
LH: loop header
LB: loop body
LE: loop exit
PB: predicated region body
PF: predicated region fallthrough
CT: control target
= control target key end

     0   :  { %10 = vsyncpa [#allocation3], 0  ;;  %s14624_s0 = inlined_call_operand.vmem [shape: bf16[2,342,4], index: 0, kind: input, shape index: {}]   ;;  %s14625_s1 = inlined_call_operand.vmem [shape: bf16[9,4,512], index: 1, kind: input, shape index: {}]   ;;  %s14626_s2 = inlined_call_operand.vmem [shape: f32[1,512], index: 2, kind: input, shape index: {}]   ;;  %s14627_s3 = inlined_call_operand.vmem [shape: bf16[512,128], index: 3, kind: input, shape index: {}]   ;;  %s14628_s4 = inlined_call_operand.vmem [shape: f32[1,128], index: 4, kind: input, shape index: {}]   ;;  %s14629_s5 = inlined_call_operand.hbm [shape: f32[2,288,128], index: 5, kind: output, shape index: {}]  }
   0x1   :  { %12 = vsyncpa [#allocation3 + $0x1], 0  ;;  %s12565_s18 = smov 0   ;;  %s12567_s19 = smov 0  }
   0x2   :  { %s12569_s20 = smov 0   ;;  %s12571_s21 = smov 0  }
   0x3 LB: > { %s12586_s22 = sadd.s32 4294967295, %s12528_s21   ;;  %s10087_s23 = sadd.s32 4294967294, %s12528_s21   ;;  %s12528_s21 = sphi %s12571_s21, %s14647_s21   ;;  %s12524_s20 = sphi %s12569_s20, %s14646_s20   ;;  %s12520_s19 = sphi %s12567_s19, %s14645_s19   ;;  %s12516_s18 = sphi %s12565_s18, %s14644_s18  }
   0x4   : > { %s12590_s24 = sadd.s32 1, %s12528_s21   ;;  %s135_s25 = sadd.s32 1, %s12524_s20 }
   0x5   : > { %s132_s26 = ssub.s32 %s12528_s21, %s12590_s24  ;;  %p145_p0 = scmp.ne.s32.totalorder %s12524_s20, %s12520_s19 }
   0x6   : > { %p133_p1 = scmp.eq.s32.totalorder %s132_s26, 0  ;;  %p146_p2 = scmp.eq.s32.totalorder %s12586_s22, 1 }
   0x7   : > { %p151_p3 = scmp.ne.s32.totalorder %s12520_s19, %s12516_s18  ;;  %p152_p4 = scmp.eq.s32.totalorder %s10087_s23, 1 }
   0x8   : > { %s12601_s27 = scalar_select %p133_p1, %s12524_s20, %s135_s25  }
   0x9   : > { %p12603_p5 = por %p146_p2, %p145_p0  ;;  %p12607_p6 = por %p152_p4, %p151_p3 }
   0xa   : > { %p10090_p7 = scmp.ge.s32.totalorder %s12528_s21, 1  ;;  %p190_p8 = scmp.lt.s32.totalorder %s12528_s21, 3 }
   0xc   : > { %p191_p9 = pnand %p10090_p7, %p190_p8 }
   0xe   : > { %194 = sbr.rel (%p191_p9) target bundleno = 2226 (0x8b2), region = 40 }
  0x15   : > { %v10092_v0 = vld [vmem:[%s14625_s1 + $0x8] sm:$0xff]  ;;  %v441_v1 = vlaneseq  ;;  %v12530_v2 = vmov 1983009808   ;;  %v224_v4 = vld [vmem:[%s14625_s1] sm:$0xff]  ;;  %p218_p10 = scmp.lt.s32.totalorder %s12586_s22, 1  ;;  %v14630_v6 = vmov 0  }
  0x16   : > { %v439_v3 = vunpack.c.l.s4 %v12530_v2  ;;  %524 = vmatprep.mubr.bf16.mxu0 %v14630_v6  ;;  %637 = vmatprep.mubr.bf16.mxu1 %v14630_v6  ;;  %v437_v8 = vcombine.high %v10092_v0, %v10092_v0  ;;  %v719_v9 = vcombine.high %v224_v4, %v224_v4  ;;  %vm479_vm0 = vcmask 1041408   ;;  %v10093_v11 = vld [vmem:[%s14625_s1 + $0x10] sm:$0xff]  ;;  %s215_s25 = sand.u32 1, %s12520_s19   ;;  %s12148_s17 = smul.u32 4608, %s12586_s22 }
  0x17   : > { %v12620_v5 = vshrl.u32 %v441_v1, 7  ;;  %s219_s9 = scalar_select %p218_p10, %s12586_s22, 1  ;;  %v1069_v16 = vcombine.high %v10093_v11, %v10093_v11  ;;  %vm367_vm1 = vsmask.f32 7424  ;;  %vm454_vm2 = vcmask 31744  }
  0x18   : > { %v440_v7 = vunpack.c.0.s8 %v439_v3  ;;  %vm1050_vm3 = vcmask 1046528   ;;  %vm1893_vm4 = vsmask.f32 6400  ;;  %vm2378_vm5 = vcmask 1045504   ;;  %s12146_s6 = smul.u32 288, %s215_s25  ;;  %s14583_s22 = scalar_lea.sflag [#allocation3], %s215_s25 }
  0x19   : > { %s12147_s10 = smul.u32 172, %s219_s9  ;;  %vm3221_vm6 = vsmask.f32 5376  ;;  %vm3706_vm7 = vcmask 1044480   ;;  %s12532_s9 = smov [#allocation2]  }
  0x1a   : > { %v12626_v10 = vsub.s32 %v440_v7, %v12620_v5  ;;  %s13710_s7 = scalar_lea.vmem [#allocation2], %s12146_s6  ;;  %s14575_s6 = scalar_lea.hbm %s14629_s5, %s12148_s17 }
  0x1b   : > { %s12637_s15 = scalar_lea.vmem %s14624_s0, %s12147_s10  ;;  %s10025_s23 = sshll.u32 %s13710_s7, 4  ;;  %s14577_s23 = int_to_ptr.vmem [resolvable:$true] %s10025_s23 }
  0x1c   : > { %v444_v12 = vrot.slane %v10092_v0, %v12626_v10  ;;  %v451_v13 = vrot.slane %v437_v8, %v12626_v10  ;;  %v726_v14 = vrot.slane %v224_v4, %v12626_v10  ;;  %v733_v15 = vrot.slane %v719_v9, %v12626_v10  ;;  %v12651_v21 = vld [vmem:[%s12637_s15] sm:$0xff]   ;;  %v12654_v22 = vld [vmem:[%s12637_s15 + $0x8] sm:$0xff]   ;;  %v12668_v28 = vld [vmem:[%s12637_s15 + $0x10] sm:$0xff]   ;;  %s12466_s8 = scalar_lea.vmem %s14577_s23, 4608  ;;  %s12470_s10 = sshll.u32 %s12532_s9, 4  ;;  %s12471_s10 = int_to_ptr.vmem [resolvable:$false] %s12470_s10 }
  0x1d   : > { %v369_v25 = vshrl.u32 %v12651_v21, 16  ;;  %v371_v26 = vshll.u32 %v12651_v21, 16  ;;  %v376_v27 = vshll.u32 %v12654_v22, 16  ;;  %v12677_v31 = vrot.slane %v10093_v11, %v12626_v10  ;;  %v12704_v43 = vld [vmem:[%s12637_s15 + $0x18] sm:$0xff]   ;;  %v12716_v47 = vld [vmem:[%s12637_s15 + $0x20] sm:$0xff]   ;;  %v12726_v53 = vld [vmem:[%s12637_s15 + $0x28] sm:$0xff]   ;;  %p12467_p11 = scmp.ne.s32.totalorder %s14577_s23, %s12466_s8  ;;  %p12473_p0 = scmp.lt.s32.totalorder %s14577_s23, %s12471_s10 }
  0x1e   : > { %v12640_v17 = vcombine.high %v444_v12, %v444_v12  ;;  %v12643_v18 = vsel %vm479_vm0, %v444_v12, 0  ;;  %v12645_v19 = vcombine.high %v451_v13, %v451_v13  ;;  %v12648_v20 = vsel %vm479_vm0, %v451_v13, 0  ;;  %v12736_v59 = vld [vmem:[%s12637_s15 + $0x30] sm:$0xff]   ;;  %v12746_v1 = vld [vmem:[%s12637_s15 + $0x38] sm:$0xff]   ;;  %s12472_s11 = scalar_lea.vmem %s12471_s10, 9216 }
  0x1f   : > { %v12656_v23 = vcombine.high %v726_v14, %v726_v14  ;;  %v12658_v24 = vcombine.high %v733_v15, %v733_v15  ;;  %v373_v29 = vrot.slane %v371_v26, 1  ;;  %v378_v30 = vrot.slane %v376_v27, 1  ;;  %v12202_v9 = vld [vmem:[%s12637_s15 + $0x40] ss:$0 sps:$4 sm:$0x11]   ;;  %v10094_v26 = vld [vmem:[%s14625_s1 + $0x18] sm:$0xff]  ;;  %p12468_p12 = pnand %p12467_p11, %p12603_p5  ;;  %p12474_p1 = scmp.lt.s32.totalorder %s12472_s11, %s12466_s8 }
  0x20   : > { %14637 = vst [vmem:[#allocation5_spill] sm:$0xff] %v12640_v17  ;;  %14638 = vst [vmem:[#allocation6_spill] sm:$0xff] %v12645_v19  ;;  %10109 = vmatprep.subr.msk.bf16.mxu0 %vm479_vm0, %v12640_v17  ;;  %10118 = vmatprep.subr.msk.bf16.mxu1 %vm479_vm0, %v12645_v19  ;;  %v12680_v32 = vrot.slane %v1069_v16, %v12626_v10  ;;  %v380_v34 = vshrl.u32 %v12654_v22, 16  ;;  %v384_v35 = vshll.u32 %v12668_v28, 16  ;;  %v12685_v36 = vsel %vm479_vm0, %v726_v14, 0 }
  0x21   : > { %493 = vmatpush1.bf16.msra.mxu0 %v12643_v18  ;;  %606 = vmatpush1.bf16.msra.mxu1 %v12648_v20  ;;  %v374_v33 = vor.u32 %v373_v29, %v369_v25  ;;  %v12688_v37 = vsel %vm479_vm0, %v733_v15, 0  ;;  %v12693_v39 = vcombine.high %v12677_v31, %v12677_v31  ;;  %v388_v45 = vshrl.u32 %v12668_v28, 16  ;;  %p12469_p13 = pneg %p12468_p12  ;;  %p12475_p2 = por %p12474_p1, %p12473_p0 }
  0x22   : > { %10127 = vmatprep.subr.msk.bf16.mxu0 %vm479_vm0, %v12656_v23  ;;  %10136 = vmatprep.subr.msk.bf16.mxu1 %vm479_vm0, %v12658_v24  ;;  %v12697_v40 = vcombine.high %v12680_v32, %v12680_v32  ;;  %v382_v41 = vor.u32 %v380_v34, %v378_v30  ;;  %v386_v42 = vrot.slane %v384_v35, 1  ;;  %v392_v46 = vshll.u32 %v12704_v43, 16 }
  0x23   : > { %v379_v38 = vsel %vm367_vm1, %v374_v33, %v378_v30  ;;  %v396_v50 = vshrl.u32 %v12704_v43, 16  ;;  %v400_v51 = vshll.u32 %v12716_v47, 16  ;;  %v404_v56 = vshrl.u32 %v12716_v47, 16  ;;  %p12476_p3 = pnand %p12475_p2, %p12469_p13 }
  0x24   : > { %10110 = vmatmul.mubr.msk.bf16.vlgmr.msra.gmra.mrb[0].mxu0 %vm454_vm2, %v379_v38  ;;  %10119 = vmatmul.mubr.msk.bf16.vlgmr.msra.gmra.mrb[0].mxu1 %vm454_vm2, %v379_v38  ;;  %v387_v44 = vsel %vm367_vm1, %v382_v41, %v386_v42  ;;  %v390_v48 = vor.u32 %v388_v45, %v386_v42  ;;  %v394_v49 = vrot.slane %v392_v46, 1  ;;  %v408_v57 = vshll.u32 %v12726_v53, 16 }
  0x25   : > { %765 = vmatpush1.bf16.msra.mxu0 %v12685_v36  ;;  %878 = vmatpush1.bf16.msra.mxu1 %v12688_v37  ;;  %v402_v55 = vrot.slane %v400_v51, 1  ;;  %v412_v62 = vshrl.u32 %v12726_v53, 16  ;;  %v416_v63 = vshll.u32 %v12736_v59, 16  ;;  %v420_v4 = vshrl.u32 %v12736_v59, 16 }
  0x26   : > { %534 = vmatprep.mubr.bf16.mxu0 %v14630_v6  ;;  %647 = vmatprep.mubr.bf16.mxu1 %v14630_v6  ;;  %v395_v52 = vsel %vm367_vm1, %v390_v48, %v394_v49  ;;  %v398_v54 = vor.u32 %v396_v50, %v394_v49  ;;  %v410_v61 = vrot.slane %v408_v57, 1  ;;  %v424_v7 = vshll.u32 %v12746_v1, 16 }
  0x27   : > { %10154 = vmatprep.subr.msk.bf16.mxu0 %vm479_vm0, %v12693_v39  ;;  %10163 = vmatprep.subr.msk.bf16.mxu1 %vm479_vm0, %v12697_v40  ;;  %v406_v60 = vor.u32 %v404_v56, %v402_v55  ;;  %v418_v3 = vrot.slane %v416_v63, 1  ;;  %v428_v13 = vshrl.u32 %v12746_v1, 16  ;;  %v432_v14 = vshll.u32 %v12202_v9, 16  ;;  %v12209_v56 = vld [vmem:[%s12637_s15 + $0x20] sm:$0xff]  }
  0x28   : > { %v403_v58 = vsel %vm367_vm1, %v398_v54, %v402_v55  ;;  %v414_v2 = vor.u32 %v412_v62, %v410_v61  ;;  %v426_v12 = vrot.slane %v424_v7, 1  ;;  %v1490_v29 = vcombine.high %v10094_v26, %v10094_v26  ;;  %v12211_v62 = vld [vmem:[%s12637_s15 + $0x30] sm:$0xff]  }
  0x29   : > { %v411_v0 = vsel %vm367_vm1, %v406_v60, %v410_v61  ;;  %v422_v11 = vor.u32 %v420_v4, %v418_v3  ;;  %v434_v25 = vrot.slane %v432_v14, 1  ;;  %v12776_v30 = vsel %vm479_vm0, %v12677_v31, 0  ;;  %v12213_v4 = vld [vmem:[%s12637_s15 + $0x40] ss:$0 sps:$4 sm:$0x11]  }
  0x2a   : > { %v419_v8 = vsel %vm367_vm1, %v414_v2, %v418_v3  ;;  %v430_v16 = vor.u32 %v428_v13, %v426_v12  ;;  %v12780_v33 = vsel %vm479_vm0, %v12680_v32, 0  ;;  %v1497_v34 = vrot.slane %v10094_v26, %v12626_v10 }
  0x2b   : > { %v427_v15 = vsel %vm367_vm1, %v422_v11, %v426_v12  ;;  %v1504_v35 = vrot.slane %v1490_v29, %v12626_v10  ;;  %v1058_v57 = vrot.slane %v12209_v56, 1  ;;  %v1062_v63 = vrot.slane %v12211_v62, 1  ;;  %v12214_v11 = vld [vmem:[%s12637_s15 + $0x8] sm:$0xfe]   ;;  %v12215_v12 = vld [vmem:[%s12637_s15 + $0x10] sm:$0xff]   ;;  %v12222_v56 = vld [vmem:[%s12637_s15 + $0x40] sm:$0xff]  }
  0x2c   : > { %10111 = vmatmul.mubr.msk.bf16.gmra.mrb[4].mxu0 %vm454_vm2, %v387_v44  ;;  %10120 = vmatmul.mubr.msk.bf16.gmra.mrb[4].mxu1 %vm454_vm2, %v387_v44  ;;  %v435_v27 = vsel %vm367_vm1, %v430_v16, %v434_v25  ;;  %v12784_v38 = vcombine.high %v1497_v34, %v1497_v34  ;;  %v12855_v46 = vsel %vm479_vm0, %v1497_v34, 0  ;;  %v1066_v7 = vrot.slane %v12213_v4, 1  ;;  %v10097_v4 = vld [vmem:[%s14625_s1 + $0x30] sm:$0xff] }
  0x2d   : > { %544 = vmatprep.mubr.bf16.mxu0 %v14630_v6  ;;  %657 = vmatprep.mubr.bf16.mxu1 %v14630_v6  ;;  %v12786_v41 = vcombine.high %v1504_v35, %v1504_v35  ;;  %v1472_v14 = vrot.slane %v12214_v11, 1 }
  0x34   : > { %10112 = vmatmul.mubr.msk.bf16.gmra.mrb[8].mxu0 %vm454_vm2, %v395_v52  ;;  %10121 = vmatmul.mubr.msk.bf16.gmra.mrb[8].mxu1 %vm454_vm2, %v395_v52 }
  0x35   : > { %554 = vmatprep.mubr.bf16.mxu0 %v14630_v6  ;;  %667 = vmatprep.mubr.bf16.mxu1 %v14630_v6 }
  0x3c   : > { %10113 = vmatmul.mubr.msk.bf16.gmra.mrb[12].mxu0 %vm454_vm2, %v403_v58  ;;  %10122 = vmatmul.mubr.msk.bf16.gmra.mrb[12].mxu1 %vm454_vm2, %v403_v58 }
  0x3d   : > { %564 = vmatprep.mubr.bf16.mxu0 %v14630_v6  ;;  %677 = vmatprep.mubr.bf16.mxu1 %v14630_v6 }
  0x44   : > { %10114 = vmatmul.mubr.msk.bf16.gmra.mrb[16].mxu0 %vm454_vm2, %v411_v0  ;;  %10123 = vmatmul.mubr.msk.bf16.gmra.mrb[16].mxu1 %vm454_vm2, %v411_v0 }
  0x45   : > { %574 = vmatprep.mubr.bf16.mxu0 %v14630_v6  ;;  %687 = vmatprep.mubr.bf16.mxu1 %v14630_v6 }
  0x4c   : > { %10115 = vmatmul.mubr.msk.bf16.gmra.mrb[20].mxu0 %vm454_vm2, %v419_v8  ;;  %10124 = vmatmul.mubr.msk.bf16.gmra.mrb[20].mxu1 %vm454_vm2, %v419_v8  ;;  %v10096_v8 = vld [vmem:[%s14625_s1 + $0x28] sm:$0xff] }
  0x4d   : > { %584 = vmatprep.mubr.bf16.mxu0 %v14630_v6  ;;  %697 = vmatprep.mubr.bf16.mxu1 %v14630_v6  ;;  %v2397_v13 = vcombine.high %v10096_v8, %v10096_v8  ;;  %v12926_v16 = vrot.slane %v10096_v8, %v12626_v10 }
  0x4f   : > { %v12929_v25 = vrot.slane %v2397_v13, %v12626_v10  ;;  %v2818_v13 = vcombine.high %v10097_v4, %v10097_v4 }
  0x54   : > { %10116 = vmatmul.mubr.msk.bf16.gmra.mrb[24].mxu0 %vm454_vm2, %v427_v15  ;;  %10125 = vmatmul.mubr.msk.bf16.gmra.mrb[24].mxu1 %vm454_vm2, %v427_v15  ;;  %v1473_v15 = vrot.slane %v12215_v12, 1  ;;  %v12227_v12 = vld [vmem:[%s12637_s15 + $0x18] sm:$0xff]  }
  0x55   : > { %594 = vmatprep.mubr.bf16.mxu0 %v14630_v6  ;;  %707 = vmatprep.mubr.bf16.mxu1 %v14630_v6 }
  0x56   : > { %v1474_v26 = vsel %vm1050_vm3, %v1472_v14, %v1473_v15 }
  0x5c   : > { %10117 = vmatmul.mubr.msk.bf16.gmra.mrb[28].mxu0 %vm454_vm2, %v435_v27  ;;  %10126 = vmatmul.mubr.msk.bf16.gmra.mrb[28].mxu1 %vm454_vm2, %v435_v27  ;;  %v12217_v27 = vld [vmem:[%s12637_s15 + $0x18] sm:$0xff]  }
  0x5d   : > { %796 = vmatprep.mubr.bf16.mxu0 %v14630_v6  ;;  %909 = vmatprep.mubr.bf16.mxu1 %v14630_v6 }
  0x64   : > { %10128 = vmatmul.mubr.msk.bf16.vlgmr.msra.gmra.mrb[0].mxu0 %vm454_vm2, %v12651_v21  ;;  %10137 = vmatmul.mubr.msk.bf16.vlgmr.msra.gmra.mrb[0].mxu1 %vm454_vm2, %v12651_v21  ;;  %v12204_v21 = vld [vmem:[%s12637_s15] sm:$0xfe]  }
  0x65   : > { %1123 = vmatpush1.bf16.msra.mxu0 %v12776_v30  ;;  %1236 = vmatpush1.bf16.msra.mxu1 %v12780_v33  ;;  %v1051_v32 = vrot.slane %v12204_v21, 1  ;;  %v12947_v21 = vcombine.high %v12929_v25, %v12929_v25 }
  0x66   : > { %806 = vmatprep.mubr.bf16.mxu0 %v14630_v6  ;;  %919 = vmatprep.mubr.bf16.mxu1 %v14630_v6 }
  0x67   : > { %10181 = vmatprep.subr.msk.bf16.mxu0 %vm479_vm0, %v12784_v38  ;;  %10190 = vmatprep.subr.msk.bf16.mxu1 %vm479_vm0, %v12786_v41 }
  0x6c   : > { %10129 = vmatmul.mubr.msk.bf16.gmra.mrb[4].mxu0 %vm454_vm2, %v12654_v22  ;;  %10138 = vmatmul.mubr.msk.bf16.gmra.mrb[4].mxu1 %vm454_vm2, %v12654_v22  ;;  %v12205_v22 = vld [vmem:[%s12637_s15 + $0x8] sm:$0xff]  }
  0x6d   : > { %816 = vmatprep.mubr.bf16.mxu0 %v14630_v6  ;;  %929 = vmatprep.mubr.bf16.mxu1 %v14630_v6  ;;  %v1052_v42 = vrot.slane %v12205_v22, 1  ;;  %v1475_v22 = vrot.slane %v12217_v27, 1  ;;  %v1915_v27 = vshll.u32 %v12227_v12, 16 }
  0x6f   : > { %v1053_v48 = vsel %vm1050_vm3, %v1051_v32, %v1052_v42 }
  0x74   : > { %10130 = vmatmul.mubr.msk.bf16.gmra.mrb[8].mxu0 %vm454_vm2, %v12668_v28  ;;  %10139 = vmatmul.mubr.msk.bf16.gmra.mrb[8].mxu1 %vm454_vm2, %v12668_v28  ;;  %v10095_v28 = vld [vmem:[%s14625_s1 + $0x20] sm:$0xff] }
  0x75   : > { %826 = vmatprep.mubr.bf16.mxu0 %v14630_v6  ;;  %939 = vmatprep.mubr.bf16.mxu1 %v14630_v6  ;;  %v1975_v31 = vcombine.high %v10095_v28, %v10095_v28  ;;  %v12849_v44 = vrot.slane %v10095_v28, %v12626_v10  ;;  %v1476_v28 = vsel %vm1050_vm3, %v1473_v15, %v1475_v22 }
  0x77   : > { %v12852_v45 = vrot.slane %v1975_v31, %v12626_v10  ;;  %v12863_v49 = vcombine.high %v12849_v44, %v12849_v44  ;;  %v12935_v29 = vsel %vm479_vm0, %v12849_v44, 0  ;;  %v12218_v31 = vld [vmem:[%s12637_s15 + $0x20] sm:$0xff]  }
  0x78   : > { %v1477_v32 = vrot.slane %v12218_v31, 1 }
  0x79   : > { %v12867_v50 = vcombine.high %v12852_v45, %v12852_v45  ;;  %v12939_v34 = vsel %vm479_vm0, %v12852_v45, 0 }
  0x7c   : > { %10131 = vmatmul.mubr.msk.bf16.gmra.mrb[12].mxu0 %vm454_vm2, %v12704_v43  ;;  %10140 = vmatmul.mubr.msk.bf16.gmra.mrb[12].mxu1 %vm454_vm2, %v12704_v43  ;;  %v12207_v43 = vld [vmem:[%s12637_s15 + $0x10] sm:$0xff]  }
  0x7d   : > { %836 = vmatprep.mubr.bf16.mxu0 %v14630_v6  ;;  %949 = vmatprep.mubr.bf16.mxu1 %v14630_v6  ;;  %v1054_v51 = vrot.slane %v12207_v43, 1  ;;  %v12219_v43 = vld [vmem:[%s12637_s15 + $0x28] sm:$0xff]  }
  0x7e   : > { %v1479_v44 = vrot.slane %v12219_v43, 1  ;;  %v12228_v43 = vld [vmem:[%s12637_s15 + $0x20] sm:$0xff]  }
  0x7f   : > { %v1055_v52 = vsel %vm1050_vm3, %v1052_v42, %v1054_v51  ;;  %v1478_v42 = vsel %vm1050_vm3, %v1475_v22, %v1477_v32  ;;  %v13007_v22 = vrot.slane %v10097_v4, %v12626_v10 }
  0x80   : > { %v1480_v45 = vsel %vm1050_vm3, %v1477_v32, %v1479_v44 }
  0x84   : > { %10132 = vmatmul.mubr.msk.bf16.gmra.mrb[16].mxu0 %vm454_vm2, %v12716_v47  ;;  %10141 = vmatmul.mubr.msk.bf16.gmra.mrb[16].mxu1 %vm454_vm2, %v12716_v47  ;;  %v12858_v47 = vsel %vm479_vm0, %v1504_v35, 0  ;;  %v12943_v35 = vcombine.high %v12926_v16, %v12926_v16 }
  0x85   : > { %846 = vmatprep.mubr.bf16.mxu0 %v14630_v6  ;;  %959 = vmatprep.mubr.bf16.mxu1 %v14630_v6 }
  0x8c   : > { %10133 = vmatmul.mubr.msk.bf16.gmra.mrb[20].mxu0 %vm454_vm2, %v12726_v53  ;;  %10142 = vmatmul.mubr.msk.bf16.gmra.mrb[20].mxu1 %vm454_vm2, %v12726_v53  ;;  %v12208_v53 = vld [vmem:[%s12637_s15 + $0x18] sm:$0xff]  }
  0x8d   : > { %856 = vmatprep.mubr.bf16.mxu0 %v14630_v6  ;;  %969 = vmatprep.mubr.bf16.mxu1 %v14630_v6  ;;  %v1056_v54 = vrot.slane %v12208_v53, 1  ;;  %v12221_v53 = vld [vmem:[%s12637_s15 + $0x38] sm:$0xff]  }
  0x8f   : > { %v1057_v55 = vsel %vm1050_vm3, %v1054_v51, %v1056_v54  ;;  %v1059_v58 = vsel %vm1050_vm3, %v1056_v54, %v1058_v57  ;;  %v1483_v54 = vrot.slane %v12221_v53, 1 }
  0x94   : > { %10134 = vmatmul.mubr.msk.bf16.gmra.mrb[24].mxu0 %vm454_vm2, %v12736_v59  ;;  %10143 = vmatmul.mubr.msk.bf16.gmra.mrb[24].mxu1 %vm454_vm2, %v12736_v59  ;;  %v12210_v59 = vld [vmem:[%s12637_s15 + $0x28] sm:$0xff]  }
  0x95   : > { %866 = vmatprep.mubr.bf16.mxu0 %v14630_v6  ;;  %979 = vmatprep.mubr.bf16.mxu1 %v14630_v6  ;;  %v1060_v60 = vrot.slane %v12210_v59, 1 }
  0x97   : > { %v1061_v61 = vsel %vm1050_vm3, %v1058_v57, %v1060_v60  ;;  %v1063_v0 = vsel %vm1050_vm3, %v1060_v60, %v1062_v63  ;;  %v1485_v57 = vrot.slane %v12222_v56, 1  ;;  %v12224_v60 = vld [vmem:[%s12637_s15 + $0x8] sm:$0xfe]  }
  0x98   : > { %v12229_v56 = vld [vmem:[%s12637_s15 + $0x28] sm:$0xff]  }
  0x99   : > { %v1486_v59 = vsel %vm1050_vm3, %v1483_v54, %v1485_v57 }
  0x9c   : > { %10135 = vmatmul.mubr.msk.bf16.gmra.mrb[28].mxu0 %vm454_vm2, %v12746_v1  ;;  %10144 = vmatmul.mubr.msk.bf16.gmra.mrb[28].mxu1 %vm454_vm2, %v12746_v1  ;;  %v12212_v1 = vld [vmem:[%s12637_s15 + $0x38] sm:$0xff]  }
  0x9d   : > { %1154 = vmatprep.mubr.bf16.mxu0 %v14630_v6  ;;  %1267 = vmatprep.mubr.bf16.mxu1 %v14630_v6  ;;  %v1064_v2 = vrot.slane %v12212_v1, 1 }
  0x9f   : > { %v1065_v3 = vsel %vm1050_vm3, %v1062_v63, %v1064_v2  ;;  %v1067_v9 = vsel %vm1050_vm3, %v1064_v2, %v1066_v7  ;;  %v1895_v63 = vshrl.u32 %v12224_v60, 16 }
  0xa1   : > { %v1897_v7 = vrot.slane %v1895_v63, 1  ;;  %v12230_v63 = vld [vmem:[%s12637_s15 + $0x30] sm:$0xff]  }
  0xa4   : > { %10155 = vmatmul.mubr.msk.bf16.vlgmr.msra.gmra.mrb[0].mxu0 %vm454_vm2, %v1053_v48  ;;  %10164 = vmatmul.mubr.msk.bf16.vlgmr.msra.gmra.mrb[0].mxu1 %vm454_vm2, %v1053_v48  ;;  %v12220_v48 = vld [vmem:[%s12637_s15 + $0x30] sm:$0xff]  }
  0xa5   : > { %1544 = vmatpush1.bf16.msra.mxu0 %v12855_v46  ;;  %1657 = vmatpush1.bf16.msra.mxu1 %v12858_v47  ;;  %v1481_v51 = vrot.slane %v12220_v48, 1  ;;  %v13024_v48 = vcombine.high %v13007_v22, %v13007_v22 }
  0xa6   : > { %1164 = vmatprep.mubr.bf16.mxu0 %v14630_v6  ;;  %1277 = vmatprep.mubr.bf16.mxu1 %v14630_v6 }
  0xa7   : > { %10208 = vmatprep.subr.msk.bf16.mxu0 %vm479_vm0, %v12863_v49  ;;  %10217 = vmatprep.subr.msk.bf16.mxu1 %vm479_vm0, %v12867_v50 }
  0xac   : > { %10156 = vmatmul.mubr.msk.bf16.gmra.mrb[4].mxu0 %vm454_vm2, %v1055_v52  ;;  %10165 = vmatmul.mubr.msk.bf16.gmra.mrb[4].mxu1 %vm454_vm2, %v1055_v52  ;;  %v1482_v52 = vsel %vm1050_vm3, %v1479_v44, %v1481_v51  ;;  %v13016_v44 = vsel %vm479_vm0, %v12926_v16, 0 }
  0xad   : > { %1174 = vmatprep.mubr.bf16.mxu0 %v14630_v6  ;;  %1287 = vmatprep.mubr.bf16.mxu1 %v14630_v6 }
  0xb4   : > { %10157 = vmatmul.mubr.msk.bf16.gmra.mrb[8].mxu0 %vm454_vm2, %v1057_v55  ;;  %10166 = vmatmul.mubr.msk.bf16.gmra.mrb[8].mxu1 %vm454_vm2, %v1057_v55  ;;  %v1484_v55 = vsel %vm1050_vm3, %v1481_v51, %v1483_v54 }
  0xb5   : > { %1184 = vmatprep.mubr.bf16.mxu0 %v14630_v6  ;;  %1297 = vmatprep.mubr.bf16.mxu1 %v14630_v6 }
  0xbc   : > { %10158 = vmatmul.mubr.msk.bf16.gmra.mrb[12].mxu0 %vm454_vm2, %v1059_v58  ;;  %10167 = vmatmul.mubr.msk.bf16.gmra.mrb[12].mxu1 %vm454_vm2, %v1059_v58  ;;  %v12223_v58 = vld [vmem:[%s12637_s15 + $0x48] ss:$0 sps:$4 sm:$0x11]  }
  0xbd   : > { %1194 = vmatprep.mubr.bf16.mxu0 %v14630_v6  ;;  %1307 = vmatprep.mubr.bf16.mxu1 %v14630_v6  ;;  %v1487_v62 = vrot.slane %v12223_v58, 1  ;;  %v1930_v58 = vshrl.u32 %v12229_v56, 16 }
  0xc4   : > { %10159 = vmatmul.mubr.msk.bf16.gmra.mrb[16].mxu0 %vm454_vm2, %v1061_v61  ;;  %10168 = vmatmul.mubr.msk.bf16.gmra.mrb[16].mxu1 %vm454_vm2, %v1061_v61  ;;  %v12225_v61 = vld [vmem:[%s12637_s15 + $0x10] sm:$0xff]  }
  0xc5   : > { %1204 = vmatprep.mubr.bf16.mxu0 %v14630_v6  ;;  %1317 = vmatprep.mubr.bf16.mxu1 %v14630_v6  ;;  %v1903_v1 = vshrl.u32 %v12225_v61, 16  ;;  %v1906_v2 = vshll.u32 %v12225_v61, 16  ;;  %v1932_v61 = vrot.slane %v1930_v58, 1 }
  0xc7   : > { %v1908_v11 = vrot.slane %v1906_v2, 2  ;;  %v1942_v2 = vshll.u32 %v12230_v63, 16 }
  0xcc   : > { %10160 = vmatmul.mubr.msk.bf16.gmra.mrb[20].mxu0 %vm454_vm2, %v1063_v0  ;;  %10169 = vmatmul.mubr.msk.bf16.gmra.mrb[20].mxu1 %vm454_vm2, %v1063_v0  ;;  %v1898_v0 = vshll.u32 %v12224_v60, 16 }
  0xcd   : > { %1214 = vmatprep.mubr.bf16.mxu0 %v14630_v6  ;;  %1327 = vmatprep.mubr.bf16.mxu1 %v14630_v6 }
  0xce   : > { %v1900_v8 = vrot.slane %v1898_v0, 2 }
  0xd0   : > { %v1901_v14 = vor.u32 %v1900_v8, %v1897_v7  ;;  %v1944_v7 = vrot.slane %v1942_v2, 2  ;;  %v12231_v8 = vld [vmem:[%s12637_s15 + $0x38] sm:$0xff]  }
  0xd4   : > { %10161 = vmatmul.mubr.msk.bf16.gmra.mrb[24].mxu0 %vm454_vm2, %v1065_v3  ;;  %10170 = vmatmul.mubr.msk.bf16.gmra.mrb[24].mxu1 %vm454_vm2, %v1065_v3  ;;  %v1488_v3 = vsel %vm1050_vm3, %v1485_v57, %v1487_v62 }
  0xd5   : > { %1224 = vmatprep.mubr.bf16.mxu0 %v14630_v6  ;;  %1337 = vmatprep.mubr.bf16.mxu1 %v14630_v6 }
  0xdc   : > { %10162 = vmatmul.mubr.msk.bf16.gmra.mrb[28].mxu0 %vm454_vm2, %v1067_v9  ;;  %10171 = vmatmul.mubr.msk.bf16.gmra.mrb[28].mxu1 %vm454_vm2, %v1067_v9  ;;  %v1905_v9 = vrot.slane %v1903_v1, 1  ;;  %v1939_v1 = vshrl.u32 %v12230_v63, 16 }
  0xdd   : > { %1575 = vmatprep.mubr.bf16.mxu0 %v14630_v6  ;;  %1688 = vmatprep.mubr.bf16.mxu1 %v14630_v6 }
  0xde   : > { %v1909_v15 = vor.u32 %v1908_v11, %v1905_v9  ;;  %v1941_v4 = vrot.slane %v1939_v1, 1  ;;  %v1948_v11 = vshrl.u32 %v12231_v8, 16 }
  0xe0   : > { %v1910_v31 = vsel %vm1893_vm4, %v1901_v14, %v1909_v15  ;;  %v1945_v9 = vor.u32 %v1944_v7, %v1941_v4  ;;  %v1950_v14 = vrot.slane %v1948_v11, 1  ;;  %v12237_v7 = vld [vmem:[%s12637_s15 + $0x18] sm:$0xff]  }
  0xe4   : > { %10182 = vmatmul.mubr.msk.bf16.vlgmr.msra.gmra.mrb[0].mxu0 %vm454_vm2, %v1474_v26  ;;  %10191 = vmatmul.mubr.msk.bf16.vlgmr.msra.gmra.mrb[0].mxu1 %vm454_vm2, %v1474_v26  ;;  %v1912_v26 = vshrl.u32 %v12227_v12, 16  ;;  %v1951_v12 = vshll.u32 %v12231_v8, 16  ;;  %v13095_v8 = vsel %vm479_vm0, %v13007_v22, 0  ;;  %v2382_v22 = vrot.slane %v12237_v7, 2 }
  0xe5   : > { %2029 = vmatpush1.bf16.msra.mxu0 %v12935_v29  ;;  %2142 = vmatpush1.bf16.msra.mxu1 %v12939_v34 }
  0xe6   : > { %1585 = vmatprep.mubr.bf16.mxu0 %v14630_v6  ;;  %1698 = vmatprep.mubr.bf16.mxu1 %v14630_v6  ;;  %v1914_v32 = vrot.slane %v1912_v26, 1  ;;  %v12232_v26 = vld [vmem:[%s12637_s15 + $0x40] sm:$0xff]  }
  0xe7   : > { %10235 = vmatprep.subr.msk.bf16.mxu0 %vm479_vm0, %v12943_v35  ;;  %10244 = vmatprep.subr.msk.bf16.mxu1 %vm479_vm0, %v12947_v21 }
  0xec   : > { %10183 = vmatmul.mubr.msk.bf16.gmra.mrb[4].mxu0 %vm454_vm2, %v1476_v28  ;;  %10192 = vmatmul.mubr.msk.bf16.gmra.mrb[4].mxu1 %vm454_vm2, %v1476_v28  ;;  %v13010_v28 = vrot.slane %v2818_v13, %v12626_v10 }
  0xed   : > { %1595 = vmatprep.mubr.bf16.mxu0 %v14630_v6  ;;  %1708 = vmatprep.mubr.bf16.mxu1 %v14630_v6 }
  0xee   : > { %v13028_v51 = vcombine.high %v13010_v28, %v13010_v28 }
  0xf4   : > { %10184 = vmatmul.mubr.msk.bf16.gmra.mrb[8].mxu0 %vm454_vm2, %v1478_v42  ;;  %10193 = vmatmul.mubr.msk.bf16.gmra.mrb[8].mxu1 %vm454_vm2, %v1478_v42  ;;  %v1917_v42 = vrot.slane %v1915_v27, 2 }
  0xf5   : > { %1605 = vmatprep.mubr.bf16.mxu0 %v14630_v6  ;;  %1718 = vmatprep.mubr.bf16.mxu1 %v14630_v6 }
  0xf6   : > { %v1918_v16 = vor.u32 %v1917_v42, %v1914_v32  ;;  %v1960_v32 = vshll.u32 %v12232_v26, 16 }
  0xf8   : > { %v1919_v53 = vsel %vm1893_vm4, %v1909_v15, %v1918_v16  ;;  %v1953_v15 = vrot.slane %v1951_v12, 2 }
  0xfa   : > { %v1954_v27 = vor.u32 %v1953_v15, %v1950_v14 }
  0xfc   : > { %10185 = vmatmul.mubr.msk.bf16.gmra.mrb[12].mxu0 %vm454_vm2, %v1480_v45  ;;  %10194 = vmatmul.mubr.msk.bf16.gmra.mrb[12].mxu1 %vm454_vm2, %v1480_v45  ;;  %v13020_v45 = vsel %vm479_vm0, %v12929_v25, 0  ;;  %v1921_v25 = vshrl.u32 %v12228_v43, 16  ;;  %v1955_v42 = vsel %vm1893_vm4, %v1945_v9, %v1954_v27 }
  0xfd   : > { %1615 = vmatprep.mubr.bf16.mxu0 %v14630_v6  ;;  %1728 = vmatprep.mubr.bf16.mxu1 %v14630_v6 }
  0xfe   : > { %v1923_v54 = vrot.slane %v1921_v25, 1  ;;  %v12233_v25 = vld [vmem:[%s12637_s15 + $0x48] ss:$0 sps:$4 sm:$0x33]  }
 0x104   : > { %10186 = vmatmul.mubr.msk.bf16.gmra.mrb[16].mxu0 %vm454_vm2, %v1482_v52  ;;  %10195 = vmatmul.mubr.msk.bf16.gmra.mrb[16].mxu1 %vm454_vm2, %v1482_v52  ;;  %v1924_v52 = vshll.u32 %v12228_v43, 16 }
 0x105   : > { %1625 = vmatprep.mubr.bf16.mxu0 %v14630_v6  ;;  %1738 = vmatprep.mubr.bf16.mxu1 %v14630_v6 }
 0x10c   : > { %10187 = vmatmul.mubr.msk.bf16.gmra.mrb[20].mxu0 %vm454_vm2, %v1484_v55  ;;  %10196 = vmatmul.mubr.msk.bf16.gmra.mrb[20].mxu1 %vm454_vm2, %v1484_v55  ;;  %v1926_v55 = vrot.slane %v1924_v52, 2 }
 0x10d   : > { %1635 = vmatprep.mubr.bf16.mxu0 %v14630_v6  ;;  %1748 = vmatprep.mubr.bf16.mxu1 %v14630_v6 }
 0x10e   : > { %v1927_v57 = vor.u32 %v1926_v55, %v1923_v54  ;;  %v1969_v54 = vshll.u32 %v12233_v25, 16 }
 0x110   : > { %v1928_v60 = vsel %vm1893_vm4, %v1918_v16, %v1927_v57  ;;  %v1962_v16 = vrot.slane %v1960_v32, 2  ;;  %v12240_v32 = vld [vmem:[%s12637_s15 + $0x30] sm:$0xff]  }
 0x114   : > { %10188 = vmatmul.mubr.msk.bf16.gmra.mrb[24].mxu0 %vm454_vm2, %v1486_v59  ;;  %10197 = vmatmul.mubr.msk.bf16.gmra.mrb[24].mxu1 %vm454_vm2, %v1486_v59  ;;  %v1933_v59 = vshll.u32 %v12229_v56, 16 }
 0x115   : > { %1645 = vmatprep.mubr.bf16.mxu0 %v14630_v6  ;;  %1758 = vmatprep.mubr.bf16.mxu1 %v14630_v6 }
 0x116   : > { %v1935_v62 = vrot.slane %v1933_v59, 2  ;;  %v10098_v59 = vld [vmem:[%s14625_s1 + $0x38] sm:$0xff] }
 0x117   : > { %v3303_v63 = vcombine.high %v10098_v59, %v10098_v59  ;;  %v13086_v2 = vrot.slane %v10098_v59, %v12626_v10 }
 0x118   : > { %v1936_v0 = vor.u32 %v1935_v62, %v1932_v61  ;;  %v12234_v61 = vld [vmem:[%s12637_s15 + $0x8] sm:$0xfc]   ;;  %v12235_v62 = vld [vmem:[%s12637_s15 + $0x10] sm:$0xff]  }
 0x119   : > { %v2380_v1 = vrot.slane %v12235_v62, 2  ;;  %v13103_v11 = vcombine.high %v13086_v2, %v13086_v2 }
 0x11a   : > { %v1946_v13 = vsel %vm1893_vm4, %v1936_v0, %v1945_v9  ;;  %v13099_v9 = vsel %vm479_vm0, %v13010_v28, 0 }
 0x11b   : > { %v2383_v28 = vsel %vm2378_vm5, %v2380_v1, %v2382_v22 }
 0x11c   : > { %10189 = vmatmul.mubr.msk.bf16.gmra.mrb[28].mxu0 %vm454_vm2, %v1488_v3  ;;  %10198 = vmatmul.mubr.msk.bf16.gmra.mrb[28].mxu1 %vm454_vm2, %v1488_v3  ;;  %v1937_v3 = vsel %vm1893_vm4, %v1927_v57, %v1936_v0  ;;  %v1971_v57 = vrot.slane %v1969_v54, 2  ;;  %v2379_v0 = vrot.slane %v12234_v61, 2  ;;  %v12245_v61 = vld [vmem:[%s12637_s15 + $0x18] sm:$0xff]  }
 0x11d   : > { %2060 = vmatprep.mubr.bf16.mxu0 %v14630_v6  ;;  %2173 = vmatprep.mubr.bf16.mxu1 %v14630_v6 }
 0x11e   : > { %v2381_v4 = vsel %vm2378_vm5, %v2379_v0, %v2380_v1  ;;  %v2801_v0 = vrot.slane %v12245_v61, 2 }
 0x124   : > { %10209 = vmatmul.mubr.msk.bf16.vlgmr.msra.gmra.mrb[0].mxu0 %vm454_vm2, %v1910_v31  ;;  %10218 = vmatmul.mubr.msk.bf16.vlgmr.msra.gmra.mrb[0].mxu1 %vm454_vm2, %v1910_v31  ;;  %v1957_v31 = vshrl.u32 %v12232_v26, 16  ;;  %v12239_v26 = vld [vmem:[%s12637_s15 + $0x28] sm:$0xff]  }
 0x125   : > { %2451 = vmatpush1.bf16.msra.mxu0 %v13016_v44  ;;  %2564 = vmatpush1.bf16.msra.mxu1 %v13020_v45 }
 0x126   : > { %2070 = vmatprep.mubr.bf16.mxu0 %v14630_v6  ;;  %2183 = vmatprep.mubr.bf16.mxu1 %v14630_v6  ;;  %v1959_v43 = vrot.slane %v1957_v31, 1 }
 0x127   : > { %10262 = vmatprep.subr.msk.bf16.mxu0 %vm479_vm0, %v13024_v48  ;;  %10271 = vmatprep.subr.msk.bf16.mxu1 %vm479_vm0, %v13028_v51 }
 0x128   : > { %v1963_v52 = vor.u32 %v1962_v16, %v1959_v43  ;;  %v12241_v16 = vld [vmem:[%s12637_s15 + $0x38] sm:$0xff]  }
 0x12a   : > { %v1964_v55 = vsel %vm1893_vm4, %v1954_v27, %v1963_v52  ;;  %v2386_v27 = vrot.slane %v12239_v26, 2 }
 0x12c   : > { %10210 = vmatmul.mubr.msk.bf16.gmra.mrb[4].mxu0 %vm454_vm2, %v1919_v53  ;;  %10219 = vmatmul.mubr.msk.bf16.gmra.mrb[4].mxu1 %vm454_vm2, %v1919_v53  ;;  %v1966_v53 = vshrl.u32 %v12233_v25, 16  ;;  %v2390_v25 = vrot.slane %v12241_v16, 2 }
 0x12d   : > { %2080 = vmatprep.mubr.bf16.mxu0 %v14630_v6  ;;  %2193 = vmatprep.mubr.bf16.mxu1 %v14630_v6 }
 0x12e   : > { %v1968_v56 = vrot.slane %v1966_v53, 1  ;;  %v12242_v53 = vld [vmem:[%s12637_s15 + $0x40] sm:$0xff]  }
 0x12f   : > { %v2392_v54 = vrot.slane %v12242_v53, 2 }
 0x130   : > { %v1972_v58 = vor.u32 %v1971_v57, %v1968_v56  ;;  %v12243_v56 = vld [vmem:[%s12637_s15 + $0x48] ss:$0 sps:$4 sm:$0x33]  }
 0x131   : > { %v2394_v57 = vrot.slane %v12243_v56, 2 }
 0x133   : > { %v2395_v59 = vsel %vm2378_vm5, %v2392_v54, %v2394_v57  ;;  %v12253_v57 = vld [vmem:[%s12637_s15 + $0x50] ss:$0 sps:$4 sm:$0x33]  }
 0x134   : > { %10211 = vmatmul.mubr.msk.bf16.gmra.mrb[8].mxu0 %vm454_vm2, %v1928_v60  ;;  %10220 = vmatmul.mubr.msk.bf16.gmra.mrb[8].mxu1 %vm454_vm2, %v1928_v60  ;;  %v1973_v60 = vsel %vm1893_vm4, %v1963_v52, %v1972_v58  ;;  %v10099_v58 = vld [vmem:[%s14625_s1 + $0x40] sm:$0xff]  ;;  %v2815_v61 = vrot.slane %v12253_v57, 2 }
 0x135   : > { %2090 = vmatprep.mubr.bf16.mxu0 %v14630_v6  ;;  %2203 = vmatprep.mubr.bf16.mxu1 %v14630_v6  ;;  %v3725_v62 = vcombine.high %v10099_v58, %v10099_v58  ;;  %v13166_v1 = vrot.slane %v10099_v58, %v12626_v10  ;;  %v12275_v57 = vld [vmem:[%s14627_s3 + $0xc0] sm:$0xff]  }
 0x13c   : > { %10212 = vmatmul.mubr.msk.bf16.gmra.mrb[12].mxu0 %vm454_vm2, %v1937_v3  ;;  %10221 = vmatmul.mubr.msk.bf16.gmra.mrb[12].mxu1 %vm454_vm2, %v1937_v3  ;;  %v13089_v3 = vrot.slane %v3303_v63, %v12626_v10 }
 0x13d   : > { %2100 = vmatprep.mubr.bf16.mxu0 %v14630_v6  ;;  %2213 = vmatprep.mubr.bf16.mxu1 %v14630_v6 }
 0x13e   : > { %v13107_v12 = vcombine.high %v13089_v3, %v13089_v3 }
 0x144   : > { %10213 = vmatmul.mubr.msk.bf16.gmra.mrb[16].mxu0 %vm454_vm2, %v1946_v13  ;;  %10222 = vmatmul.mubr.msk.bf16.gmra.mrb[16].mxu1 %vm454_vm2, %v1946_v13  ;;  %v12238_v13 = vld [vmem:[%s12637_s15 + $0x20] sm:$0xff]  }
 0x145   : > { %2110 = vmatprep.mubr.bf16.mxu0 %v14630_v6  ;;  %2223 = vmatprep.mubr.bf16.mxu1 %v14630_v6  ;;  %v2384_v14 = vrot.slane %v12238_v13, 2  ;;  %v13179_v13 = vsel %vm479_vm0, %v13089_v3, 0 }
 0x147   : > { %v2385_v15 = vsel %vm2378_vm5, %v2382_v22, %v2384_v14  ;;  %v2387_v31 = vsel %vm2378_vm5, %v2384_v14, %v2386_v27  ;;  %v12247_v22 = vld [vmem:[%s12637_s15 + $0x20] sm:$0xff]   ;;  %v13183_v14 = vcombine.high %v13166_v1, %v13166_v1 }
 0x14c   : > { %10214 = vmatmul.mubr.msk.bf16.gmra.mrb[20].mxu0 %vm454_vm2, %v1955_v42  ;;  %10223 = vmatmul.mubr.msk.bf16.gmra.mrb[20].mxu1 %vm454_vm2, %v1955_v42  ;;  %v2388_v42 = vrot.slane %v12240_v32, 2 }
 0x14d   : > { %2120 = vmatprep.mubr.bf16.mxu0 %v14630_v6  ;;  %2233 = vmatprep.mubr.bf16.mxu1 %v14630_v6 }
 0x14e   : > { %v2389_v43 = vsel %vm2378_vm5, %v2386_v27, %v2388_v42  ;;  %v2391_v52 = vsel %vm2378_vm5, %v2388_v42, %v2390_v25 }
 0x154   : > { %10215 = vmatmul.mubr.msk.bf16.gmra.mrb[24].mxu0 %vm454_vm2, %v1964_v55  ;;  %10224 = vmatmul.mubr.msk.bf16.gmra.mrb[24].mxu1 %vm454_vm2, %v1964_v55  ;;  %v2393_v55 = vsel %vm2378_vm5, %v2390_v25, %v2392_v54 }
 0x155   : > { %2130 = vmatprep.mubr.bf16.mxu0 %v14630_v6  ;;  %2243 = vmatprep.mubr.bf16.mxu1 %v14630_v6 }
 0x15c   : > { %10216 = vmatmul.mubr.msk.bf16.gmra.mrb[28].mxu0 %vm454_vm2, %v1973_v60  ;;  %10225 = vmatmul.mubr.msk.bf16.gmra.mrb[28].mxu1 %vm454_vm2, %v1973_v60  ;;  %v12244_v60 = vld [vmem:[%s12637_s15 + $0x10] sm:$0xfc]  }
 0x15d   : > { %2482 = vmatprep.mubr.bf16.mxu0 %v14630_v6  ;;  %2595 = vmatprep.mubr.bf16.mxu1 %v14630_v6  ;;  %v2800_v63 = vrot.slane %v12244_v60, 2  ;;  %v12255_v60 = vld [vmem:[%s12637_s15 + $0x18] sm:$0xff]  }
 0x15f   : > { %v2802_v7 = vsel %vm2378_vm5, %v2800_v63, %v2801_v0 }
 0x164   : > { %10236 = vmatmul.mubr.msk.bf16.vlgmr.msra.gmra.mrb[0].mxu0 %vm454_vm2, %v2381_v4  ;;  %10245 = vmatmul.mubr.msk.bf16.vlgmr.msra.gmra.mrb[0].mxu1 %vm454_vm2, %v2381_v4  ;;  %v13169_v4 = vrot.slane %v3725_v62, %v12626_v10 }
 0x165   : > { %2872 = vmatpush1.bf16.msra.mxu0 %v13095_v8  ;;  %2985 = vmatpush1.bf16.msra.mxu1 %v13099_v9 }
 0x166   : > { %2492 = vmatprep.mubr.bf16.mxu0 %v14630_v6  ;;  %2605 = vmatprep.mubr.bf16.mxu1 %v14630_v6  ;;  %v13187_v10 = vcombine.high %v13169_v4, %v13169_v4 }
 0x167   : > { %10289 = vmatprep.subr.msk.bf16.mxu0 %vm479_vm0, %v13103_v11  ;;  %10298 = vmatprep.subr.msk.bf16.mxu1 %vm479_vm0, %v13107_v12 }
 0x16c   : > { %10237 = vmatmul.mubr.msk.bf16.gmra.mrb[4].mxu0 %vm454_vm2, %v2383_v28  ;;  %10246 = vmatmul.mubr.msk.bf16.gmra.mrb[4].mxu1 %vm454_vm2, %v2383_v28  ;;  %v13175_v28 = vsel %vm479_vm0, %v13086_v2, 0  ;;  %v2803_v2 = vrot.slane %v12247_v22, 2 }
 0x16d   : > { %2502 = vmatprep.mubr.bf16.mxu0 %v14630_v6  ;;  %2615 = vmatprep.mubr.bf16.mxu1 %v14630_v6 }
 0x16e   : > { %v2804_v3 = vsel %vm2378_vm5, %v2801_v0, %v2803_v2  ;;  %v3231_v0 = vshrl.u32 %v12255_v60, 16 }
 0x174   : > { %10238 = vmatmul.mubr.msk.bf16.gmra.mrb[8].mxu0 %vm454_vm2, %v2385_v15  ;;  %10247 = vmatmul.mubr.msk.bf16.gmra.mrb[8].mxu1 %vm454_vm2, %v2385_v15  ;;  %v12248_v15 = vld [vmem:[%s12637_s15 + $0x28] sm:$0xff]  }
 0x175   : > { %2512 = vmatprep.mubr.bf16.mxu0 %v14630_v6  ;;  %2625 = vmatprep.mubr.bf16.mxu1 %v14630_v6  ;;  %v2805_v26 = vrot.slane %v12248_v15, 2  ;;  %v3233_v15 = vrot.slane %v3231_v0, 2 }
 0x177   : > { %v2806_v27 = vsel %vm2378_vm5, %v2803_v2, %v2805_v26 }
 0x17c   : > { %10239 = vmatmul.mubr.msk.bf16.gmra.mrb[12].mxu0 %vm454_vm2, %v2387_v31  ;;  %10248 = vmatmul.mubr.msk.bf16.gmra.mrb[12].mxu1 %vm454_vm2, %v2387_v31  ;;  %v12249_v31 = vld [vmem:[%s12637_s15 + $0x30] sm:$0xff]  }
 0x17d   : > { %2522 = vmatprep.mubr.bf16.mxu0 %v14630_v6  ;;  %2635 = vmatprep.mubr.bf16.mxu1 %v14630_v6  ;;  %v2807_v32 = vrot.slane %v12249_v31, 2 }
 0x17f   : > { %v2808_v42 = vsel %vm2378_vm5, %v2805_v26, %v2807_v32 }
 0x184   : > { %10240 = vmatmul.mubr.msk.bf16.gmra.mrb[16].mxu0 %vm454_vm2, %v2389_v43  ;;  %10249 = vmatmul.mubr.msk.bf16.gmra.mrb[16].mxu1 %vm454_vm2, %v2389_v43  ;;  %v12250_v43 = vld [vmem:[%s12637_s15 + $0x38] sm:$0xff]  }
 0x185   : > { %2532 = vmatprep.mubr.bf16.mxu0 %v14630_v6  ;;  %2645 = vmatprep.mubr.bf16.mxu1 %v14630_v6  ;;  %v2809_v16 = vrot.slane %v12250_v43, 2 }
 0x187   : > { %v2810_v25 = vsel %vm2378_vm5, %v2807_v32, %v2809_v16 }
 0x18c   : > { %10241 = vmatmul.mubr.msk.bf16.gmra.mrb[20].mxu0 %vm454_vm2, %v2391_v52  ;;  %10250 = vmatmul.mubr.msk.bf16.gmra.mrb[20].mxu1 %vm454_vm2, %v2391_v52  ;;  %v12251_v52 = vld [vmem:[%s12637_s15 + $0x40] sm:$0xff]  }
 0x18d   : > { %2542 = vmatprep.mubr.bf16.mxu0 %v14630_v6  ;;  %2655 = vmatprep.mubr.bf16.mxu1 %v14630_v6  ;;  %v2811_v53 = vrot.slane %v12251_v52, 2 }
 0x18f   : > { %v2812_v54 = vsel %vm2378_vm5, %v2809_v16, %v2811_v53 }
 0x194   : > { %10242 = vmatmul.mubr.msk.bf16.gmra.mrb[24].mxu0 %vm454_vm2, %v2393_v55  ;;  %10251 = vmatmul.mubr.msk.bf16.gmra.mrb[24].mxu1 %vm454_vm2, %v2393_v55  ;;  %v12252_v55 = vld [vmem:[%s12637_s15 + $0x48] sm:$0xff]  }
 0x195   : > { %2552 = vmatprep.mubr.bf16.mxu0 %v14630_v6  ;;  %2665 = vmatprep.mubr.bf16.mxu1 %v14630_v6  ;;  %v2813_v56 = vrot.slane %v12252_v55, 2  ;;  %v13251_v55 = vsel %vm479_vm0, %v13169_v4, 0 }
 0x196   : > { %14639 = vst [vmem:[#allocation7_spill] sm:$0xff] %v13251_v55 }
 0x197   : > { %v2814_v58 = vsel %vm2378_vm5, %v2811_v53, %v2813_v56  ;;  %v2816_v22 = vsel %vm2378_vm5, %v2813_v56, %v2815_v61  ;;  %v12258_v53 = vld [vmem:[%s12637_s15 + $0x28] sm:$0xff]   ;;  %v12273_v56 = vld [vmem:[%s14627_s3 + $0x40] sm:$0xff]  }
 0x198   : > { %v3249_v4 = vshrl.u32 %v12258_v53, 16 }
 0x19c   : > { %10243 = vmatmul.mubr.msk.bf16.gmra.mrb[28].mxu0 %vm454_vm2, %v2395_v59  ;;  %10252 = vmatmul.mubr.msk.bf16.gmra.mrb[28].mxu1 %vm454_vm2, %v2395_v59  ;;  %v12254_v59 = vld [vmem:[%s12637_s15 + $0x10] sm:$0xfc]  }
 0x19d   : > { %2903 = vmatprep.mubr.bf16.mxu0 %v14630_v6  ;;  %3016 = vmatprep.mubr.bf16.mxu1 %v14630_v6  ;;  %v3223_v62 = vshrl.u32 %v12254_v59, 16  ;;  %v3226_v63 = vshll.u32 %v12254_v59, 16 }
 0x19f   : > { %v3225_v2 = vrot.slane %v3223_v62, 2  ;;  %v12259_v62 = vld [vmem:[%s12637_s15 + $0x30] sm:$0xff]  }
 0x1a0   : > { %v3258_v0 = vshrl.u32 %v12259_v62, 16 }
 0x1a4   : > { %10263 = vmatmul.mubr.msk.bf16.vlgmr.msra.gmra.mrb[0].mxu0 %vm454_vm2, %v2802_v7  ;;  %10272 = vmatmul.mubr.msk.bf16.vlgmr.msra.gmra.mrb[0].mxu1 %vm454_vm2, %v2802_v7  ;;  %v3234_v7 = vshll.u32 %v12255_v60, 16  ;;  %v3251_v60 = vrot.slane %v3249_v4, 2  ;;  %v12262_v4 = vld [vmem:[%s12637_s15 + $0x48] sm:$0xff]  }
 0x1a5   : > { %3357 = vmatpush1.bf16.msra.mxu0 %v13175_v28  ;;  %3470 = vmatpush1.bf16.msra.mxu1 %v13179_v13 }
 0x1a6   : > { %2913 = vmatprep.mubr.bf16.mxu0 %v14630_v6  ;;  %3026 = vmatprep.mubr.bf16.mxu1 %v14630_v6  ;;  %v3236_v26 = vrot.slane %v3234_v7, 3  ;;  %v3261_v7 = vshll.u32 %v12259_v62, 16 }
 0x1a7   : > { %10316 = vmatprep.subr.msk.bf16.mxu0 %vm479_vm0, %v13183_v14  ;;  %10325 = vmatprep.subr.msk.bf16.mxu1 %vm479_vm0, %v13187_v10 }
 0x1a8   : > { %v3237_v32 = vor.u32 %v3236_v26, %v3233_v15  ;;  %v12260_v15 = vld [vmem:[%s12637_s15 + $0x38] sm:$0xff]  }
 0x1ac   : > { %10264 = vmatmul.mubr.msk.bf16.gmra.mrb[4].mxu0 %vm454_vm2, %v2804_v3  ;;  %10273 = vmatmul.mubr.msk.bf16.gmra.mrb[4].mxu1 %vm454_vm2, %v2804_v3  ;;  %v3228_v3 = vrot.slane %v3226_v63, 3 }
 0x1ad   : > { %2923 = vmatprep.mubr.bf16.mxu0 %v14630_v6  ;;  %3036 = vmatprep.mubr.bf16.mxu1 %v14630_v6 }
 0x1ae   : > { %v3229_v31 = vor.u32 %v3228_v3, %v3225_v2  ;;  %v3260_v2 = vrot.slane %v3258_v0, 2  ;;  %v3263_v3 = vrot.slane %v3261_v7, 3  ;;  %v12263_v0 = vld [vmem:[%s12637_s15 + $0x50] ss:$0 sps:$4 sm:$0x77]  }
 0x1b0   : > { %v3238_v16 = vsel %vm3221_vm6, %v3229_v31, %v3237_v32  ;;  %v3264_v26 = vor.u32 %v3263_v3, %v3260_v2  ;;  %v3270_v31 = vshll.u32 %v12260_v15, 16  ;;  %v3297_v2 = vshll.u32 %v12263_v0, 16 }
 0x1b4   : > { %10265 = vmatmul.mubr.msk.bf16.gmra.mrb[8].mxu0 %vm454_vm2, %v2806_v27  ;;  %10274 = vmatmul.mubr.msk.bf16.gmra.mrb[8].mxu1 %vm454_vm2, %v2806_v27  ;;  %v12257_v27 = vld [vmem:[%s12637_s15 + $0x20] sm:$0xff]  }
 0x1b5   : > { %2933 = vmatprep.mubr.bf16.mxu0 %v14630_v6  ;;  %3046 = vmatprep.mubr.bf16.mxu1 %v14630_v6  ;;  %v3243_v43 = vshll.u32 %v12257_v27, 16 }
 0x1b7   : > { %v3245_v52 = vrot.slane %v3243_v43, 3  ;;  %v3272_v43 = vrot.slane %v3270_v31, 3 }
 0x1bc   : > { %10266 = vmatmul.mubr.msk.bf16.gmra.mrb[12].mxu0 %vm454_vm2, %v2808_v42  ;;  %10275 = vmatmul.mubr.msk.bf16.gmra.mrb[12].mxu1 %vm454_vm2, %v2808_v42  ;;  %v3240_v42 = vshrl.u32 %v12257_v27, 16  ;;  %v3267_v27 = vshrl.u32 %v12260_v15, 16 }
 0x1bd   : > { %2943 = vmatprep.mubr.bf16.mxu0 %v14630_v6  ;;  %3056 = vmatprep.mubr.bf16.mxu1 %v14630_v6 }
 0x1c4   : > { %10267 = vmatmul.mubr.msk.bf16.gmra.mrb[16].mxu0 %vm454_vm2, %v2810_v25  ;;  %10276 = vmatmul.mubr.msk.bf16.gmra.mrb[16].mxu1 %vm454_vm2, %v2810_v25  ;;  %v3242_v25 = vrot.slane %v3240_v42, 2  ;;  %v3269_v42 = vrot.slane %v3267_v27, 2 }
 0x1c5   : > { %2953 = vmatprep.mubr.bf16.mxu0 %v14630_v6  ;;  %3066 = vmatprep.mubr.bf16.mxu1 %v14630_v6 }
 0x1cc   : > { %10268 = vmatmul.mubr.msk.bf16.gmra.mrb[20].mxu0 %vm454_vm2, %v2812_v54  ;;  %10277 = vmatmul.mubr.msk.bf16.gmra.mrb[20].mxu1 %vm454_vm2, %v2812_v54  ;;  %v13247_v54 = vsel %vm479_vm0, %v13166_v1, 0  ;;  %v3246_v1 = vor.u32 %v3245_v52, %v3242_v25  ;;  %v3273_v25 = vor.u32 %v3272_v43, %v3269_v42  ;;  %v12265_v42 = vld [vmem:[%s12637_s15 + $0x18] sm:$0xff]  }
 0x1cd   : > { %2963 = vmatprep.mubr.bf16.mxu0 %v14630_v6  ;;  %3076 = vmatprep.mubr.bf16.mxu1 %v14630_v6 }
 0x1ce   : > { %v3247_v59 = vsel %vm3221_vm6, %v3237_v32, %v3246_v1 }
 0x1d4   : > { %10269 = vmatmul.mubr.msk.bf16.gmra.mrb[24].mxu0 %vm454_vm2, %v2814_v58  ;;  %10278 = vmatmul.mubr.msk.bf16.gmra.mrb[24].mxu1 %vm454_vm2, %v2814_v58  ;;  %v3252_v58 = vshll.u32 %v12258_v53, 16 }
 0x1d5   : > { %2973 = vmatprep.mubr.bf16.mxu0 %v14630_v6  ;;  %3086 = vmatprep.mubr.bf16.mxu1 %v14630_v6 }
 0x1d6   : > { %v3254_v61 = vrot.slane %v3252_v58, 3 }
 0x1d8   : > { %v3255_v63 = vor.u32 %v3254_v61, %v3251_v60  ;;  %v3288_v60 = vshll.u32 %v12262_v4, 16 }
 0x1da   : > { %v3265_v32 = vsel %vm3221_vm6, %v3255_v63, %v3264_v26 }
 0x1dc   : > { %10270 = vmatmul.mubr.msk.bf16.gmra.mrb[28].mxu0 %vm454_vm2, %v2816_v22  ;;  %10279 = vmatmul.mubr.msk.bf16.gmra.mrb[28].mxu1 %vm454_vm2, %v2816_v22  ;;  %v3256_v22 = vsel %vm3221_vm6, %v3246_v1, %v3255_v63  ;;  %v3290_v63 = vrot.slane %v3288_v60, 3  ;;  %v12281_v60 = vld [vmem:[%s14627_s3 + $0x50] sm:$0xff]  }
 0x1dd   : > { %3388 = vmatprep.mubr.bf16.mxu0 %v14630_v6  ;;  %3501 = vmatprep.mubr.bf16.mxu1 %v14630_v6 }
 0x1e4   : > { %10290 = vmatmul.mubr.msk.bf16.vlgmr.msra.gmra.mrb[0].mxu0 %vm454_vm2, %v3238_v16  ;;  %10299 = vmatmul.mubr.msk.bf16.vlgmr.msra.gmra.mrb[0].mxu1 %vm454_vm2, %v3238_v16  ;;  %v12261_v16 = vld [vmem:[%s12637_s15 + $0x40] sm:$0xff]  }
 0x1e5   : > { %3779 = vmatpush1.bf16.msra.mxu0 %v13247_v54  ;;  %3892 = vmatpush1.bf16.msra.mxu1 %v13251_v55  ;;  %v3276_v52 = vshrl.u32 %v12261_v16, 16  ;;  %v3279_v53 = vshll.u32 %v12261_v16, 16  ;;  %v3708_v16 = vrot.slane %v12265_v42, 3  ;;  %v12268_v42 = vld [vmem:[%s12637_s15 + $0x30] sm:$0xff]  }
 0x1e6   : > { %3398 = vmatprep.mubr.bf16.mxu0 %v14630_v6  ;;  %3511 = vmatprep.mubr.bf16.mxu1 %v14630_v6 }
 0x1e7   : > { %10682 = vmatprep.subr.bf16.mxu0 %v12273_v56  ;;  %10746 = vmatprep.subr.bf16.mxu1 %v12275_v57  ;;  %v3274_v56 = vsel %vm3221_vm6, %v3264_v26, %v3273_v25  ;;  %v3278_v57 = vrot.slane %v3276_v52, 2  ;;  %v3281_v1 = vrot.slane %v3279_v53, 3  ;;  %v3299_v26 = vrot.slane %v3297_v2, 3  ;;  %v12266_v52 = vld [vmem:[%s12637_s15 + $0x20] sm:$0xff]   ;;  %v12287_v2 = vld [vmem:[%s14627_s3 + $0xd8] sm:$0xff]  }
 0x1e8   : > { %v12274_v53 = vld [vmem:[%s14627_s3] sm:$0xff]  }
 0x1e9   : > { %v3282_v58 = vor.u32 %v3281_v1, %v3278_v57  ;;  %v12277_v57 = vld [vmem:[%s14627_s3 + $0x48] sm:$0xff]  }
 0x1ea   : > { %v12279_v1 = vld [vmem:[%s14627_s3 + $0xc8] sm:$0xff]  }
 0x1eb   : > { %v3283_v61 = vsel %vm3221_vm6, %v3273_v25, %v3282_v58 }
 0x1ec   : > { %10291 = vmatmul.mubr.msk.bf16.gmra.mrb[4].mxu0 %vm454_vm2, %v3247_v59  ;;  %10300 = vmatmul.mubr.msk.bf16.gmra.mrb[4].mxu1 %vm454_vm2, %v3247_v59  ;;  %v3285_v59 = vshrl.u32 %v12262_v4, 16  ;;  %v3710_v4 = vrot.slane %v12266_v52, 3  ;;  %v12295_v52 = vld [vmem:[%s14627_s3 + $0xe8] sm:$0xff]  }
 0x1ed   : > { %3408 = vmatprep.mubr.bf16.mxu0 %v14630_v6  ;;  %3521 = vmatprep.mubr.bf16.mxu1 %v14630_v6 }
 0x1ee   : > { %v3287_v62 = vrot.slane %v3285_v59, 2  ;;  %v12280_v59 = vld [vmem:[%s14627_s3 + $0x88] sm:$0xff]  }
 0x1f0   : > { %v3291_v7 = vor.u32 %v3290_v63, %v3287_v62  ;;  %v3711_v62 = vsel %vm3706_vm7, %v3708_v16, %v3710_v4  ;;  %v12267_v63 = vld [vmem:[%s12637_s15 + $0x28] sm:$0xff]  }
 0x1f2   : > { %v3292_v3 = vsel %vm3221_vm6, %v3282_v58, %v3291_v7  ;;  %v12278_v58 = vld [vmem:[%s14627_s3 + $0x8] sm:$0xff]  }
 0x1f4   : > { %10292 = vmatmul.mubr.msk.bf16.gmra.mrb[8].mxu0 %vm454_vm2, %v3256_v22  ;;  %10301 = vmatmul.mubr.msk.bf16.gmra.mrb[8].mxu1 %vm454_vm2, %v3256_v22  ;;  %v3294_v22 = vshrl.u32 %v12263_v0, 16  ;;  %v12282_v0 = vld [vmem:[%s14627_s3 + $0x10] sm:$0xff]  }
 0x1f5   : > { %3418 = vmatprep.mubr.bf16.mxu0 %v14630_v6  ;;  %3531 = vmatprep.mubr.bf16.mxu1 %v14630_v6 }
 0x1f6   : > { %v3296_v15 = vrot.slane %v3294_v22, 2  ;;  %v12285_v22 = vld [vmem:[%s14627_s3 + $0x58] sm:$0xff]  }
 0x1f8   : > { %v3300_v27 = vor.u32 %v3299_v26, %v3296_v15  ;;  %v12286_v15 = vld [vmem:[%s14627_s3 + $0x18] sm:$0xff]  }
 0x1f9   : > { %v12288_v26 = vld [vmem:[%s14627_s3 + $0x98] sm:$0xff]  }
 0x1fa   : > { %v3301_v31 = vsel %vm3221_vm6, %v3291_v7, %v3300_v27  ;;  %v12284_v7 = vld [vmem:[%s14627_s3 + $0x90] sm:$0xff]   ;;  %v12289_v27 = vld [vmem:[%s14627_s3 + $0x60] sm:$0xff]  }
 0x1fc   : > { %10293 = vmatmul.mubr.msk.bf16.gmra.mrb[12].mxu0 %vm454_vm2, %v3265_v32  ;;  %10302 = vmatmul.mubr.msk.bf16.gmra.mrb[12].mxu1 %vm454_vm2, %v3265_v32  ;;  %v12264_v32 = vld [vmem:[%s12637_s15 + $0x10] sm:$0xf8]  }
 0x1fd   : > { %3428 = vmatprep.mubr.bf16.mxu0 %v14630_v6  ;;  %3541 = vmatprep.mubr.bf16.mxu1 %v14630_v6  ;;  %v3707_v43 = vrot.slane %v12264_v32, 3 }
 0x1ff   : > { %v3709_v25 = vsel %vm3706_vm7, %v3707_v43, %v3708_v16  ;;  %v12290_v43 = vld [vmem:[%s14627_s3 + $0x20] sm:$0xff]  }
 0x200   : > { %v12292_v16 = vld [vmem:[%s14627_s3 + $0xa0] sm:$0xff]  }
 0x204   : > { %10294 = vmatmul.mubr.msk.bf16.gmra.mrb[16].mxu0 %vm454_vm2, %v3274_v56  ;;  %10303 = vmatmul.mubr.msk.bf16.gmra.mrb[16].mxu1 %vm454_vm2, %v3274_v56  ;;  %v12276_v56 = vld [vmem:[%s14627_s3 + $0x80] sm:$0xff]  }
 0x205   : > { %3438 = vmatprep.mubr.bf16.mxu0 %v14630_v6  ;;  %3551 = vmatprep.mubr.bf16.mxu1 %v14630_v6 }
 0x20c   : > { %10295 = vmatmul.mubr.msk.bf16.gmra.mrb[20].mxu0 %vm454_vm2, %v3283_v61  ;;  %10304 = vmatmul.mubr.msk.bf16.gmra.mrb[20].mxu1 %vm454_vm2, %v3283_v61  ;;  %v12283_v61 = vld [vmem:[%s14627_s3 + $0xd0] sm:$0xff]  }
 0x20d   : > { %3448 = vmatprep.mubr.bf16.mxu0 %v14630_v6  ;;  %3561 = vmatprep.mubr.bf16.mxu1 %v14630_v6 }
 0x214   : > { %10296 = vmatmul.mubr.msk.bf16.gmra.mrb[24].mxu0 %vm454_vm2, %v3292_v3  ;;  %10305 = vmatmul.mubr.msk.bf16.gmra.mrb[24].mxu1 %vm454_vm2, %v3292_v3  ;;  %v3712_v3 = vrot.slane %v12267_v63, 3 }
 0x215   : > { %3458 = vmatprep.mubr.bf16.mxu0 %v14630_v6  ;;  %3571 = vmatprep.mubr.bf16.mxu1 %v14630_v6 }
 0x216   : > { %v3713_v32 = vsel %vm3706_vm7, %v3710_v4, %v3712_v3  ;;  %v12299_v4 = vld [vmem:[%s14627_s3 + $0xf0] sm:$0xff]  }
 0x21c   : > { %10297 = vmatmul.mubr.msk.bf16.gmra.mrb[28].mxu0 %vm454_vm2, %v3301_v31  ;;  %10306 = vmatmul.mubr.msk.bf16.gmra.mrb[28].mxu1 %vm454_vm2, %v3301_v31  ;;  %v12291_v31 = vld [vmem:[%s14627_s3 + $0xe0] sm:$0xff]  }
 0x21d   : > { %3810 = vmatprep.mubr.bf16.mxu0 %v14630_v6  ;;  %3923 = vmatprep.mubr.bf16.mxu1 %v14630_v6 }
 0x224   : > { %10317 = vmatmul.mubr.msk.bf16.vlgmr.msra.gmra.mrb[0].mxu0 %vm454_vm2, %v3709_v25  ;;  %10326 = vmatmul.mubr.msk.bf16.vlgmr.msra.gmra.mrb[0].mxu1 %vm454_vm2, %v3709_v25  ;;  %v12293_v25 = vld [vmem:[%s14627_s3 + $0x68] sm:$0xff]  }
 0x225   : > { %3820 = vmatprep.mubr.bf16.mxu0 %v14630_v6  ;;  %3933 = vmatprep.mubr.bf16.mxu1 %v14630_v6 }
 0x226   : > { %10683 = vmatpush3.bf16.msra.mxu0 %v12274_v53  ;;  %10747 = vmatpush3.bf16.msra.mxu1 %v12276_v56  ;;  %v3714_v53 = vrot.slane %v12268_v42, 3  ;;  %v12294_v56 = vld [vmem:[%s14627_s3 + $0x28] sm:$0xff]   ;;  %v12303_v42 = vld [vmem:[%s14627_s3 + $0xf8] sm:$0xff]  }
 0x227   : > { %10684 = vmatprep.subr.bf16.mxu0 %v12277_v57  ;;  %10748 = vmatprep.subr.bf16.mxu1 %v12279_v1  ;;  %v12296_v57 = vld [vmem:[%s14627_s3 + $0xa8] sm:$0xff]   ;;  %v12297_v1 = vld [vmem:[%s14627_s3 + $0x70] sm:$0xff]  }
 0x22a   : > { %10685 = vmatpush3.bf16.msra.mxu0 %v12278_v58  ;;  %10749 = vmatpush3.bf16.msra.mxu1 %v12280_v59  ;;  %v3715_v58 = vsel %vm3706_vm7, %v3712_v3, %v3714_v53  ;;  %v12269_v59 = vld [vmem:[%s12637_s15 + $0x38] sm:$0xff]  }
 0x22b   : > { %10686 = vmatprep.subr.bf16.mxu0 %v12281_v60  ;;  %10750 = vmatprep.subr.bf16.mxu1 %v12283_v61  ;;  %v12298_v60 = vld [vmem:[%s14627_s3 + $0x30] sm:$0xff]  }
 0x22c   : > { %10318 = vmatmul.mubr.msk.bf16.gmra.mrb[4].mxu0 %vm454_vm2, %v3711_v62  ;;  %10327 = vmatmul.mubr.msk.bf16.gmra.mrb[4].mxu1 %vm454_vm2, %v3711_v62  ;;  %v12300_v61 = vld [vmem:[%s14627_s3 + $0xb0] sm:$0xff]   ;;  %v3716_v62 = vrot.slane %v12269_v59, 3 }
 0x22d   : > { %3830 = vmatprep.mubr.bf16.mxu0 %v14630_v6  ;;  %3943 = vmatprep.mubr.bf16.mxu1 %v14630_v6 }
 0x22e   : > { %10687 = vmatpush3.bf16.msra.mxu0 %v12282_v0  ;;  %10751 = vmatpush3.bf16.msra.mxu1 %v12284_v7  ;;  %v3717_v63 = vsel %vm3706_vm7, %v3714_v53, %v3716_v62  ;;  %v12270_v0 = vld [vmem:[%s12637_s15 + $0x40] sm:$0xff]  }
 0x22f   : > { %10688 = vmatprep.subr.bf16.mxu0 %v12285_v22  ;;  %10752 = vmatprep.subr.bf16.mxu1 %v12287_v2  ;;  %v3718_v7 = vrot.slane %v12270_v0, 3  ;;  %v12271_v2 = vld [vmem:[%s12637_s15 + $0x48] sm:$0xff]   ;;  %v241_v53 = vld [vmem:[%s14626_s2] sm:$0xf] }
 0x230   : > { %v3720_v3 = vrot.slane %v12271_v2, 3 }
 0x231   : > { %v3719_v22 = vsel %vm3706_vm7, %v3716_v62, %v3718_v7 }
 0x232   : > { %10689 = vmatpush3.bf16.msra.mxu0 %v12286_v15  ;;  %10753 = vmatpush3.bf16.msra.mxu1 %v12288_v26  ;;  %v3721_v15 = vsel %vm3706_vm7, %v3718_v7, %v3720_v3  ;;  %v12272_v26 = vld [vmem:[%s12637_s15 + $0x50] ss:$0 sps:$4 sm:$0x77]  }
 0x233   : > { %10690 = vmatprep.subr.bf16.mxu0 %v12289_v27  ;;  %10754 = vmatprep.subr.bf16.mxu1 %v12291_v31  ;;  %v3722_v27 = vrot.slane %v12272_v26, 3 }
 0x234   : > { %10319 = vmatmul.mubr.msk.bf16.gmra.mrb[8].mxu0 %vm454_vm2, %v3713_v32  ;;  %10328 = vmatmul.mubr.msk.bf16.gmra.mrb[8].mxu1 %vm454_vm2, %v3713_v32  ;;  %v12301_v32 = vld [vmem:[%s14627_s3 + $0x78] sm:$0xff]  }
 0x235   : > { %3840 = vmatprep.mubr.bf16.mxu0 %v14630_v6  ;;  %3953 = vmatprep.mubr.bf16.mxu1 %v14630_v6  ;;  %v3723_v31 = vsel %vm3706_vm7, %v3720_v3, %v3722_v27 }
 0x236   : > { %10691 = vmatpush3.bf16.msra.mxu0 %v12290_v43  ;;  %10755 = vmatpush3.bf16.msra.mxu1 %v12292_v16  ;;  %v12302_v43 = vld [vmem:[%s14627_s3 + $0x38] sm:$0xff]  }
 0x237   : > { %10692 = vmatprep.subr.bf16.mxu0 %v12293_v25  ;;  %10756 = vmatprep.subr.bf16.mxu1 %v12295_v52  ;;  %v12304_v16 = vld [vmem:[%s14627_s3 + $0xb8] sm:$0xff]   ;;  %v4071_v25 = vsub.s32 0, %v12620_v5  ;;  %v4079_v52 = vsub.s32 2, %v12620_v5 }
 0x23a   : > { %10693 = vmatpush3.bf16.msra.mxu0 %v12294_v56  ;;  %10757 = vmatpush3.bf16.msra.mxu1 %v12296_v57  ;;  %v4075_v56 = vsub.s32 1, %v12620_v5  ;;  %v4083_v57 = vsub.s32 3, %v12620_v5 }
 0x23b   : > { %10694 = vmatprep.subr.bf16.mxu0 %v12297_v1  ;;  %10758 = vmatprep.subr.bf16.mxu1 %v12299_v4  ;;  %v13453_v1 = vrot.slane %v241_v53, %v4071_v25  ;;  %v13455_v4 = vrot.slane %v241_v53, %v4079_v52 }
 0x23c   : > { %10320 = vmatmul.mubr.msk.bf16.gmra.mrb[12].mxu0 %vm454_vm2, %v3715_v58  ;;  %10329 = vmatmul.mubr.msk.bf16.gmra.mrb[12].mxu1 %vm454_vm2, %v3715_v58  ;;  %v13457_v58 = vrot.slane %v241_v53, %v4075_v56  ;;  %v13459_v59 = vrot.slane %v241_v53, %v4083_v57 }
 0x23d   : > { %3850 = vmatprep.mubr.bf16.mxu0 %v14630_v6  ;;  %3963 = vmatprep.mubr.bf16.mxu1 %v14630_v6 }
 0x23e   : > { %10695 = vmatpush3.bf16.msra.mxu0 %v12298_v60  ;;  %10759 = vmatpush3.bf16.msra.mxu1 %v12300_v61 }
 0x23f   : > { %10696 = vmatprep.subr.bf16.mxu0 %v12301_v32  ;;  %10760 = vmatprep.subr.bf16.mxu1 %v12303_v42 }
 0x242   : > { %10697 = vmatpush3.bf16.msra.mxu0 %v12302_v43  ;;  %10761 = vmatpush3.bf16.msra.mxu1 %v12304_v16 }
 0x243   : > { %10376 = vmatprep.subr.msk.bf16.mxu0 %vm479_vm0, %v12640_v17  ;;  %10385 = vmatprep.subr.msk.bf16.mxu1 %vm479_vm0, %v12645_v19 }
 0x244   : > { %10321 = vmatmul.mubr.msk.bf16.gmra.mrb[16].mxu0 %vm454_vm2, %v3717_v63  ;;  %10330 = vmatmul.mubr.msk.bf16.gmra.mrb[16].mxu1 %vm454_vm2, %v3717_v63 }
 0x245   : > { %3860 = vmatprep.mubr.bf16.mxu0 %v14630_v6  ;;  %3973 = vmatprep.mubr.bf16.mxu1 %v14630_v6 }
 0x24c   : > { %10322 = vmatmul.mubr.msk.bf16.gmra.mrb[20].mxu0 %vm454_vm2, %v3719_v22  ;;  %10331 = vmatmul.mubr.msk.bf16.gmra.mrb[20].mxu1 %vm454_vm2, %v3719_v22 }
 0x24d   : > { %3870 = vmatprep.mubr.bf16.mxu0 %v14630_v6  ;;  %3983 = vmatprep.mubr.bf16.mxu1 %v14630_v6 }
 0x254   : > { %10323 = vmatmul.mubr.msk.bf16.gmra.mrb[24].mxu0 %vm454_vm2, %v3721_v15  ;;  %10332 = vmatmul.mubr.msk.bf16.gmra.mrb[24].mxu1 %vm454_vm2, %v3721_v15 }
 0x255   : > { %3880 = vmatprep.mubr.bf16.mxu0 %v14630_v6  ;;  %3993 = vmatprep.mubr.bf16.mxu1 %v14630_v6 }
 0x25c   : > { %10324 = vmatmul.mubr.msk.bf16.gmra.mrb[28].mxu0 %vm454_vm2, %v3723_v31  ;;  %10333 = vmatmul.mubr.msk.bf16.gmra.mrb[28].mxu1 %vm454_vm2, %v3723_v31 }
 0x2f7   : > { %v3812_v60 = vpop.f32.mrb[0].mxu0  ;;  %v3925_v61 = vpop.f32.mrb[0].mxu1 }
 0x2f8   : > { %v4089_v62 = vadd.f32 %v13453_v1, %v3812_v60  ;;  %v4091_v63 = vadd.f32 %v13455_v4, %v3925_v61  ;;  %v3814_v0 = vpop.f32.mrb[1].mxu0  ;;  %v3927_v7 = vpop.f32.mrb[1].mxu1 }
 0x2f9   : > { %v4090_v22 = vadd.f32 %v13457_v58, %v3814_v0  ;;  %v4092_v5 = vadd.f32 %v13459_v59, %v3927_v7  ;;  %v3816_v2 = vpop.f32.mrb[2].mxu0  ;;  %v3929_v3 = vpop.f32.mrb[2].mxu1 }
 0x2fa   : > { %v4093_v15 = vadd.f32 %v13453_v1, %v3816_v2  ;;  %v4095_v26 = vadd.f32 %v13455_v4, %v3929_v3  ;;  %v3818_v27 = vpop.f32.mrb[3].mxu0  ;;  %v3931_v31 = vpop.f32.mrb[3].mxu1  ;;  %v4153_v43 = vmax.f32 %v4089_v62, 0.0  ;;  %v4155_v16 = vmax.f32 %v4091_v63, 0.0 }
 0x2fb   : > { %v4094_v32 = vadd.f32 %v13457_v58, %v3818_v27  ;;  %v4096_v42 = vadd.f32 %v13459_v59, %v3931_v31  ;;  %v4154_v53 = vmax.f32 %v4090_v22, 0.0  ;;  %v4156_v56 = vmax.f32 %v4092_v5, 0.0 }
 0x2fc   : > { %v4157_v25 = vmax.f32 %v4093_v15, 0.0  ;;  %v4159_v52 = vmax.f32 %v4095_v26, 0.0 }
 0x2fd   : > { %v4158_v57 = vmax.f32 %v4094_v32, 0.0  ;;  %v4160_v60 = vmax.f32 %v4096_v42, 0.0 }
 0x2fe   : > { %v4217_v61 = vpack.c.bf16 %v4157_v25, %v4153_v43  ;;  %v4219_v0 = vpack.c.bf16 %v4159_v52, %v4155_v16 }
 0x2ff   : > { %v4218_v7 = vpack.c.bf16 %v4158_v57, %v4154_v53  ;;  %v4220_v2 = vpack.c.bf16 %v4160_v60, %v4156_v56  ;;  %v3822_v6 = vpop.f32.mrb[4].mxu0  ;;  %v3935_v3 = vpop.f32.mrb[4].mxu1 }
 0x300   : > { %v4097_v19 = vadd.f32 %v13453_v1, %v3822_v6  ;;  %v4099_v27 = vadd.f32 %v13455_v4, %v3935_v3  ;;  %v3824_v17 = vpop.f32.mrb[5].mxu0  ;;  %v3937_v31 = vpop.f32.mrb[5].mxu1 }
 0x301   : > { %v4098_v62 = vadd.f32 %v13457_v58, %v3824_v17  ;;  %v4100_v63 = vadd.f32 %v13459_v59, %v3937_v31  ;;  %v3826_v22 = vpop.f32.mrb[6].mxu0  ;;  %v3939_v5 = vpop.f32.mrb[6].mxu1  ;;  %4479 = vmatprep.mubr.bf16.mxu0 %v4218_v7  ;;  %4576 = vmatprep.mubr.bf16.mxu1 %v4220_v2 }
 0x302   : > { %v4101_v15 = vadd.f32 %v13453_v1, %v3826_v22  ;;  %v4103_v26 = vadd.f32 %v13455_v4, %v3939_v5  ;;  %v3828_v32 = vpop.f32.mrb[7].mxu0  ;;  %v3941_v42 = vpop.f32.mrb[7].mxu1  ;;  %4480 = vmatmul.mubr.bf16.vlgmr.msra.gmra.mrb[32].mxu0 %v4217_v61  ;;  %4577 = vmatmul.mubr.bf16.vlgmr.msra.gmra.mrb[32].mxu1 %v4219_v0  ;;  %v4161_v17 = vmax.f32 %v4097_v19, 0.0  ;;  %v4163_v16 = vmax.f32 %v4099_v27, 0.0 }
 0x303   : > { %v4102_v6 = vadd.f32 %v13457_v58, %v3828_v32  ;;  %v4104_v43 = vadd.f32 %v13459_v59, %v3941_v42  ;;  %4810 = vmatpush1.bf16.msra.mxu0 %v12643_v18  ;;  %4923 = vmatpush1.bf16.msra.mxu1 %v12648_v20  ;;  %v4162_v53 = vmax.f32 %v4098_v62, 0.0  ;;  %v4164_v56 = vmax.f32 %v4100_v63, 0.0 }
 0x304   : > { %v4165_v25 = vmax.f32 %v4101_v15, 0.0  ;;  %v4167_v52 = vmax.f32 %v4103_v26, 0.0  ;;  %10394 = vmatprep.subr.msk.bf16.mxu0 %vm479_vm0, %v12656_v23  ;;  %10403 = vmatprep.subr.msk.bf16.mxu1 %vm479_vm0, %v12658_v24 }
 0x305   : > { %v4166_v57 = vmax.f32 %v4102_v6, 0.0  ;;  %v4168_v60 = vmax.f32 %v4104_v43, 0.0 }
 0x306   : > { %v4221_v61 = vpack.c.bf16 %v4165_v25, %v4161_v17  ;;  %v4223_v0 = vpack.c.bf16 %v4167_v52, %v4163_v16 }
 0x307   : > { %v4222_v7 = vpack.c.bf16 %v4166_v57, %v4162_v53  ;;  %v4224_v2 = vpack.c.bf16 %v4168_v60, %v4164_v56  ;;  %v3832_v3 = vpop.f32.mrb[8].mxu0  ;;  %v3945_v31 = vpop.f32.mrb[8].mxu1 }
 0x308   : > { %v4105_v19 = vadd.f32 %v13453_v1, %v3832_v3  ;;  %v4107_v27 = vadd.f32 %v13455_v4, %v3945_v31  ;;  %v3834_v22 = vpop.f32.mrb[9].mxu0  ;;  %v3947_v5 = vpop.f32.mrb[9].mxu1 }
 0x309   : > { %v4106_v15 = vadd.f32 %v13457_v58, %v3834_v22  ;;  %v4108_v26 = vadd.f32 %v13459_v59, %v3947_v5  ;;  %v3836_v62 = vpop.f32.mrb[10].mxu0  ;;  %v3949_v63 = vpop.f32.mrb[10].mxu1  ;;  %4487 = vmatprep.mubr.bf16.mxu0 %v4222_v7  ;;  %4584 = vmatprep.mubr.bf16.mxu1 %v4224_v2 }
 0x30a   : > { %v4109_v32 = vadd.f32 %v13453_v1, %v3836_v62  ;;  %v4111_v42 = vadd.f32 %v13455_v4, %v3949_v63  ;;  %v3838_v6 = vpop.f32.mrb[11].mxu0  ;;  %v3951_v43 = vpop.f32.mrb[11].mxu1  ;;  %4488 = vmatmul.mubr.bf16.gmra.mrb[36].mxu0 %v4221_v61  ;;  %4585 = vmatmul.mubr.bf16.gmra.mrb[36].mxu1 %v4223_v0  ;;  %v4169_v25 = vmax.f32 %v4105_v19, 0.0  ;;  %v4171_v52 = vmax.f32 %v4107_v27, 0.0 }
 0x30b   : > { %v4110_v17 = vadd.f32 %v13457_v58, %v3838_v6  ;;  %v4112_v16 = vadd.f32 %v13459_v59, %v3951_v43  ;;  %v4170_v57 = vmax.f32 %v4106_v15, 0.0  ;;  %v4172_v60 = vmax.f32 %v4108_v26, 0.0 }
 0x30c   : > { %v4173_v53 = vmax.f32 %v4109_v32, 0.0  ;;  %v4175_v56 = vmax.f32 %v4111_v42, 0.0 }
 0x30d   : > { %v4174_v7 = vmax.f32 %v4110_v17, 0.0  ;;  %v4176_v2 = vmax.f32 %v4112_v16, 0.0 }
 0x30e   : > { %v4225_v3 = vpack.c.bf16 %v4173_v53, %v4169_v25  ;;  %v4227_v31 = vpack.c.bf16 %v4175_v56, %v4171_v52 }
 0x30f   : > { %v4226_v22 = vpack.c.bf16 %v4174_v7, %v4170_v57  ;;  %v4228_v5 = vpack.c.bf16 %v4176_v2, %v4172_v60  ;;  %v3842_v62 = vpop.f32.mrb[12].mxu0  ;;  %v3955_v63 = vpop.f32.mrb[12].mxu1 }
 0x310   : > { %v4113_v61 = vadd.f32 %v13453_v1, %v3842_v62  ;;  %v4115_v0 = vadd.f32 %v13455_v4, %v3955_v63  ;;  %v3844_v6 = vpop.f32.mrb[13].mxu0  ;;  %v3957_v43 = vpop.f32.mrb[13].mxu1 }
 0x311   : > { %v4114_v19 = vadd.f32 %v13457_v58, %v3844_v6  ;;  %v4116_v27 = vadd.f32 %v13459_v59, %v3957_v43  ;;  %v3846_v15 = vpop.f32.mrb[14].mxu0  ;;  %v3959_v26 = vpop.f32.mrb[14].mxu1  ;;  %4495 = vmatprep.mubr.bf16.mxu0 %v4226_v22  ;;  %4592 = vmatprep.mubr.bf16.mxu1 %v4228_v5 }
 0x312   : > { %v4117_v32 = vadd.f32 %v13453_v1, %v3846_v15  ;;  %v4119_v42 = vadd.f32 %v13455_v4, %v3959_v26  ;;  %v3848_v17 = vpop.f32.mrb[15].mxu0  ;;  %v3961_v16 = vpop.f32.mrb[15].mxu1  ;;  %4496 = vmatmul.mubr.bf16.gmra.mrb[40].mxu0 %v4225_v3  ;;  %4593 = vmatmul.mubr.bf16.gmra.mrb[40].mxu1 %v4227_v31  ;;  %v4177_v53 = vmax.f32 %v4113_v61, 0.0  ;;  %v4179_v56 = vmax.f32 %v4115_v0, 0.0 }
 0x313   : > { %v4118_v25 = vadd.f32 %v13457_v58, %v3848_v17  ;;  %v4120_v52 = vadd.f32 %v13459_v59, %v3961_v16  ;;  %v4178_v7 = vmax.f32 %v4114_v19, 0.0  ;;  %v4180_v2 = vmax.f32 %v4116_v27, 0.0 }
 0x314   : > { %v4181_v57 = vmax.f32 %v4117_v32, 0.0  ;;  %v4183_v60 = vmax.f32 %v4119_v42, 0.0 }
 0x315   : > { %v4182_v22 = vmax.f32 %v4118_v25, 0.0  ;;  %v4184_v5 = vmax.f32 %v4120_v52, 0.0 }
 0x316   : > { %v4229_v62 = vpack.c.bf16 %v4181_v57, %v4177_v53  ;;  %v4231_v63 = vpack.c.bf16 %v4183_v60, %v4179_v56 }
 0x317   : > { %v4230_v6 = vpack.c.bf16 %v4182_v22, %v4178_v7  ;;  %v4232_v43 = vpack.c.bf16 %v4184_v5, %v4180_v2  ;;  %v3852_v15 = vpop.f32.mrb[16].mxu0  ;;  %v3965_v26 = vpop.f32.mrb[16].mxu1 }
 0x318   : > { %v4121_v3 = vadd.f32 %v13453_v1, %v3852_v15  ;;  %v4123_v31 = vadd.f32 %v13455_v4, %v3965_v26  ;;  %v3854_v17 = vpop.f32.mrb[17].mxu0  ;;  %v3967_v16 = vpop.f32.mrb[17].mxu1 }
 0x319   : > { %v4122_v61 = vadd.f32 %v13457_v58, %v3854_v17  ;;  %v4124_v0 = vadd.f32 %v13459_v59, %v3967_v16  ;;  %v3856_v19 = vpop.f32.mrb[18].mxu0  ;;  %v3969_v27 = vpop.f32.mrb[18].mxu1  ;;  %4503 = vmatprep.mubr.bf16.mxu0 %v4230_v6  ;;  %4600 = vmatprep.mubr.bf16.mxu1 %v4232_v43 }
 0x31a   : > { %v4125_v32 = vadd.f32 %v13453_v1, %v3856_v19  ;;  %v4127_v42 = vadd.f32 %v13455_v4, %v3969_v27  ;;  %v3858_v25 = vpop.f32.mrb[19].mxu0  ;;  %v3971_v52 = vpop.f32.mrb[19].mxu1  ;;  %4504 = vmatmul.mubr.bf16.gmra.mrb[44].mxu0 %v4229_v62  ;;  %4601 = vmatmul.mubr.bf16.gmra.mrb[44].mxu1 %v4231_v63  ;;  %v4185_v57 = vmax.f32 %v4121_v3, 0.0  ;;  %v4187_v60 = vmax.f32 %v4123_v31, 0.0 }
 0x31b   : > { %v4126_v53 = vadd.f32 %v13457_v58, %v3858_v25  ;;  %v4128_v56 = vadd.f32 %v13459_v59, %v3971_v52  ;;  %v4186_v22 = vmax.f32 %v4122_v61, 0.0  ;;  %v4188_v5 = vmax.f32 %v4124_v0, 0.0 }
 0x31c   : > { %v4189_v7 = vmax.f32 %v4125_v32, 0.0  ;;  %v4191_v2 = vmax.f32 %v4127_v42, 0.0 }
 0x31d   : > { %v4190_v6 = vmax.f32 %v4126_v53, 0.0  ;;  %v4192_v43 = vmax.f32 %v4128_v56, 0.0 }
 0x31e   : > { %v4233_v15 = vpack.c.bf16 %v4189_v7, %v4185_v57  ;;  %v4235_v26 = vpack.c.bf16 %v4191_v2, %v4187_v60 }
 0x31f   : > { %v4234_v17 = vpack.c.bf16 %v4190_v6, %v4186_v22  ;;  %v4236_v16 = vpack.c.bf16 %v4192_v43, %v4188_v5  ;;  %v3862_v19 = vpop.f32.mrb[20].mxu0  ;;  %v3975_v27 = vpop.f32.mrb[20].mxu1 }
 0x320   : > { %v4129_v62 = vadd.f32 %v13453_v1, %v3862_v19  ;;  %v4131_v63 = vadd.f32 %v13455_v4, %v3975_v27  ;;  %v3864_v25 = vpop.f32.mrb[21].mxu0  ;;  %v3977_v52 = vpop.f32.mrb[21].mxu1 }
 0x321   : > { %v4130_v3 = vadd.f32 %v13457_v58, %v3864_v25  ;;  %v4132_v31 = vadd.f32 %v13459_v59, %v3977_v52  ;;  %v3866_v61 = vpop.f32.mrb[22].mxu0  ;;  %v3979_v0 = vpop.f32.mrb[22].mxu1  ;;  %4511 = vmatprep.mubr.bf16.mxu0 %v4234_v17  ;;  %4608 = vmatprep.mubr.bf16.mxu1 %v4236_v16 }
 0x322   : > { %v4133_v32 = vadd.f32 %v13453_v1, %v3866_v61  ;;  %v4135_v42 = vadd.f32 %v13455_v4, %v3979_v0  ;;  %v3868_v53 = vpop.f32.mrb[23].mxu0  ;;  %v3981_v56 = vpop.f32.mrb[23].mxu1  ;;  %4512 = vmatmul.mubr.bf16.gmra.mrb[48].mxu0 %v4233_v15  ;;  %4609 = vmatmul.mubr.bf16.gmra.mrb[48].mxu1 %v4235_v26  ;;  %v4193_v7 = vmax.f32 %v4129_v62, 0.0  ;;  %v4195_v2 = vmax.f32 %v4131_v63, 0.0 }
 0x323   : > { %v4134_v57 = vadd.f32 %v13457_v58, %v3868_v53  ;;  %v4136_v60 = vadd.f32 %v13459_v59, %v3981_v56  ;;  %v4194_v6 = vmax.f32 %v4130_v3, 0.0  ;;  %v4196_v43 = vmax.f32 %v4132_v31, 0.0 }
 0x324   : > { %v4197_v22 = vmax.f32 %v4133_v32, 0.0  ;;  %v4199_v5 = vmax.f32 %v4135_v42, 0.0 }
 0x325   : > { %v4198_v17 = vmax.f32 %v4134_v57, 0.0  ;;  %v4200_v16 = vmax.f32 %v4136_v60, 0.0 }
 0x326   : > { %v4237_v19 = vpack.c.bf16 %v4197_v22, %v4193_v7  ;;  %v4239_v27 = vpack.c.bf16 %v4199_v5, %v4195_v2 }
 0x327   : > { %v4238_v25 = vpack.c.bf16 %v4198_v17, %v4194_v6  ;;  %v4240_v52 = vpack.c.bf16 %v4200_v16, %v4196_v43  ;;  %v3872_v61 = vpop.f32.mrb[24].mxu0  ;;  %v3985_v0 = vpop.f32.mrb[24].mxu1 }
 0x328   : > { %v4137_v15 = vadd.f32 %v13453_v1, %v3872_v61  ;;  %v4139_v26 = vadd.f32 %v13455_v4, %v3985_v0  ;;  %v3874_v53 = vpop.f32.mrb[25].mxu0  ;;  %v3987_v56 = vpop.f32.mrb[25].mxu1 }
 0x329   : > { %v4138_v62 = vadd.f32 %v13457_v58, %v3874_v53  ;;  %v4140_v63 = vadd.f32 %v13459_v59, %v3987_v56  ;;  %v3876_v3 = vpop.f32.mrb[26].mxu0  ;;  %v3989_v31 = vpop.f32.mrb[26].mxu1  ;;  %4519 = vmatprep.mubr.bf16.mxu0 %v4238_v25  ;;  %4616 = vmatprep.mubr.bf16.mxu1 %v4240_v52 }
 0x32a   : > { %v4141_v32 = vadd.f32 %v13453_v1, %v3876_v3  ;;  %v4143_v42 = vadd.f32 %v13455_v4, %v3989_v31  ;;  %v3878_v57 = vpop.f32.mrb[27].mxu0  ;;  %v3991_v60 = vpop.f32.mrb[27].mxu1  ;;  %4520 = vmatmul.mubr.bf16.gmra.mrb[52].mxu0 %v4237_v19  ;;  %4617 = vmatmul.mubr.bf16.gmra.mrb[52].mxu1 %v4239_v27  ;;  %v4201_v22 = vmax.f32 %v4137_v15, 0.0  ;;  %v4203_v5 = vmax.f32 %v4139_v26, 0.0  ;;  %v13524_v27 = vld [vmem:[%s12637_s15 + $0x40] sm:$0xff]  }
 0x32b   : > { %v4142_v7 = vadd.f32 %v13457_v58, %v3878_v57  ;;  %v4144_v2 = vadd.f32 %v13459_v59, %v3991_v60  ;;  %v4202_v17 = vmax.f32 %v4138_v62, 0.0  ;;  %v4204_v16 = vmax.f32 %v4140_v63, 0.0 }
 0x32c   : > { %v4205_v6 = vmax.f32 %v4141_v32, 0.0  ;;  %v4207_v43 = vmax.f32 %v4143_v42, 0.0 }
 0x32d   : > { %v4206_v25 = vmax.f32 %v4142_v7, 0.0  ;;  %v4208_v52 = vmax.f32 %v4144_v2, 0.0 }
 0x32e   : > { %v4241_v61 = vpack.c.bf16 %v4205_v6, %v4201_v22  ;;  %v4243_v0 = vpack.c.bf16 %v4207_v43, %v4203_v5  ;;  %v13535_v43 = vld [vmem:[%s12637_s15 + $0x48] sm:$0xff]  }
 0x32f   : > { %v4242_v53 = vpack.c.bf16 %v4206_v25, %v4202_v17  ;;  %v4244_v56 = vpack.c.bf16 %v4208_v52, %v4204_v16  ;;  %v3882_v3 = vpop.f32.mrb[28].mxu0  ;;  %v3995_v19 = vpop.f32.mrb[28].mxu1  ;;  %v4720_v17 = vshll.u32 %v13524_v27, 16 }
 0x330   : > { %v4145_v31 = vadd.f32 %v13453_v1, %v3882_v3  ;;  %v4147_v57 = vadd.f32 %v13455_v4, %v3995_v19  ;;  %v3884_v15 = vpop.f32.mrb[29].mxu0  ;;  %v3997_v26 = vpop.f32.mrb[29].mxu1 }
 0x331   : > { %v4146_v62 = vadd.f32 %v13457_v58, %v3884_v15  ;;  %v4148_v63 = vadd.f32 %v13459_v59, %v3997_v26  ;;  %v3886_v32 = vpop.f32.mrb[30].mxu0  ;;  %v3999_v42 = vpop.f32.mrb[30].mxu1  ;;  %4527 = vmatprep.mubr.bf16.mxu0 %v4242_v53  ;;  %4624 = vmatprep.mubr.bf16.mxu1 %v4244_v56 }
 0x332   : > { %v4149_v60 = vadd.f32 %v13453_v1, %v3886_v32  ;;  %v4151_v7 = vadd.f32 %v13455_v4, %v3999_v42  ;;  %v3888_v2 = vpop.f32.mrb[31].mxu0  ;;  %v4001_v22 = vpop.f32.mrb[31].mxu1  ;;  %4528 = vmatmul.mubr.bf16.gmra.mrb[56].mxu0 %v4241_v61  ;;  %4625 = vmatmul.mubr.bf16.gmra.mrb[56].mxu1 %v4243_v0  ;;  %v4209_v16 = vmax.f32 %v4145_v31, 0.0  ;;  %v4211_v25 = vmax.f32 %v4147_v57, 0.0 }
 0x333   : > { %v4150_v5 = vadd.f32 %v13457_v58, %v3888_v2  ;;  %v4152_v6 = vadd.f32 %v13459_v59, %v4001_v22  ;;  %v4210_v56 = vmax.f32 %v4146_v62, 0.0  ;;  %v4212_v3 = vmax.f32 %v4148_v63, 0.0  ;;  %v13543_v63 = vld [vmem:[%s12637_s15 + $0x50] sm:$0xff]  }
 0x334   : > { %v4213_v52 = vmax.f32 %v4149_v60, 0.0  ;;  %v4215_v53 = vmax.f32 %v4151_v7, 0.0  ;;  %v4718_v0 = vshrl.u32 %v13524_v27, 16  ;;  %v4722_v2 = vrot.slane %v4720_v17, 1 }
 0x335   : > { %v4214_v19 = vmax.f32 %v4150_v5, 0.0  ;;  %v4216_v15 = vmax.f32 %v4152_v6, 0.0  ;;  %v4725_v22 = vshll.u32 %v13535_v43, 16  ;;  %v14640_v31 = vmov 0  }
 0x336   : > { %v4245_v26 = vpack.c.bf16 %v4213_v52, %v4209_v16  ;;  %v4247_v61 = vpack.c.bf16 %v4215_v53, %v4211_v25  ;;  %v4723_v57 = vor.u32 %v4722_v2, %v4718_v0  ;;  %v4729_v7 = vshrl.u32 %v13535_v43, 16  ;;  %v13553_v16 = vld [vmem:[%s12637_s15 + $0x58] sm:$0xff]  }
 0x337   : > { %v4246_v32 = vpack.c.bf16 %v4214_v19, %v4210_v56  ;;  %v4248_v42 = vpack.c.bf16 %v4216_v15, %v4212_v3  ;;  %v4727_v62 = vrot.slane %v4725_v22, 1  ;;  %v4733_v5 = vshll.u32 %v13543_v63, 16  ;;  %v13569_v19 = vld [vmem:[%s12637_s15 + $0x60] sm:$0xff]  }
 0x338   : > { %v4737_v52 = vshrl.u32 %v13543_v63, 16  ;;  %v4741_v53 = vshll.u32 %v13553_v16, 16  ;;  %v4753_v22 = vshrl.u32 %v13569_v19, 16 }
 0x339   : > { %4535 = vmatprep.mubr.bf16.mxu0 %v4246_v32  ;;  %4632 = vmatprep.mubr.bf16.mxu1 %v4248_v42  ;;  %v4728_v60 = vsel %vm367_vm1, %v4723_v57, %v4727_v62  ;;  %v4731_v6 = vor.u32 %v4729_v7, %v4727_v62  ;;  %v4735_v17 = vrot.slane %v4733_v5, 1  ;;  %v13579_v42 = vld [vmem:[%s12637_s15 + $0x68] sm:$0xff]   ;;  %v13589_v7 = vld [vmem:[%s12637_s15 + $0x70] sm:$0xff]  }
 0x33a   : > { %4536 = vmatmul.mubr.bf16.gmra.mrb[60].mxu0 %v4245_v26  ;;  %4633 = vmatmul.mubr.bf16.gmra.mrb[60].mxu1 %v4247_v61  ;;  %v4743_v3 = vrot.slane %v4741_v53, 1  ;;  %v4745_v26 = vshrl.u32 %v13553_v16, 16  ;;  %v4749_v61 = vshll.u32 %v13569_v19, 16  ;;  %v4757_v57 = vshll.u32 %v13579_v42, 16  ;;  %v12312_v53 = vld [vmem:[%s12637_s15 + $0x78] sm:$0xff]  }
 0x33b   : > { %4841 = vmatprep.mubr.bf16.mxu0 %v14640_v31  ;;  %4954 = vmatprep.mubr.bf16.mxu1 %v14640_v31  ;;  %v4736_v25 = vsel %vm367_vm1, %v4731_v6, %v4735_v17  ;;  %v4739_v56 = vor.u32 %v4737_v52, %v4735_v17  ;;  %v4761_v6 = vshrl.u32 %v13579_v42, 16  ;;  %v4765_v17 = vshll.u32 %v13589_v7, 16 }
 0x33c   : > { %v4747_v0 = vor.u32 %v4745_v26, %v4743_v3  ;;  %v4751_v32 = vrot.slane %v4749_v61, 1 }
 0x33d   : > { %v4744_v15 = vsel %vm367_vm1, %v4739_v56, %v4743_v3  ;;  %v4767_v52 = vrot.slane %v4765_v17, 1  ;;  %v4769_v3 = vshrl.u32 %v13589_v7, 16 }
 0x33e   : > { %v4752_v2 = vsel %vm367_vm1, %v4747_v0, %v4751_v32  ;;  %v4755_v62 = vor.u32 %v4753_v22, %v4751_v32  ;;  %v12313_v0 = vld [vmem:[%s12637_s15 + $0x80] ss:$0 sps:$4 sm:$0x11]  }
 0x33f   : > { %v4771_v26 = vor.u32 %v4769_v3, %v4767_v52  ;;  %v4781_v22 = vshll.u32 %v12313_v0, 16 }
 0x342   : > { %10377 = vmatmul.mubr.msk.bf16.vlgmr.msra.gmra.mrb[64].mxu0 %vm454_vm2, %v4728_v60  ;;  %10386 = vmatmul.mubr.msk.bf16.vlgmr.msra.gmra.mrb[64].mxu1 %vm454_vm2, %v4728_v60  ;;  %v4759_v60 = vrot.slane %v4757_v57, 1 }
 0x343   : > { %5052 = vmatpush1.bf16.msra.mxu0 %v12685_v36  ;;  %5165 = vmatpush1.bf16.msra.mxu1 %v12688_v37 }
 0x344   : > { %4851 = vmatprep.mubr.bf16.mxu0 %v14640_v31  ;;  %4964 = vmatprep.mubr.bf16.mxu1 %v14640_v31  ;;  %v4760_v5 = vsel %vm367_vm1, %v4755_v62, %v4759_v60  ;;  %v4783_v62 = vrot.slane %v4781_v22, 1 }
 0x345   : > { %10421 = vmatprep.subr.msk.bf16.mxu0 %vm479_vm0, %v12693_v39  ;;  %10430 = vmatprep.subr.msk.bf16.mxu1 %vm479_vm0, %v12697_v40 }
 0x34a   : > { %10378 = vmatmul.mubr.msk.bf16.gmra.mrb[68].mxu0 %vm454_vm2, %v4736_v25  ;;  %10387 = vmatmul.mubr.msk.bf16.gmra.mrb[68].mxu1 %vm454_vm2, %v4736_v25  ;;  %v4763_v25 = vor.u32 %v4761_v6, %v4759_v60  ;;  %v12317_v6 = vld [vmem:[%s12637_s15 + $0x58] sm:$0xff]  }
 0x34b   : > { %4861 = vmatprep.mubr.bf16.mxu0 %v14640_v31  ;;  %4974 = vmatprep.mubr.bf16.mxu1 %v14640_v31  ;;  %v5342_v17 = vrot.slane %v12317_v6, 1 }
 0x34c   : > { %v4768_v56 = vsel %vm367_vm1, %v4763_v25, %v4767_v52  ;;  %v12318_v52 = vld [vmem:[%s12637_s15 + $0x60] sm:$0xff]  }
 0x352   : > { %10379 = vmatmul.mubr.msk.bf16.gmra.mrb[72].mxu0 %vm454_vm2, %v4744_v15  ;;  %10388 = vmatmul.mubr.msk.bf16.gmra.mrb[72].mxu1 %vm454_vm2, %v4744_v15  ;;  %v4773_v15 = vshll.u32 %v12312_v53, 16 }
 0x353   : > { %4871 = vmatprep.mubr.bf16.mxu0 %v14640_v31  ;;  %4984 = vmatprep.mubr.bf16.mxu1 %v14640_v31 }
 0x354   : > { %v4775_v61 = vrot.slane %v4773_v15, 1  ;;  %v13698_v15 = vld [vmem:[%s14628_s4] ss:$0 sm:$0xff] }
 0x356   : > { %v4776_v32 = vsel %vm367_vm1, %v4771_v26, %v4775_v61 }
 0x35a   : > { %10380 = vmatmul.mubr.msk.bf16.gmra.mrb[76].mxu0 %vm454_vm2, %v4752_v2  ;;  %10389 = vmatmul.mubr.msk.bf16.gmra.mrb[76].mxu1 %vm454_vm2, %v4752_v2  ;;  %v4777_v2 = vshrl.u32 %v12312_v53, 16 }
 0x35b   : > { %4881 = vmatprep.mubr.bf16.mxu0 %v14640_v31  ;;  %4994 = vmatprep.mubr.bf16.mxu1 %v14640_v31 }
 0x35c   : > { %v4779_v57 = vor.u32 %v4777_v2, %v4775_v61 }
 0x35e   : > { %v4784_v60 = vsel %vm367_vm1, %v4779_v57, %v4783_v62  ;;  %v12319_v62 = vld [vmem:[%s12637_s15 + $0x68] sm:$0xff]  }
 0x362   : > { %10381 = vmatmul.mubr.msk.bf16.gmra.mrb[80].mxu0 %vm454_vm2, %v4760_v5  ;;  %10390 = vmatmul.mubr.msk.bf16.gmra.mrb[80].mxu1 %vm454_vm2, %v4760_v5 }
 0x363   : > { %4891 = vmatprep.mubr.bf16.mxu0 %v14640_v31  ;;  %5004 = vmatprep.mubr.bf16.mxu1 %v14640_v31 }
 0x36a   : > { %10382 = vmatmul.mubr.msk.bf16.gmra.mrb[84].mxu0 %vm454_vm2, %v4768_v56  ;;  %10391 = vmatmul.mubr.msk.bf16.gmra.mrb[84].mxu1 %vm454_vm2, %v4768_v56 }
 0x36b   : > { %4901 = vmatprep.mubr.bf16.mxu0 %v14640_v31  ;;  %5014 = vmatprep.mubr.bf16.mxu1 %v14640_v31 }
 0x372   : > { %10383 = vmatmul.mubr.msk.bf16.gmra.mrb[88].mxu0 %vm454_vm2, %v4776_v32  ;;  %10392 = vmatmul.mubr.msk.bf16.gmra.mrb[88].mxu1 %vm454_vm2, %v4776_v32 }
 0x373   : > { %4911 = vmatprep.mubr.bf16.mxu0 %v14640_v31  ;;  %5024 = vmatprep.mubr.bf16.mxu1 %v14640_v31 }
 0x37a   : > { %10384 = vmatmul.mubr.msk.bf16.gmra.mrb[92].mxu0 %vm454_vm2, %v4784_v60  ;;  %10393 = vmatmul.mubr.msk.bf16.gmra.mrb[92].mxu1 %vm454_vm2, %v4784_v60 }
 0x37b   : > { %5083 = vmatprep.mubr.bf16.mxu0 %v14640_v31  ;;  %5196 = vmatprep.mubr.bf16.mxu1 %v14640_v31 }
 0x382   : > { %10395 = vmatmul.mubr.msk.bf16.vlgmr.msra.gmra.mrb[64].mxu0 %vm454_vm2, %v13524_v27  ;;  %10404 = vmatmul.mubr.msk.bf16.vlgmr.msra.gmra.mrb[64].mxu1 %vm454_vm2, %v13524_v27  ;;  %v12314_v27 = vld [vmem:[%s12637_s15 + $0x40] sm:$0xfe]  }
 0x383   : > { %5379 = vmatpush1.bf16.msra.mxu0 %v12776_v30  ;;  %5492 = vmatpush1.bf16.msra.mxu1 %v12780_v33 }
 0x384   : > { %5093 = vmatprep.mubr.bf16.mxu0 %v14640_v31  ;;  %5206 = vmatprep.mubr.bf16.mxu1 %v14640_v31 }
 0x385   : > { %10448 = vmatprep.subr.msk.bf16.mxu0 %vm479_vm0, %v12784_v38  ;;  %10457 = vmatprep.subr.msk.bf16.mxu1 %vm479_vm0, %v12786_v41 }
 0x38a   : > { %10396 = vmatmul.mubr.msk.bf16.gmra.mrb[68].mxu0 %vm454_vm2, %v13535_v43  ;;  %10405 = vmatmul.mubr.msk.bf16.gmra.mrb[68].mxu1 %vm454_vm2, %v13535_v43  ;;  %v12315_v43 = vld [vmem:[%s12637_s15 + $0x48] sm:$0xff]  }
 0x38b   : > { %5103 = vmatprep.mubr.bf16.mxu0 %v14640_v31  ;;  %5216 = vmatprep.mubr.bf16.mxu1 %v14640_v31 }
 0x392   : > { %10397 = vmatmul.mubr.msk.bf16.gmra.mrb[72].mxu0 %vm454_vm2, %v13543_v63  ;;  %10406 = vmatmul.mubr.msk.bf16.gmra.mrb[72].mxu1 %vm454_vm2, %v13543_v63  ;;  %v5337_v63 = vrot.slane %v12314_v27, 1 }
 0x393   : > { %5113 = vmatprep.mubr.bf16.mxu0 %v14640_v31  ;;  %5226 = vmatprep.mubr.bf16.mxu1 %v14640_v31 }
 0x39a   : > { %10398 = vmatmul.mubr.msk.bf16.gmra.mrb[76].mxu0 %vm454_vm2, %v13553_v16  ;;  %10407 = vmatmul.mubr.msk.bf16.gmra.mrb[76].mxu1 %vm454_vm2, %v13553_v16  ;;  %v5338_v16 = vrot.slane %v12315_v43, 1 }
 0x39b   : > { %5123 = vmatprep.mubr.bf16.mxu0 %v14640_v31  ;;  %5236 = vmatprep.mubr.bf16.mxu1 %v14640_v31 }
 0x3a2   : > { %10399 = vmatmul.mubr.msk.bf16.gmra.mrb[80].mxu0 %vm454_vm2, %v13569_v19  ;;  %10408 = vmatmul.mubr.msk.bf16.gmra.mrb[80].mxu1 %vm454_vm2, %v13569_v19  ;;  %v5339_v19 = vsel %vm1050_vm3, %v5337_v63, %v5338_v16 }
 0x3a3   : > { %5133 = vmatprep.mubr.bf16.mxu0 %v14640_v31  ;;  %5246 = vmatprep.mubr.bf16.mxu1 %v14640_v31 }
 0x3aa   : > { %10400 = vmatmul.mubr.msk.bf16.gmra.mrb[84].mxu0 %vm454_vm2, %v13579_v42  ;;  %10409 = vmatmul.mubr.msk.bf16.gmra.mrb[84].mxu1 %vm454_vm2, %v13579_v42  ;;  %v12316_v42 = vld [vmem:[%s12637_s15 + $0x50] sm:$0xff]  }
 0x3ab   : > { %5143 = vmatprep.mubr.bf16.mxu0 %v14640_v31  ;;  %5256 = vmatprep.mubr.bf16.mxu1 %v14640_v31 }
 0x3b2   : > { %10401 = vmatmul.mubr.msk.bf16.gmra.mrb[88].mxu0 %vm454_vm2, %v13589_v7  ;;  %10410 = vmatmul.mubr.msk.bf16.gmra.mrb[88].mxu1 %vm454_vm2, %v13589_v7  ;;  %v5340_v7 = vrot.slane %v12316_v42, 1 }
 0x3b3   : > { %5153 = vmatprep.mubr.bf16.mxu0 %v14640_v31  ;;  %5266 = vmatprep.mubr.bf16.mxu1 %v14640_v31 }
 0x3b4   : > { %v5341_v5 = vsel %vm1050_vm3, %v5338_v16, %v5340_v7  ;;  %v5343_v25 = vsel %vm1050_vm3, %v5340_v7, %v5342_v17  ;;  %v5346_v7 = vrot.slane %v12319_v62, 1 }
 0x3ba   : > { %10402 = vmatmul.mubr.msk.bf16.gmra.mrb[92].mxu0 %vm454_vm2, %v12312_v53  ;;  %10411 = vmatmul.mubr.msk.bf16.gmra.mrb[92].mxu1 %vm454_vm2, %v12312_v53  ;;  %v5344_v53 = vrot.slane %v12318_v52, 1 }
 0x3bb   : > { %5410 = vmatprep.mubr.bf16.mxu0 %v14640_v31  ;;  %5523 = vmatprep.mubr.bf16.mxu1 %v14640_v31 }
 0x3bc   : > { %v5345_v57 = vsel %vm1050_vm3, %v5342_v17, %v5344_v53 }
 0x3c2   : > { %10422 = vmatmul.mubr.msk.bf16.vlgmr.msra.gmra.mrb[64].mxu0 %vm454_vm2, %v5339_v19  ;;  %10431 = vmatmul.mubr.msk.bf16.vlgmr.msra.gmra.mrb[64].mxu1 %vm454_vm2, %v5339_v19 }
 0x3c3   : > { %5770 = vmatpush1.bf16.msra.mxu0 %v12855_v46  ;;  %5883 = vmatpush1.bf16.msra.mxu1 %v12858_v47 }
 0x3c4   : > { %5420 = vmatprep.mubr.bf16.mxu0 %v14640_v31  ;;  %5533 = vmatprep.mubr.bf16.mxu1 %v14640_v31 }
 0x3c5   : > { %10475 = vmatprep.subr.msk.bf16.mxu0 %vm479_vm0, %v12863_v49  ;;  %10484 = vmatprep.subr.msk.bf16.mxu1 %vm479_vm0, %v12867_v50 }
 0x3ca   : > { %10423 = vmatmul.mubr.msk.bf16.gmra.mrb[68].mxu0 %vm454_vm2, %v5341_v5  ;;  %10432 = vmatmul.mubr.msk.bf16.gmra.mrb[68].mxu1 %vm454_vm2, %v5341_v5 }
 0x3cb   : > { %5430 = vmatprep.mubr.bf16.mxu0 %v14640_v31  ;;  %5543 = vmatprep.mubr.bf16.mxu1 %v14640_v31 }
 0x3d2   : > { %10424 = vmatmul.mubr.msk.bf16.gmra.mrb[72].mxu0 %vm454_vm2, %v5343_v25  ;;  %10433 = vmatmul.mubr.msk.bf16.gmra.mrb[72].mxu1 %vm454_vm2, %v5343_v25 }
 0x3d3   : > { %5440 = vmatprep.mubr.bf16.mxu0 %v14640_v31  ;;  %5553 = vmatprep.mubr.bf16.mxu1 %v14640_v31 }
 0x3d5   : > { %v10698_v56 = vpop.f32.mrb[32].mxu0  ;;  %v10762_v3 = vpop.f32.mrb[32].mxu1 }
 0x3d6   : > { %v10699_v26 = vpop.f32.mrb[33].mxu0  ;;  %v10763_v61 = vpop.f32.mrb[33].mxu1 }
 0x3d7   : > { %v10700_v0 = vadd.f32 %v10699_v26, %v10698_v56  ;;  %v10764_v32 = vadd.f32 %v10763_v61, %v10762_v3  ;;  %v10701_v2 = vpop.f32.mrb[34].mxu0  ;;  %v10765_v22 = vpop.f32.mrb[34].mxu1 }
 0x3d8   : > { %v10702_v60 = vpop.f32.mrb[35].mxu0  ;;  %v10766_v27 = vpop.f32.mrb[35].mxu1 }
 0x3d9   : > { %v4482_v43 = vadd.f32 %v10700_v0, %v13698_v15  ;;  %v10703_v63 = vadd.f32 %v10702_v60, %v10701_v2  ;;  %v10767_v16 = vadd.f32 %v10766_v27, %v10765_v22  ;;  %v5347_v0 = vsel %vm1050_vm3, %v5344_v53, %v5346_v7 }
 0x3da   : > { %10425 = vmatmul.mubr.msk.bf16.gmra.mrb[76].mxu0 %vm454_vm2, %v5345_v57  ;;  %10434 = vmatmul.mubr.msk.bf16.gmra.mrb[76].mxu1 %vm454_vm2, %v5345_v57 }
 0x3db   : > { %v4579_v19 = vadd.f32 %v10764_v32, %v4482_v43  ;;  %v4485_v42 = vadd.f32 %v10703_v63, %v13698_v15  ;;  %5450 = vmatprep.mubr.bf16.mxu0 %v14640_v31  ;;  %5563 = vmatprep.mubr.bf16.mxu1 %v14640_v31  ;;  %v12320_v32 = vld [vmem:[%s12637_s15 + $0x70] sm:$0xff]  }
 0x3dc   : > { %v5348_v53 = vrot.slane %v12320_v32, 1 }
 0x3dd   : > { %4641 = vst [vmem:[%s13710_s7] sm:$0xff] %v4579_v19  ;;  %v4582_v5 = vadd.f32 %v10767_v16, %v4485_v42  ;;  %v10704_v6 = vpop.f32.mrb[36].mxu0  ;;  %v10768_v17 = vpop.f32.mrb[36].mxu1 }
 0x3de   : > { %v10705_v25 = vpop.f32.mrb[37].mxu0  ;;  %v10769_v52 = vpop.f32.mrb[37].mxu1 }
 0x3df   : > { %4642 = vst [vmem:[%s13710_s7 + $0x8] sm:$0xff] %v4582_v5  ;;  %v10706_v56 = vadd.f32 %v10705_v25, %v10704_v6  ;;  %v10770_v3 = vadd.f32 %v10769_v52, %v10768_v17  ;;  %v10707_v26 = vpop.f32.mrb[38].mxu0  ;;  %v10771_v61 = vpop.f32.mrb[38].mxu1 }
 0x3e0   : > { %v10708_v2 = vpop.f32.mrb[39].mxu0  ;;  %v10772_v22 = vpop.f32.mrb[39].mxu1 }
 0x3e1   : > { %v4490_v57 = vadd.f32 %v10706_v56, %v13698_v15  ;;  %v10709_v62 = vadd.f32 %v10708_v2, %v10707_v26  ;;  %v10773_v60 = vadd.f32 %v10772_v22, %v10771_v61  ;;  %v5349_v56 = vsel %vm1050_vm3, %v5346_v7, %v5348_v53 }
 0x3e2   : > { %10426 = vmatmul.mubr.msk.bf16.gmra.mrb[80].mxu0 %vm454_vm2, %v5347_v0  ;;  %10435 = vmatmul.mubr.msk.bf16.gmra.mrb[80].mxu1 %vm454_vm2, %v5347_v0 }
 0x3e3   : > { %v4587_v27 = vadd.f32 %v10770_v3, %v4490_v57  ;;  %v4493_v43 = vadd.f32 %v10709_v62, %v13698_v15  ;;  %5460 = vmatprep.mubr.bf16.mxu0 %v14640_v31  ;;  %5573 = vmatprep.mubr.bf16.mxu1 %v14640_v31  ;;  %v12321_v3 = vld [vmem:[%s12637_s15 + $0x78] sm:$0xff]  }
 0x3e4   : > { %v5350_v7 = vrot.slane %v12321_v3, 1 }
 0x3e5   : > { %4643 = vst [vmem:[%s13710_s7 + $0x10] sm:$0xff] %v4587_v27  ;;  %v4590_v63 = vadd.f32 %v10773_v60, %v4493_v43  ;;  %v10710_v16 = vpop.f32.mrb[40].mxu0  ;;  %v10774_v19 = vpop.f32.mrb[40].mxu1 }
 0x3e6   : > { %v10711_v42 = vpop.f32.mrb[41].mxu0  ;;  %v10775_v5 = vpop.f32.mrb[41].mxu1 }
 0x3e7   : > { %4644 = vst [vmem:[%s13710_s7 + $0x18] sm:$0xff] %v4590_v63  ;;  %v10712_v6 = vadd.f32 %v10711_v42, %v10710_v16  ;;  %v10776_v17 = vadd.f32 %v10775_v5, %v10774_v19  ;;  %v10713_v25 = vpop.f32.mrb[42].mxu0  ;;  %v10777_v52 = vpop.f32.mrb[42].mxu1 }
 0x3e8   : > { %v10714_v26 = vpop.f32.mrb[43].mxu0  ;;  %v10778_v61 = vpop.f32.mrb[43].mxu1 }
 0x3e9   : > { %v4498_v0 = vadd.f32 %v10712_v6, %v13698_v15  ;;  %v10715_v32 = vadd.f32 %v10714_v26, %v10713_v25  ;;  %v10779_v2 = vadd.f32 %v10778_v61, %v10777_v52  ;;  %v5351_v6 = vsel %vm1050_vm3, %v5348_v53, %v5350_v7 }
 0x3ea   : > { %10427 = vmatmul.mubr.msk.bf16.gmra.mrb[84].mxu0 %vm454_vm2, %v5349_v56  ;;  %10436 = vmatmul.mubr.msk.bf16.gmra.mrb[84].mxu1 %vm454_vm2, %v5349_v56 }
 0x3eb   : > { %v4595_v22 = vadd.f32 %v10776_v17, %v4498_v0  ;;  %v4501_v57 = vadd.f32 %v10715_v32, %v13698_v15  ;;  %5470 = vmatprep.mubr.bf16.mxu0 %v14640_v31  ;;  %5583 = vmatprep.mubr.bf16.mxu1 %v14640_v31  ;;  %v12322_v17 = vld [vmem:[%s12637_s15 + $0x80] ss:$0 sps:$4 sm:$0x11]  }
 0x3ec   : > { %v5352_v53 = vrot.slane %v12322_v17, 1 }
 0x3ed   : > { %4645 = vst [vmem:[%s13710_s7 + $0x20] sm:$0xff] %v4595_v22  ;;  %v4598_v62 = vadd.f32 %v10779_v2, %v4501_v57  ;;  %v10716_v60 = vpop.f32.mrb[44].mxu0  ;;  %v10780_v27 = vpop.f32.mrb[44].mxu1 }
 0x3ee   : > { %v10717_v43 = vpop.f32.mrb[45].mxu0  ;;  %v10781_v63 = vpop.f32.mrb[45].mxu1 }
 0x3ef   : > { %4646 = vst [vmem:[%s13710_s7 + $0x28] sm:$0xff] %v4598_v62  ;;  %v10718_v16 = vadd.f32 %v10717_v43, %v10716_v60  ;;  %v10782_v19 = vadd.f32 %v10781_v63, %v10780_v27  ;;  %v10719_v42 = vpop.f32.mrb[46].mxu0  ;;  %v10783_v5 = vpop.f32.mrb[46].mxu1 }
 0x3f0   : > { %v10720_v25 = vpop.f32.mrb[47].mxu0  ;;  %v10784_v52 = vpop.f32.mrb[47].mxu1 }
 0x3f1   : > { %v4506_v56 = vadd.f32 %v10718_v16, %v13698_v15  ;;  %v10721_v3 = vadd.f32 %v10720_v25, %v10719_v42  ;;  %v10785_v26 = vadd.f32 %v10784_v52, %v10783_v5  ;;  %v5353_v16 = vsel %vm1050_vm3, %v5350_v7, %v5352_v53  ;;  %v12324_v42 = vld [vmem:[%s12637_s15 + $0x50] sm:$0xff]  }
 0x3f2   : > { %10428 = vmatmul.mubr.msk.bf16.gmra.mrb[88].mxu0 %vm454_vm2, %v5351_v6  ;;  %10437 = vmatmul.mubr.msk.bf16.gmra.mrb[88].mxu1 %vm454_vm2, %v5351_v6 }
 0x3f3   : > { %v4603_v61 = vadd.f32 %v10782_v19, %v4506_v56  ;;  %v4509_v0 = vadd.f32 %v10721_v3, %v13698_v15  ;;  %5480 = vmatprep.mubr.bf16.mxu0 %v14640_v31  ;;  %5593 = vmatprep.mubr.bf16.mxu1 %v14640_v31  ;;  %v12323_v19 = vld [vmem:[%s12637_s15 + $0x48] sm:$0xfe]  }
 0x3f4   : > { %v5728_v7 = vrot.slane %v12323_v19, 1 }
 0x3f5   : > { %4647 = vst [vmem:[%s13710_s7 + $0x30] sm:$0xff] %v4603_v61  ;;  %v4606_v32 = vadd.f32 %v10785_v26, %v4509_v0  ;;  %v10722_v2 = vpop.f32.mrb[48].mxu0  ;;  %v10786_v22 = vpop.f32.mrb[48].mxu1  ;;  %v5729_v26 = vrot.slane %v12324_v42, 1 }
 0x3f6   : > { %v10723_v57 = vpop.f32.mrb[49].mxu0  ;;  %v10787_v62 = vpop.f32.mrb[49].mxu1 }
 0x3f7   : > { %4648 = vst [vmem:[%s13710_s7 + $0x38] sm:$0xff] %v4606_v32  ;;  %v10724_v60 = vadd.f32 %v10723_v57, %v10722_v2  ;;  %v10788_v27 = vadd.f32 %v10787_v62, %v10786_v22  ;;  %v10725_v43 = vpop.f32.mrb[50].mxu0  ;;  %v10789_v63 = vpop.f32.mrb[50].mxu1 }
 0x3f8   : > { %v10726_v5 = vpop.f32.mrb[51].mxu0  ;;  %v10790_v6 = vpop.f32.mrb[51].mxu1 }
 0x3f9   : > { %v4514_v17 = vadd.f32 %v10724_v60, %v13698_v15  ;;  %v10727_v25 = vadd.f32 %v10726_v5, %v10725_v43  ;;  %v10791_v52 = vadd.f32 %v10790_v6, %v10789_v63  ;;  %v12325_v43 = vld [vmem:[%s12637_s15 + $0x58] sm:$0xff]  }
 0x3fa   : > { %10429 = vmatmul.mubr.msk.bf16.gmra.mrb[92].mxu0 %vm454_vm2, %v5353_v16  ;;  %10438 = vmatmul.mubr.msk.bf16.gmra.mrb[92].mxu1 %vm454_vm2, %v5353_v16 }
 0x3fb   : > { %v4611_v56 = vadd.f32 %v10788_v27, %v4514_v17  ;;  %v4517_v3 = vadd.f32 %v10727_v25, %v13698_v15  ;;  %5801 = vmatprep.mubr.bf16.mxu0 %v14640_v31  ;;  %5914 = vmatprep.mubr.bf16.mxu1 %v14640_v31  ;;  %v5730_v27 = vsel %vm1050_vm3, %v5728_v7, %v5729_v26  ;;  %v5731_v25 = vrot.slane %v12325_v43, 1 }
 0x3fd   : > { %4649 = vst [vmem:[%s13710_s7 + $0x40] sm:$0xff] %v4611_v56  ;;  %v4614_v61 = vadd.f32 %v10791_v52, %v4517_v3  ;;  %v10728_v0 = vpop.f32.mrb[52].mxu0  ;;  %v10792_v53 = vpop.f32.mrb[52].mxu1 }
 0x3fe   : > { %v10729_v32 = vpop.f32.mrb[53].mxu0  ;;  %v10793_v2 = vpop.f32.mrb[53].mxu1 }
 0x3ff   : > { %4650 = vst [vmem:[%s13710_s7 + $0x48] sm:$0xff] %v4614_v61  ;;  %v10730_v22 = vadd.f32 %v10729_v32, %v10728_v0  ;;  %v10794_v57 = vadd.f32 %v10793_v2, %v10792_v53  ;;  %v10731_v62 = vpop.f32.mrb[54].mxu0  ;;  %v10795_v60 = vpop.f32.mrb[54].mxu1 }
 0x400   : > { %v10732_v63 = vpop.f32.mrb[55].mxu0  ;;  %v10796_v16 = vpop.f32.mrb[55].mxu1 }
 0x401   : > { %v4522_v19 = vadd.f32 %v10730_v22, %v13698_v15  ;;  %v10733_v42 = vadd.f32 %v10732_v63, %v10731_v62  ;;  %v10797_v5 = vadd.f32 %v10796_v16, %v10795_v60  ;;  %v5732_v22 = vsel %vm1050_vm3, %v5729_v26, %v5731_v25 }
 0x402   : > { %10449 = vmatmul.mubr.msk.bf16.vlgmr.msra.gmra.mrb[64].mxu0 %vm454_vm2, %v5730_v27  ;;  %10458 = vmatmul.mubr.msk.bf16.vlgmr.msra.gmra.mrb[64].mxu1 %vm454_vm2, %v5730_v27 }
 0x403   : > { %v4619_v6 = vadd.f32 %v10794_v57, %v4522_v19  ;;  %v4525_v17 = vadd.f32 %v10733_v42, %v13698_v15  ;;  %6224 = vmatpush1.bf16.msra.mxu0 %v12935_v29  ;;  %6337 = vmatpush1.bf16.msra.mxu1 %v12939_v34  ;;  %v12326_v57 = vld [vmem:[%s12637_s15 + $0x60] sm:$0xff]  }
 0x404   : > { %5811 = vmatprep.mubr.bf16.mxu0 %v14640_v31  ;;  %5924 = vmatprep.mubr.bf16.mxu1 %v14640_v31  ;;  %v5733_v26 = vrot.slane %v12326_v57, 1 }
 0x405   : > { %4651 = vst [vmem:[%s13710_s7 + $0x50] sm:$0xff] %v4619_v6  ;;  %v4622_v52 = vadd.f32 %v10797_v5, %v4525_v17  ;;  %v10734_v56 = vpop.f32.mrb[56].mxu0  ;;  %v10798_v3 = vpop.f32.mrb[56].mxu1  ;;  %10502 = vmatprep.subr.msk.bf16.mxu0 %vm479_vm0, %v12943_v35  ;;  %10511 = vmatprep.subr.msk.bf16.mxu1 %vm479_vm0, %v12947_v21 }
 0x406   : > { %v10735_v7 = vpop.f32.mrb[57].mxu0  ;;  %v10799_v61 = vpop.f32.mrb[57].mxu1 }
 0x407   : > { %4652 = vst [vmem:[%s13710_s7 + $0x58] sm:$0xff] %v4622_v52  ;;  %v10736_v0 = vadd.f32 %v10735_v7, %v10734_v56  ;;  %v10800_v53 = vadd.f32 %v10799_v61, %v10798_v3  ;;  %v10737_v32 = vpop.f32.mrb[58].mxu0  ;;  %v10801_v2 = vpop.f32.mrb[58].mxu1 }
 0x408   : > { %v10738_v62 = vpop.f32.mrb[59].mxu0  ;;  %v10802_v60 = vpop.f32.mrb[59].mxu1 }
 0x409   : > { %v4530_v27 = vadd.f32 %v10736_v0, %v13698_v15  ;;  %v10739_v43 = vadd.f32 %v10738_v62, %v10737_v32  ;;  %v10803_v63 = vadd.f32 %v10802_v60, %v10801_v2  ;;  %v5734_v0 = vsel %vm1050_vm3, %v5731_v25, %v5733_v26 }
 0x40a   : > { %10450 = vmatmul.mubr.msk.bf16.gmra.mrb[68].mxu0 %vm454_vm2, %v5732_v22  ;;  %10459 = vmatmul.mubr.msk.bf16.gmra.mrb[68].mxu1 %vm454_vm2, %v5732_v22 }
 0x40b   : > { %v4627_v16 = vadd.f32 %v10800_v53, %v4530_v27  ;;  %v4533_v19 = vadd.f32 %v10739_v43, %v13698_v15  ;;  %5821 = vmatprep.mubr.bf16.mxu0 %v14640_v31  ;;  %5934 = vmatprep.mubr.bf16.mxu1 %v14640_v31  ;;  %v12327_v53 = vld [vmem:[%s12637_s15 + $0x68] sm:$0xff]  }
 0x40c   : > { %v5735_v25 = vrot.slane %v12327_v53, 1 }
 0x40d   : > { %4653 = vst [vmem:[%s13710_s7 + $0x60] sm:$0xff] %v4627_v16  ;;  %v4630_v42 = vadd.f32 %v10803_v63, %v4533_v19  ;;  %v10740_v5 = vpop.f32.mrb[60].mxu0  ;;  %v10804_v6 = vpop.f32.mrb[60].mxu1  ;;  %v12328_v16 = vld [vmem:[%s12637_s15 + $0x70] sm:$0xff]  }
 0x40e   : > { %v10741_v17 = vpop.f32.mrb[61].mxu0  ;;  %v10805_v52 = vpop.f32.mrb[61].mxu1  ;;  %v5736_v63 = vsel %vm1050_vm3, %v5733_v26, %v5735_v25 }
 0x40f   : > { %4654 = vst [vmem:[%s13710_s7 + $0x68] sm:$0xff] %v4630_v42  ;;  %v10742_v56 = vadd.f32 %v10741_v17, %v10740_v5  ;;  %v10806_v3 = vadd.f32 %v10805_v52, %v10804_v6  ;;  %v10743_v7 = vpop.f32.mrb[62].mxu0  ;;  %v10807_v61 = vpop.f32.mrb[62].mxu1  ;;  %v12329_v42 = vld [vmem:[%s12637_s15 + $0x78] sm:$0xff]   ;;  %v12330_v6 = vld [vmem:[%s12637_s15 + $0x80] sm:$0xff]  }
 0x410   : > { %v10744_v32 = vpop.f32.mrb[63].mxu0  ;;  %v10808_v2 = vpop.f32.mrb[63].mxu1  ;;  %v5739_v26 = vrot.slane %v12329_v42, 1  ;;  %v5741_v17 = vrot.slane %v12330_v6, 1 }
 0x411   : > { %v4538_v22 = vadd.f32 %v10742_v56, %v13698_v15  ;;  %v10745_v57 = vadd.f32 %v10744_v32, %v10743_v7  ;;  %v10809_v62 = vadd.f32 %v10808_v2, %v10807_v61  ;;  %v12331_v52 = vld [vmem:[%s12637_s15 + $0x88] ss:$0 sps:$4 sm:$0x11]   ;;  %v12333_v7 = vld [vmem:[%s12637_s15 + $0x50] sm:$0xff]  }
 0x412   : > { %10451 = vmatmul.mubr.msk.bf16.gmra.mrb[72].mxu0 %vm454_vm2, %v5734_v0  ;;  %10460 = vmatmul.mubr.msk.bf16.gmra.mrb[72].mxu1 %vm454_vm2, %v5734_v0  ;;  %v5742_v56 = vsel %vm1050_vm3, %v5739_v26, %v5741_v17  ;;  %v5743_v61 = vrot.slane %v12331_v52, 1  ;;  %v6128_v32 = vshrl.u32 %v12333_v7, 16  ;;  %v6131_v2 = vshll.u32 %v12333_v7, 16 }
 0x413   : > { %v4635_v60 = vadd.f32 %v10806_v3, %v4538_v22  ;;  %v4541_v27 = vadd.f32 %v10745_v57, %v13698_v15  ;;  %5831 = vmatprep.mubr.bf16.mxu0 %v14640_v31  ;;  %5944 = vmatprep.mubr.bf16.mxu1 %v14640_v31  ;;  %v5737_v15 = vrot.slane %v12328_v16, 1  ;;  %v12332_v3 = vld [vmem:[%s12637_s15 + $0x48] sm:$0xfe]  }
 0x414   : > { %v6120_v0 = vshrl.u32 %v12332_v3, 16  ;;  %v6123_v53 = vshll.u32 %v12332_v3, 16  ;;  %v5744_v22 = vsel %vm1050_vm3, %v5741_v17, %v5743_v61  ;;  %v12336_v61 = vld [vmem:[%s12637_s15 + $0x68] sm:$0xff]  }
 0x415   : > { %4655 = vst [vmem:[%s13710_s7 + $0x70] sm:$0xff] %v4635_v60  ;;  %v4638_v43 = vadd.f32 %v10809_v62, %v4541_v27  ;;  %v5738_v19 = vsel %vm1050_vm3, %v5735_v25, %v5737_v15  ;;  %v5740_v5 = vsel %vm1050_vm3, %v5737_v15, %v5739_v26  ;;  %v6130_v60 = vrot.slane %v6128_v32, 1  ;;  %v12334_v25 = vld [vmem:[%s12637_s15 + $0x58] sm:$0xff]  }
 0x416   : > { %v6122_v57 = vrot.slane %v6120_v0, 1  ;;  %v6125_v62 = vrot.slane %v6123_v53, 2  ;;  %v6133_v27 = vrot.slane %v6131_v2, 2  ;;  %v6137_v16 = vshrl.u32 %v12334_v25, 16 }
 0x417   : > { %4656 = vst [vmem:[%s13710_s7 + $0x78] sm:$0xff] %v4638_v43  ;;  %v6140_v15 = vshll.u32 %v12334_v25, 16  ;;  %v6155_v53 = vshrl.u32 %v12336_v61, 16  ;;  %v6158_v32 = vshll.u32 %v12336_v61, 16 }
 0x418   : > { %v6126_v43 = vor.u32 %v6125_v62, %v6122_v57  ;;  %v6139_v42 = vrot.slane %v6137_v16, 1  ;;  %v12337_v62 = vld [vmem:[%s12637_s15 + $0x70] sm:$0xff]  }
 0x419   : > { %v6142_v26 = vrot.slane %v6140_v15, 2  ;;  %v6160_v57 = vrot.slane %v6158_v32, 2  ;;  %v6167_v25 = vshll.u32 %v12337_v62, 16  ;;  %v12338_v15 = vld [vmem:[%s12637_s15 + $0x78] sm:$0xff]  }
 0x41a   : > { %10452 = vmatmul.mubr.msk.bf16.gmra.mrb[76].mxu0 %vm454_vm2, %v5736_v63  ;;  %10461 = vmatmul.mubr.msk.bf16.gmra.mrb[76].mxu1 %vm454_vm2, %v5736_v63  ;;  %v6134_v63 = vor.u32 %v6133_v27, %v6130_v60  ;;  %v6164_v27 = vshrl.u32 %v12337_v62, 16  ;;  %v12340_v32 = vld [vmem:[%s12637_s15 + $0x88] ss:$0 sps:$4 sm:$0x33]  }
 0x41b   : > { %5841 = vmatprep.mubr.bf16.mxu0 %v14640_v31  ;;  %5954 = vmatprep.mubr.bf16.mxu1 %v14640_v31  ;;  %v6143_v6 = vor.u32 %v6142_v26, %v6139_v42  ;;  %v6169_v16 = vrot.slane %v6167_v25, 2  ;;  %v6173_v42 = vshrl.u32 %v12338_v15, 16  ;;  %v6176_v26 = vshll.u32 %v12338_v15, 16 }
 0x422   : > { %10453 = vmatmul.mubr.msk.bf16.gmra.mrb[80].mxu0 %vm454_vm2, %v5738_v19  ;;  %10462 = vmatmul.mubr.msk.bf16.gmra.mrb[80].mxu1 %vm454_vm2, %v5738_v19  ;;  %v6135_v19 = vsel %vm1893_vm4, %v6126_v43, %v6134_v63 }
 0x423   : > { %5851 = vmatprep.mubr.bf16.mxu0 %v14640_v31  ;;  %5964 = vmatprep.mubr.bf16.mxu1 %v14640_v31 }
 0x42a   : > { %10454 = vmatmul.mubr.msk.bf16.gmra.mrb[84].mxu0 %vm454_vm2, %v5740_v5  ;;  %10463 = vmatmul.mubr.msk.bf16.gmra.mrb[84].mxu1 %vm454_vm2, %v5740_v5  ;;  %v12335_v5 = vld [vmem:[%s12637_s15 + $0x60] sm:$0xff]  }
 0x42b   : > { %5861 = vmatprep.mubr.bf16.mxu0 %v14640_v31  ;;  %5974 = vmatprep.mubr.bf16.mxu1 %v14640_v31  ;;  %v6146_v17 = vshrl.u32 %v12335_v5, 16  ;;  %v6149_v52 = vshll.u32 %v12335_v5, 16 }
 0x42d   : > { %v6148_v3 = vrot.slane %v6146_v17, 1  ;;  %v6151_v7 = vrot.slane %v6149_v52, 2  ;;  %v6178_v17 = vrot.slane %v6176_v26, 2  ;;  %v12339_v52 = vld [vmem:[%s12637_s15 + $0x80] sm:$0xff]   ;;  %v12343_v26 = vld [vmem:[%s12637_s15 + $0x58] sm:$0xff]  }
 0x42f   : > { %v6152_v0 = vor.u32 %v6151_v7, %v6148_v3  ;;  %v6182_v3 = vshrl.u32 %v12339_v52, 16  ;;  %v6185_v7 = vshll.u32 %v12339_v52, 16 }
 0x431   : > { %v6153_v2 = vsel %vm1893_vm4, %v6143_v6, %v6152_v0 }
 0x432   : > { %10455 = vmatmul.mubr.msk.bf16.gmra.mrb[88].mxu0 %vm454_vm2, %v5742_v56  ;;  %10464 = vmatmul.mubr.msk.bf16.gmra.mrb[88].mxu1 %vm454_vm2, %v5742_v56  ;;  %v6144_v56 = vsel %vm1893_vm4, %v6134_v63, %v6143_v6  ;;  %v6166_v63 = vrot.slane %v6164_v27, 1  ;;  %v6175_v6 = vrot.slane %v6173_v42, 1 }
 0x433   : > { %5871 = vmatprep.mubr.bf16.mxu0 %v14640_v31  ;;  %5984 = vmatprep.mubr.bf16.mxu1 %v14640_v31 }
 0x43a   : > { %10456 = vmatmul.mubr.msk.bf16.gmra.mrb[92].mxu0 %vm454_vm2, %v5744_v22  ;;  %10465 = vmatmul.mubr.msk.bf16.gmra.mrb[92].mxu1 %vm454_vm2, %v5744_v22  ;;  %v6157_v22 = vrot.slane %v6155_v53, 1  ;;  %v6187_v53 = vrot.slane %v6185_v7, 2 }
 0x43b   : > { %6255 = vmatprep.mubr.bf16.mxu0 %v14640_v31  ;;  %6368 = vmatprep.mubr.bf16.mxu1 %v14640_v31 }
 0x43c   : > { %v6161_v60 = vor.u32 %v6160_v57, %v6157_v22  ;;  %v6191_v22 = vshrl.u32 %v12340_v32, 16  ;;  %v6194_v57 = vshll.u32 %v12340_v32, 16 }
 0x43e   : > { %v6162_v43 = vsel %vm1893_vm4, %v6152_v0, %v6161_v60  ;;  %v6184_v0 = vrot.slane %v6182_v3, 1  ;;  %v6196_v27 = vrot.slane %v6194_v57, 2  ;;  %v12345_v3 = vld [vmem:[%s12637_s15 + $0x68] sm:$0xff]  }
 0x43f   : > { %v6580_v7 = vrot.slane %v12345_v3, 2 }
 0x442   : > { %10476 = vmatmul.mubr.msk.bf16.vlgmr.msra.gmra.mrb[64].mxu0 %vm454_vm2, %v6135_v19  ;;  %10485 = vmatmul.mubr.msk.bf16.vlgmr.msra.gmra.mrb[64].mxu1 %vm454_vm2, %v6135_v19  ;;  %v6170_v19 = vor.u32 %v6169_v16, %v6166_v63  ;;  %v12341_v63 = vld [vmem:[%s12637_s15 + $0x48] sm:$0xfc]   ;;  %v12342_v16 = vld [vmem:[%s12637_s15 + $0x50] sm:$0xff]  }
 0x443   : > { %6615 = vmatpush1.bf16.msra.mxu0 %v13016_v44  ;;  %6728 = vmatpush1.bf16.msra.mxu1 %v13020_v45  ;;  %v6573_v15 = vrot.slane %v12341_v63, 2 }
 0x444   : > { %6265 = vmatprep.mubr.bf16.mxu0 %v14640_v31  ;;  %6378 = vmatprep.mubr.bf16.mxu1 %v14640_v31  ;;  %v6171_v5 = vsel %vm1893_vm4, %v6161_v60, %v6170_v19  ;;  %v6193_v60 = vrot.slane %v6191_v22, 1 }
 0x445   : > { %10529 = vmatprep.subr.msk.bf16.mxu0 %vm479_vm0, %v13024_v48  ;;  %10538 = vmatprep.subr.msk.bf16.mxu1 %vm479_vm0, %v13028_v51 }
 0x446   : > { %v6197_v25 = vor.u32 %v6196_v27, %v6193_v60 }
 0x44a   : > { %10477 = vmatmul.mubr.msk.bf16.gmra.mrb[68].mxu0 %vm454_vm2, %v6144_v56  ;;  %10486 = vmatmul.mubr.msk.bf16.gmra.mrb[68].mxu1 %vm454_vm2, %v6144_v56  ;;  %v6179_v56 = vor.u32 %v6178_v17, %v6175_v6  ;;  %v12344_v17 = vld [vmem:[%s12637_s15 + $0x60] sm:$0xff]  }
 0x44b   : > { %6275 = vmatprep.mubr.bf16.mxu0 %v14640_v31  ;;  %6388 = vmatprep.mubr.bf16.mxu1 %v14640_v31  ;;  %v6578_v52 = vrot.slane %v12344_v17, 2 }
 0x44c   : > { %v6180_v61 = vsel %vm1893_vm4, %v6170_v19, %v6179_v56  ;;  %v6574_v19 = vrot.slane %v12342_v16, 2  ;;  %v12350_v16 = vld [vmem:[%s12637_s15 + $0x50] sm:$0xfc]  }
 0x44e   : > { %v6575_v42 = vsel %vm2378_vm5, %v6573_v15, %v6574_v19  ;;  %v12351_v15 = vld [vmem:[%s12637_s15 + $0x58] sm:$0xff]  }
 0x452   : > { %10478 = vmatmul.mubr.msk.bf16.gmra.mrb[72].mxu0 %vm454_vm2, %v6153_v2  ;;  %10487 = vmatmul.mubr.msk.bf16.gmra.mrb[72].mxu1 %vm454_vm2, %v6153_v2  ;;  %v6188_v2 = vor.u32 %v6187_v53, %v6184_v0  ;;  %v12346_v0 = vld [vmem:[%s12637_s15 + $0x70] sm:$0xff]  }
 0x453   : > { %6285 = vmatprep.mubr.bf16.mxu0 %v14640_v31  ;;  %6398 = vmatprep.mubr.bf16.mxu1 %v14640_v31  ;;  %v6582_v53 = vrot.slane %v12346_v0, 2 }
 0x454   : > { %v6189_v62 = vsel %vm1893_vm4, %v6179_v56, %v6188_v2 }
 0x455   : > { %v6583_v32 = vsel %vm2378_vm5, %v6580_v7, %v6582_v53 }
 0x45a   : > { %10479 = vmatmul.mubr.msk.bf16.gmra.mrb[76].mxu0 %vm454_vm2, %v6162_v43  ;;  %10488 = vmatmul.mubr.msk.bf16.gmra.mrb[76].mxu1 %vm454_vm2, %v6162_v43  ;;  %v6198_v43 = vsel %vm1893_vm4, %v6188_v2, %v6197_v25  ;;  %v12347_v2 = vld [vmem:[%s12637_s15 + $0x78] sm:$0xff]   ;;  %v12349_v25 = vld [vmem:[%s12637_s15 + $0x88] ss:$0 sps:$4 sm:$0x33]  }
 0x45b   : > { %6295 = vmatprep.mubr.bf16.mxu0 %v14640_v31  ;;  %6408 = vmatprep.mubr.bf16.mxu1 %v14640_v31  ;;  %v6584_v22 = vrot.slane %v12347_v2, 2 }
 0x45d   : > { %v6585_v57 = vsel %vm2378_vm5, %v6582_v53, %v6584_v22  ;;  %v12355_v53 = vld [vmem:[%s12637_s15 + $0x78] sm:$0xff]  }
 0x462   : > { %10480 = vmatmul.mubr.msk.bf16.gmra.mrb[80].mxu0 %vm454_vm2, %v6171_v5  ;;  %10489 = vmatmul.mubr.msk.bf16.gmra.mrb[80].mxu1 %vm454_vm2, %v6171_v5  ;;  %v6576_v5 = vrot.slane %v12343_v26, 2 }
 0x463   : > { %6305 = vmatprep.mubr.bf16.mxu0 %v14640_v31  ;;  %6418 = vmatprep.mubr.bf16.mxu1 %v14640_v31 }
 0x464   : > { %v6577_v6 = vsel %vm2378_vm5, %v6574_v19, %v6576_v5  ;;  %v6579_v56 = vsel %vm2378_vm5, %v6576_v5, %v6578_v52  ;;  %v6964_v19 = vrot.slane %v12350_v16, 2  ;;  %v12352_v5 = vld [vmem:[%s12637_s15 + $0x60] sm:$0xff]   ;;  %v12360_v16 = vld [vmem:[%s12637_s15 + $0x58] sm:$0xff]  }
 0x46a   : > { %10481 = vmatmul.mubr.msk.bf16.gmra.mrb[84].mxu0 %vm454_vm2, %v6180_v61  ;;  %10490 = vmatmul.mubr.msk.bf16.gmra.mrb[84].mxu1 %vm454_vm2, %v6180_v61  ;;  %v6581_v61 = vsel %vm2378_vm5, %v6578_v52, %v6580_v7  ;;  %v12353_v52 = vld [vmem:[%s12637_s15 + $0x68] sm:$0xff]   ;;  %v12354_v7 = vld [vmem:[%s12637_s15 + $0x70] sm:$0xff]  }
 0x46b   : > { %6315 = vmatprep.mubr.bf16.mxu0 %v14640_v31  ;;  %6428 = vmatprep.mubr.bf16.mxu1 %v14640_v31 }
 0x472   : > { %10482 = vmatmul.mubr.msk.bf16.gmra.mrb[88].mxu0 %vm454_vm2, %v6189_v62  ;;  %10491 = vmatmul.mubr.msk.bf16.gmra.mrb[88].mxu1 %vm454_vm2, %v6189_v62  ;;  %v12348_v62 = vld [vmem:[%s12637_s15 + $0x80] sm:$0xff]  }
 0x473   : > { %6325 = vmatprep.mubr.bf16.mxu0 %v14640_v31  ;;  %6438 = vmatprep.mubr.bf16.mxu1 %v14640_v31  ;;  %v6586_v60 = vrot.slane %v12348_v62, 2 }
 0x475   : > { %v6587_v27 = vsel %vm2378_vm5, %v6584_v22, %v6586_v60  ;;  %v12356_v22 = vld [vmem:[%s12637_s15 + $0x80] sm:$0xff]  }
 0x47a   : > { %10483 = vmatmul.mubr.msk.bf16.gmra.mrb[92].mxu0 %vm454_vm2, %v6198_v43  ;;  %10492 = vmatmul.mubr.msk.bf16.gmra.mrb[92].mxu1 %vm454_vm2, %v6198_v43  ;;  %v6588_v43 = vrot.slane %v12349_v25, 2  ;;  %v12358_v25 = vld [vmem:[%s12637_s15 + $0x90] ss:$0 sps:$4 sm:$0x33]  }
 0x47b   : > { %6646 = vmatprep.mubr.bf16.mxu0 %v14640_v31  ;;  %6759 = vmatprep.mubr.bf16.mxu1 %v14640_v31 }
 0x47c   : > { %v6589_v63 = vsel %vm2378_vm5, %v6586_v60, %v6588_v43  ;;  %v12357_v60 = vld [vmem:[%s12637_s15 + $0x88] sm:$0xff]  }
 0x482   : > { %10503 = vmatmul.mubr.msk.bf16.vlgmr.msra.gmra.mrb[64].mxu0 %vm454_vm2, %v6575_v42  ;;  %10512 = vmatmul.mubr.msk.bf16.vlgmr.msra.gmra.mrb[64].mxu1 %vm454_vm2, %v6575_v42  ;;  %v6965_v42 = vrot.slane %v12351_v15, 2  ;;  %v6979_v15 = vrot.slane %v12358_v25, 2 }
 0x483   : > { %7006 = vmatpush1.bf16.msra.mxu0 %v13095_v8  ;;  %7119 = vmatpush1.bf16.msra.mxu1 %v13099_v9 }
 0x484   : > { %6656 = vmatprep.mubr.bf16.mxu0 %v14640_v31  ;;  %6769 = vmatprep.mubr.bf16.mxu1 %v14640_v31  ;;  %v6966_v26 = vsel %vm2378_vm5, %v6964_v19, %v6965_v42 }
 0x485   : > { %10556 = vmatprep.subr.msk.bf16.mxu0 %vm479_vm0, %v13103_v11  ;;  %10565 = vmatprep.subr.msk.bf16.mxu1 %vm479_vm0, %v13107_v12 }
 0x48a   : > { %10504 = vmatmul.mubr.msk.bf16.gmra.mrb[68].mxu0 %vm454_vm2, %v6577_v6  ;;  %10513 = vmatmul.mubr.msk.bf16.gmra.mrb[68].mxu1 %vm454_vm2, %v6577_v6  ;;  %v6967_v6 = vrot.slane %v12352_v5, 2  ;;  %v7367_v5 = vshll.u32 %v12360_v16, 16 }
 0x48b   : > { %6666 = vmatprep.mubr.bf16.mxu0 %v14640_v31  ;;  %6779 = vmatprep.mubr.bf16.mxu1 %v14640_v31 }
 0x48c   : > { %v6968_v17 = vsel %vm2378_vm5, %v6965_v42, %v6967_v6 }
 0x492   : > { %10505 = vmatmul.mubr.msk.bf16.gmra.mrb[72].mxu0 %vm454_vm2, %v6579_v56  ;;  %10514 = vmatmul.mubr.msk.bf16.gmra.mrb[72].mxu1 %vm454_vm2, %v6579_v56  ;;  %v6969_v56 = vrot.slane %v12353_v52, 2 }
 0x493   : > { %6676 = vmatprep.mubr.bf16.mxu0 %v14640_v31  ;;  %6789 = vmatprep.mubr.bf16.mxu1 %v14640_v31 }
 0x494   : > { %v6970_v3 = vsel %vm2378_vm5, %v6967_v6, %v6969_v56 }
 0x49a   : > { %10506 = vmatmul.mubr.msk.bf16.gmra.mrb[76].mxu0 %vm454_vm2, %v6581_v61  ;;  %10515 = vmatmul.mubr.msk.bf16.gmra.mrb[76].mxu1 %vm454_vm2, %v6581_v61  ;;  %v6971_v61 = vrot.slane %v12354_v7, 2  ;;  %v12361_v7 = vld [vmem:[%s12637_s15 + $0x60] sm:$0xff]  }
 0x49b   : > { %6686 = vmatprep.mubr.bf16.mxu0 %v14640_v31  ;;  %6799 = vmatprep.mubr.bf16.mxu1 %v14640_v31 }
 0x49c   : > { %v6972_v0 = vsel %vm2378_vm5, %v6969_v56, %v6971_v61 }
 0x4a2   : > { %10507 = vmatmul.mubr.msk.bf16.gmra.mrb[80].mxu0 %vm454_vm2, %v6583_v32  ;;  %10516 = vmatmul.mubr.msk.bf16.gmra.mrb[80].mxu1 %vm454_vm2, %v6583_v32  ;;  %v6973_v32 = vrot.slane %v12355_v53, 2  ;;  %v7373_v53 = vshrl.u32 %v12361_v7, 16 }
 0x4a3   : > { %6696 = vmatprep.mubr.bf16.mxu0 %v14640_v31  ;;  %6809 = vmatprep.mubr.bf16.mxu1 %v14640_v31 }
 0x4a4   : > { %v6974_v2 = vsel %vm2378_vm5, %v6971_v61, %v6973_v32 }
 0x4aa   : > { %10508 = vmatmul.mubr.msk.bf16.gmra.mrb[84].mxu0 %vm454_vm2, %v6585_v57  ;;  %10517 = vmatmul.mubr.msk.bf16.gmra.mrb[84].mxu1 %vm454_vm2, %v6585_v57  ;;  %v6975_v57 = vrot.slane %v12356_v22, 2  ;;  %v7375_v22 = vrot.slane %v7373_v53, 2 }
 0x4ab   : > { %6706 = vmatprep.mubr.bf16.mxu0 %v14640_v31  ;;  %6819 = vmatprep.mubr.bf16.mxu1 %v14640_v31 }
 0x4ac   : > { %v6976_v62 = vsel %vm2378_vm5, %v6973_v32, %v6975_v57  ;;  %v7376_v32 = vshll.u32 %v12361_v7, 16 }
 0x4b2   : > { %10509 = vmatmul.mubr.msk.bf16.gmra.mrb[88].mxu0 %vm454_vm2, %v6587_v27  ;;  %10518 = vmatmul.mubr.msk.bf16.gmra.mrb[88].mxu1 %vm454_vm2, %v6587_v27  ;;  %v6977_v27 = vrot.slane %v12357_v60, 2 }
 0x4b3   : > { %6716 = vmatprep.mubr.bf16.mxu0 %v14640_v31  ;;  %6829 = vmatprep.mubr.bf16.mxu1 %v14640_v31 }
 0x4b4   : > { %v6978_v43 = vsel %vm2378_vm5, %v6975_v57, %v6977_v27  ;;  %v6980_v6 = vsel %vm2378_vm5, %v6977_v27, %v6979_v15  ;;  %v7378_v57 = vrot.slane %v7376_v32, 3 }
 0x4b6   : > { %v7379_v60 = vor.u32 %v7378_v57, %v7375_v22  ;;  %v12365_v22 = vld [vmem:[%s12637_s15 + $0x80] sm:$0xff]  }
 0x4ba   : > { %10510 = vmatmul.mubr.msk.bf16.gmra.mrb[92].mxu0 %vm454_vm2, %v6589_v63  ;;  %10519 = vmatmul.mubr.msk.bf16.gmra.mrb[92].mxu1 %vm454_vm2, %v6589_v63  ;;  %v12359_v63 = vld [vmem:[%s12637_s15 + $0x50] sm:$0xfc]  }
 0x4bb   : > { %7037 = vmatprep.mubr.bf16.mxu0 %v14640_v31  ;;  %7150 = vmatprep.mubr.bf16.mxu1 %v14640_v31  ;;  %v7356_v19 = vshrl.u32 %v12359_v63, 16  ;;  %v7359_v42 = vshll.u32 %v12359_v63, 16  ;;  %v12402_v63 = vld [vmem:[%s14627_s3 + $0xc0] sm:$0xff]  }
 0x4bd   : > { %v7361_v52 = vrot.slane %v7359_v42, 3  ;;  %v12363_v42 = vld [vmem:[%s12637_s15 + $0x70] sm:$0xff]  }
 0x4c2   : > { %10530 = vmatmul.mubr.msk.bf16.vlgmr.msra.gmra.mrb[64].mxu0 %vm454_vm2, %v6966_v26  ;;  %10539 = vmatmul.mubr.msk.bf16.vlgmr.msra.gmra.mrb[64].mxu1 %vm454_vm2, %v6966_v26  ;;  %v7364_v26 = vshrl.u32 %v12360_v16, 16 }
 0x4c3   : > { %7460 = vmatpush1.bf16.msra.mxu0 %v13175_v28  ;;  %7573 = vmatpush1.bf16.msra.mxu1 %v13179_v13 }
 0x4c4   : > { %7047 = vmatprep.mubr.bf16.mxu0 %v14640_v31  ;;  %7160 = vmatprep.mubr.bf16.mxu1 %v14640_v31  ;;  %v7366_v56 = vrot.slane %v7364_v26, 2 }
 0x4c5   : > { %10583 = vmatprep.subr.msk.bf16.mxu0 %vm479_vm0, %v13183_v14  ;;  %10592 = vmatprep.subr.msk.bf16.mxu1 %vm479_vm0, %v13187_v10 }
 0x4ca   : > { %10531 = vmatmul.mubr.msk.bf16.gmra.mrb[68].mxu0 %vm454_vm2, %v6968_v17  ;;  %10540 = vmatmul.mubr.msk.bf16.gmra.mrb[68].mxu1 %vm454_vm2, %v6968_v17  ;;  %v7358_v17 = vrot.slane %v7356_v19, 2 }
 0x4cb   : > { %7057 = vmatprep.mubr.bf16.mxu0 %v14640_v31  ;;  %7170 = vmatprep.mubr.bf16.mxu1 %v14640_v31 }
 0x4cc   : > { %v7362_v61 = vor.u32 %v7361_v52, %v7358_v17 }
 0x4d2   : > { %10532 = vmatmul.mubr.msk.bf16.gmra.mrb[72].mxu0 %vm454_vm2, %v6970_v3  ;;  %10541 = vmatmul.mubr.msk.bf16.gmra.mrb[72].mxu1 %vm454_vm2, %v6970_v3  ;;  %v7369_v3 = vrot.slane %v7367_v5, 3  ;;  %v7391_v5 = vshrl.u32 %v12363_v42, 16 }
 0x4d3   : > { %7067 = vmatprep.mubr.bf16.mxu0 %v14640_v31  ;;  %7180 = vmatprep.mubr.bf16.mxu1 %v14640_v31 }
 0x4d4   : > { %v7393_v52 = vrot.slane %v7391_v5, 2 }
 0x4da   : > { %10533 = vmatmul.mubr.msk.bf16.gmra.mrb[76].mxu0 %vm454_vm2, %v6972_v0  ;;  %10542 = vmatmul.mubr.msk.bf16.gmra.mrb[76].mxu1 %vm454_vm2, %v6972_v0  ;;  %v7370_v0 = vor.u32 %v7369_v3, %v7366_v56  ;;  %v12364_v3 = vld [vmem:[%s12637_s15 + $0x78] sm:$0xff]  }
 0x4db   : > { %7077 = vmatprep.mubr.bf16.mxu0 %v14640_v31  ;;  %7190 = vmatprep.mubr.bf16.mxu1 %v14640_v31 }
 0x4dc   : > { %v7380_v16 = vsel %vm3221_vm6, %v7370_v0, %v7379_v60 }
 0x4e2   : > { %10534 = vmatmul.mubr.msk.bf16.gmra.mrb[80].mxu0 %vm454_vm2, %v6974_v2  ;;  %10543 = vmatmul.mubr.msk.bf16.gmra.mrb[80].mxu1 %vm454_vm2, %v6974_v2  ;;  %v7371_v2 = vsel %vm3221_vm6, %v7362_v61, %v7370_v0  ;;  %v7400_v61 = vshrl.u32 %v12364_v3, 16  ;;  %v7403_v0 = vshll.u32 %v12364_v3, 16 }
 0x4e3   : > { %7087 = vmatprep.mubr.bf16.mxu0 %v14640_v31  ;;  %7200 = vmatprep.mubr.bf16.mxu1 %v14640_v31 }
 0x4e4   : > { %v7402_v32 = vrot.slane %v7400_v61, 2 }
 0x4ea   : > { %10535 = vmatmul.mubr.msk.bf16.gmra.mrb[84].mxu0 %vm454_vm2, %v6976_v62  ;;  %10544 = vmatmul.mubr.msk.bf16.gmra.mrb[84].mxu1 %vm454_vm2, %v6976_v62  ;;  %v12362_v62 = vld [vmem:[%s12637_s15 + $0x68] sm:$0xff]  }
 0x4eb   : > { %7097 = vmatprep.mubr.bf16.mxu0 %v14640_v31  ;;  %7210 = vmatprep.mubr.bf16.mxu1 %v14640_v31  ;;  %v7382_v27 = vshrl.u32 %v12362_v62, 16  ;;  %v7385_v25 = vshll.u32 %v12362_v62, 16  ;;  %v7409_v62 = vshrl.u32 %v12365_v22, 16 }
 0x4ed   : > { %v7384_v15 = vrot.slane %v7382_v27, 2  ;;  %v7387_v19 = vrot.slane %v7385_v25, 3  ;;  %v7411_v25 = vrot.slane %v7409_v62, 2 }
 0x4ef   : > { %v7388_v26 = vor.u32 %v7387_v19, %v7384_v15 }
 0x4f1   : > { %v7389_v17 = vsel %vm3221_vm6, %v7379_v60, %v7388_v26  ;;  %v7412_v60 = vshll.u32 %v12365_v22, 16 }
 0x4f2   : > { %10536 = vmatmul.mubr.msk.bf16.gmra.mrb[88].mxu0 %vm454_vm2, %v6978_v43  ;;  %10545 = vmatmul.mubr.msk.bf16.gmra.mrb[88].mxu1 %vm454_vm2, %v6978_v43  ;;  %v12401_v43 = vld [vmem:[%s14627_s3 + $0x40] sm:$0xff]  }
 0x4f3   : > { %7107 = vmatprep.mubr.bf16.mxu0 %v14640_v31  ;;  %7220 = vmatprep.mubr.bf16.mxu1 %v14640_v31 }
 0x4fa   : > { %10537 = vmatmul.mubr.msk.bf16.gmra.mrb[92].mxu0 %vm454_vm2, %v6980_v6  ;;  %10546 = vmatmul.mubr.msk.bf16.gmra.mrb[92].mxu1 %vm454_vm2, %v6980_v6  ;;  %v7394_v6 = vshll.u32 %v12363_v42, 16 }
 0x4fb   : > { %7491 = vmatprep.mubr.bf16.mxu0 %v14640_v31  ;;  %7604 = vmatprep.mubr.bf16.mxu1 %v14640_v31 }
 0x4fc   : > { %v7396_v56 = vrot.slane %v7394_v6, 3  ;;  %v12367_v6 = vld [vmem:[%s12637_s15 + $0x90] ss:$0 sps:$4 sm:$0x77]  }
 0x4fe   : > { %v7397_v7 = vor.u32 %v7396_v56, %v7393_v52  ;;  %v7427_v52 = vshrl.u32 %v12367_v6, 16  ;;  %v7430_v56 = vshll.u32 %v12367_v6, 16  ;;  %v12410_v6 = vld [vmem:[%s14627_s3 + $0xd0] sm:$0xff]  }
 0x500   : > { %v7398_v53 = vsel %vm3221_vm6, %v7388_v26, %v7397_v7  ;;  %v7432_v61 = vrot.slane %v7430_v56, 3  ;;  %v12412_v56 = vld [vmem:[%s14627_s3 + $0x90] sm:$0xff]  }
 0x502   : > { %10557 = vmatmul.mubr.msk.bf16.vlgmr.msra.gmra.mrb[64].mxu0 %vm454_vm2, %v7371_v2  ;;  %10566 = vmatmul.mubr.msk.bf16.vlgmr.msra.gmra.mrb[64].mxu1 %vm454_vm2, %v7371_v2  ;;  %v7405_v2 = vrot.slane %v7403_v0, 3 }
 0x503   : > { %7851 = vmatpush1.bf16.msra.mxu0 %v13247_v54  ;;  %7964 = vmatpush1.bf16.msra.mxu1 %v13251_v55 }
 0x504   : > { %7501 = vmatprep.mubr.bf16.mxu0 %v14640_v31  ;;  %7614 = vmatprep.mubr.bf16.mxu1 %v14640_v31  ;;  %v7406_v57 = vor.u32 %v7405_v2, %v7402_v32  ;;  %v12368_v32 = vld [vmem:[%s12637_s15 + $0x50] sm:$0xf8]   ;;  %v12369_v2 = vld [vmem:[%s12637_s15 + $0x58] sm:$0xff]  }
 0x505   : > { %10810 = vmatprep.subr.bf16.mxu0 %v12401_v43  ;;  %10874 = vmatprep.subr.bf16.mxu1 %v12402_v63  ;;  %v7414_v43 = vrot.slane %v7412_v60, 3  ;;  %v12366_v63 = vld [vmem:[%s12637_s15 + $0x88] sm:$0xff]   ;;  %v7809_v22 = vrot.slane %v12368_v32, 3  ;;  %v12370_v60 = vld [vmem:[%s12637_s15 + $0x60] sm:$0xff]   ;;  %v12416_v32 = vld [vmem:[%s14627_s3 + $0x98] sm:$0xff]  }
 0x506   : > { %v7407_v27 = vsel %vm3221_vm6, %v7397_v7, %v7406_v57  ;;  %v7418_v15 = vshrl.u32 %v12366_v63, 16  ;;  %v7421_v19 = vshll.u32 %v12366_v63, 16  ;;  %v7429_v7 = vrot.slane %v7427_v52, 2  ;;  %v12405_v63 = vld [vmem:[%s14627_s3 + $0x48] sm:$0xff]   ;;  %v12411_v52 = vld [vmem:[%s14627_s3 + $0x10] sm:$0xff]  }
 0x508   : > { %v7420_v26 = vrot.slane %v7418_v15, 2  ;;  %v7423_v5 = vrot.slane %v7421_v19, 3  ;;  %v7433_v0 = vor.u32 %v7432_v61, %v7429_v7  ;;  %v12371_v19 = vld [vmem:[%s12637_s15 + $0x68] sm:$0xff]   ;;  %v12414_v7 = vld [vmem:[%s14627_s3 + $0xd8] sm:$0xff]  }
 0x50a   : > { %10558 = vmatmul.mubr.msk.bf16.gmra.mrb[68].mxu0 %vm454_vm2, %v7380_v16  ;;  %10567 = vmatmul.mubr.msk.bf16.gmra.mrb[68].mxu1 %vm454_vm2, %v7380_v16  ;;  %v7415_v16 = vor.u32 %v7414_v43, %v7411_v25  ;;  %v12403_v25 = vld [vmem:[%s14627_s3] sm:$0xff]  }
 0x50b   : > { %7511 = vmatprep.mubr.bf16.mxu0 %v14640_v31  ;;  %7624 = vmatprep.mubr.bf16.mxu1 %v14640_v31  ;;  %v12404_v43 = vld [vmem:[%s14627_s3 + $0x80] sm:$0xff]  }
 0x50c   : > { %v7416_v42 = vsel %vm3221_vm6, %v7406_v57, %v7415_v16  ;;  %v7810_v57 = vrot.slane %v12369_v2, 3  ;;  %v12417_v2 = vld [vmem:[%s14627_s3 + $0x60] sm:$0xff]  }
 0x50e   : > { %v7811_v62 = vsel %vm3706_vm7, %v7809_v22, %v7810_v57  ;;  %v12418_v22 = vld [vmem:[%s14627_s3 + $0xe0] sm:$0xff]  }
 0x512   : > { %10559 = vmatmul.mubr.msk.bf16.gmra.mrb[72].mxu0 %vm454_vm2, %v7389_v17  ;;  %10568 = vmatmul.mubr.msk.bf16.gmra.mrb[72].mxu1 %vm454_vm2, %v7389_v17  ;;  %v7424_v17 = vor.u32 %v7423_v5, %v7420_v26  ;;  %v12408_v26 = vld [vmem:[%s14627_s3 + $0x88] sm:$0xff]   ;;  %v12409_v5 = vld [vmem:[%s14627_s3 + $0x50] sm:$0xff]  }
 0x513   : > { %7521 = vmatprep.mubr.bf16.mxu0 %v14640_v31  ;;  %7634 = vmatprep.mubr.bf16.mxu1 %v14640_v31 }
 0x514   : > { %v7425_v3 = vsel %vm3221_vm6, %v7415_v16, %v7424_v17  ;;  %v12406_v16 = vld [vmem:[%s14627_s3 + $0xc8] sm:$0xff]  }
 0x51a   : > { %10560 = vmatmul.mubr.msk.bf16.gmra.mrb[76].mxu0 %vm454_vm2, %v7398_v53  ;;  %10569 = vmatmul.mubr.msk.bf16.gmra.mrb[76].mxu1 %vm454_vm2, %v7398_v53  ;;  %v7434_v53 = vsel %vm3221_vm6, %v7424_v17, %v7433_v0  ;;  %v7814_v17 = vrot.slane %v12371_v19, 3  ;;  %v12372_v0 = vld [vmem:[%s12637_s15 + $0x70] sm:$0xff]  }
 0x51b   : > { %7531 = vmatprep.mubr.bf16.mxu0 %v14640_v31  ;;  %7644 = vmatprep.mubr.bf16.mxu1 %v14640_v31  ;;  %v12425_v19 = vld [vmem:[%s14627_s3 + $0x70] sm:$0xff]  }
 0x522   : > { %10561 = vmatmul.mubr.msk.bf16.gmra.mrb[80].mxu0 %vm454_vm2, %v7407_v27  ;;  %10570 = vmatmul.mubr.msk.bf16.gmra.mrb[80].mxu1 %vm454_vm2, %v7407_v27  ;;  %v7812_v27 = vrot.slane %v12370_v60, 3  ;;  %v12420_v60 = vld [vmem:[%s14627_s3 + $0xa0] sm:$0xff]  }
 0x523   : > { %7541 = vmatprep.mubr.bf16.mxu0 %v14640_v31  ;;  %7654 = vmatprep.mubr.bf16.mxu1 %v14640_v31 }
 0x524   : > { %v7813_v15 = vsel %vm3706_vm7, %v7810_v57, %v7812_v27  ;;  %v7815_v61 = vsel %vm3706_vm7, %v7812_v27, %v7814_v17  ;;  %v7816_v57 = vrot.slane %v12372_v0, 3  ;;  %v12421_v27 = vld [vmem:[%s14627_s3 + $0x68] sm:$0xff]   ;;  %v14641_v0 = vld [vmem:[#allocation5_spill] sm:$0xff] }
 0x52a   : > { %10562 = vmatmul.mubr.msk.bf16.gmra.mrb[84].mxu0 %vm454_vm2, %v7416_v42  ;;  %10571 = vmatmul.mubr.msk.bf16.gmra.mrb[84].mxu1 %vm454_vm2, %v7416_v42  ;;  %v12407_v42 = vld [vmem:[%s14627_s3 + $0x8] sm:$0xff]  }
 0x52b   : > { %7551 = vmatprep.mubr.bf16.mxu0 %v14640_v31  ;;  %7664 = vmatprep.mubr.bf16.mxu1 %v14640_v31 }
 0x532   : > { %10563 = vmatmul.mubr.msk.bf16.gmra.mrb[88].mxu0 %vm454_vm2, %v7425_v3  ;;  %10572 = vmatmul.mubr.msk.bf16.gmra.mrb[88].mxu1 %vm454_vm2, %v7425_v3  ;;  %v12413_v3 = vld [vmem:[%s14627_s3 + $0x58] sm:$0xff]  }
 0x533   : > { %7561 = vmatprep.mubr.bf16.mxu0 %v14640_v31  ;;  %7674 = vmatprep.mubr.bf16.mxu1 %v14640_v31 }
 0x53a   : > { %10564 = vmatmul.mubr.msk.bf16.gmra.mrb[92].mxu0 %vm454_vm2, %v7434_v53  ;;  %10573 = vmatmul.mubr.msk.bf16.gmra.mrb[92].mxu1 %vm454_vm2, %v7434_v53  ;;  %v12415_v53 = vld [vmem:[%s14627_s3 + $0x18] sm:$0xff]  }
 0x53b   : > { %7882 = vmatprep.mubr.bf16.mxu0 %v14640_v31  ;;  %7995 = vmatprep.mubr.bf16.mxu1 %v14640_v31 }
 0x542   : > { %10584 = vmatmul.mubr.msk.bf16.vlgmr.msra.gmra.mrb[64].mxu0 %vm454_vm2, %v7811_v62  ;;  %10593 = vmatmul.mubr.msk.bf16.vlgmr.msra.gmra.mrb[64].mxu1 %vm454_vm2, %v7811_v62  ;;  %v12419_v62 = vld [vmem:[%s14627_s3 + $0x20] sm:$0xff]  }
 0x543   : > { %7892 = vmatprep.mubr.bf16.mxu0 %v14640_v31  ;;  %8005 = vmatprep.mubr.bf16.mxu1 %v14640_v31 }
 0x544   : > { %10811 = vmatpush3.bf16.msra.mxu0 %v12403_v25  ;;  %10875 = vmatpush3.bf16.msra.mxu1 %v12404_v43  ;;  %v12422_v25 = vld [vmem:[%s14627_s3 + $0xe8] sm:$0xff]   ;;  %v7817_v43 = vsel %vm3706_vm7, %v7814_v17, %v7816_v57  ;;  %v12429_v17 = vld [vmem:[%s14627_s3 + $0x78] sm:$0xff]  }
 0x545   : > { %10812 = vmatprep.subr.bf16.mxu0 %v12405_v63  ;;  %10876 = vmatprep.subr.bf16.mxu1 %v12406_v16  ;;  %v12373_v63 = vld [vmem:[%s12637_s15 + $0x78] sm:$0xff]   ;;  %v12423_v16 = vld [vmem:[%s14627_s3 + $0x28] sm:$0xff]  }
 0x548   : > { %10813 = vmatpush3.bf16.msra.mxu0 %v12407_v42  ;;  %10877 = vmatpush3.bf16.msra.mxu1 %v12408_v26  ;;  %v12426_v42 = vld [vmem:[%s14627_s3 + $0xf0] sm:$0xff]   ;;  %v7818_v26 = vrot.slane %v12373_v63, 3 }
 0x549   : > { %10814 = vmatprep.subr.bf16.mxu0 %v12409_v5  ;;  %10878 = vmatprep.subr.bf16.mxu1 %v12410_v6  ;;  %v12427_v5 = vld [vmem:[%s14627_s3 + $0x30] sm:$0xff]  }
 0x54a   : > { %10585 = vmatmul.mubr.msk.bf16.gmra.mrb[68].mxu0 %vm454_vm2, %v7813_v15  ;;  %10594 = vmatmul.mubr.msk.bf16.gmra.mrb[68].mxu1 %vm454_vm2, %v7813_v15  ;;  %v12424_v15 = vld [vmem:[%s14627_s3 + $0xa8] sm:$0xff]   ;;  %v12428_v6 = vld [vmem:[%s14627_s3 + $0xb0] sm:$0xff]  }
 0x54b   : > { %7902 = vmatprep.mubr.bf16.mxu0 %v14640_v31  ;;  %8015 = vmatprep.mubr.bf16.mxu1 %v14640_v31 }
 0x54c   : > { %10815 = vmatpush3.bf16.msra.mxu0 %v12411_v52  ;;  %10879 = vmatpush3.bf16.msra.mxu1 %v12412_v56  ;;  %v12430_v52 = vld [vmem:[%s14627_s3 + $0xf8] sm:$0xff]   ;;  %v7819_v56 = vsel %vm3706_vm7, %v7816_v57, %v7818_v26 }
 0x54d   : > { %10816 = vmatprep.subr.bf16.mxu0 %v12413_v3  ;;  %10880 = vmatprep.subr.bf16.mxu1 %v12414_v7  ;;  %v12374_v3 = vld [vmem:[%s12637_s15 + $0x80] sm:$0xff]   ;;  %v12431_v7 = vld [vmem:[%s14627_s3 + $0x38] sm:$0xff]  }
 0x550   : > { %10817 = vmatpush3.bf16.msra.mxu0 %v12415_v53  ;;  %10881 = vmatpush3.bf16.msra.mxu1 %v12416_v32  ;;  %v14642_v53 = vld [vmem:[#allocation6_spill] sm:$0xff]  ;;  %v7820_v32 = vrot.slane %v12374_v3, 3 }
 0x551   : > { %10818 = vmatprep.subr.bf16.mxu0 %v12417_v2  ;;  %10882 = vmatprep.subr.bf16.mxu1 %v12418_v22  ;;  %v12375_v22 = vld [vmem:[%s12637_s15 + $0x88] sm:$0xff]  }
 0x552   : > { %10586 = vmatmul.mubr.msk.bf16.gmra.mrb[72].mxu0 %vm454_vm2, %v7815_v61  ;;  %10595 = vmatmul.mubr.msk.bf16.gmra.mrb[72].mxu1 %vm454_vm2, %v7815_v61  ;;  %v12432_v61 = vld [vmem:[%s14627_s3 + $0xb8] sm:$0xff]   ;;  %v7821_v2 = vsel %vm3706_vm7, %v7818_v26, %v7820_v32  ;;  %v7822_v57 = vrot.slane %v12375_v22, 3 }
 0x553   : > { %7912 = vmatprep.mubr.bf16.mxu0 %v14640_v31  ;;  %8025 = vmatprep.mubr.bf16.mxu1 %v14640_v31 }
 0x554   : > { %10819 = vmatpush3.bf16.msra.mxu0 %v12419_v62  ;;  %10883 = vmatpush3.bf16.msra.mxu1 %v12420_v60  ;;  %v7823_v62 = vsel %vm3706_vm7, %v7820_v32, %v7822_v57  ;;  %v12376_v60 = vld [vmem:[%s12637_s15 + $0x90] ss:$0 sps:$4 sm:$0x77]  }
 0x555   : > { %10820 = vmatprep.subr.bf16.mxu0 %v12421_v27  ;;  %10884 = vmatprep.subr.bf16.mxu1 %v12422_v25  ;;  %v7824_v27 = vrot.slane %v12376_v60, 3 }
 0x557   : > { %v7825_v25 = vsel %vm3706_vm7, %v7822_v57, %v7824_v27 }
 0x558   : > { %10821 = vmatpush3.bf16.msra.mxu0 %v12423_v16  ;;  %10885 = vmatpush3.bf16.msra.mxu1 %v12424_v15 }
 0x559   : > { %10822 = vmatprep.subr.bf16.mxu0 %v12425_v19  ;;  %10886 = vmatprep.subr.bf16.mxu1 %v12426_v42 }
 0x55a   : > { %10587 = vmatmul.mubr.msk.bf16.gmra.mrb[76].mxu0 %vm454_vm2, %v7817_v43  ;;  %10596 = vmatmul.mubr.msk.bf16.gmra.mrb[76].mxu1 %vm454_vm2, %v7817_v43 }
 0x55b   : > { %7922 = vmatprep.mubr.bf16.mxu0 %v14640_v31  ;;  %8035 = vmatprep.mubr.bf16.mxu1 %v14640_v31 }
 0x55c   : > { %10823 = vmatpush3.bf16.msra.mxu0 %v12427_v5  ;;  %10887 = vmatpush3.bf16.msra.mxu1 %v12428_v6 }
 0x55d   : > { %10824 = vmatprep.subr.bf16.mxu0 %v12429_v17  ;;  %10888 = vmatprep.subr.bf16.mxu1 %v12430_v52 }
 0x560   : > { %10825 = vmatpush3.bf16.msra.mxu0 %v12431_v7  ;;  %10889 = vmatpush3.bf16.msra.mxu1 %v12432_v61 }
 0x561   : > { %10604 = vmatprep.subr.msk.bf16.mxu0 %vm479_vm0, %v14641_v0  ;;  %10607 = vmatprep.subr.msk.bf16.mxu1 %vm479_vm0, %v14642_v53 }
 0x562   : > { %10588 = vmatmul.mubr.msk.bf16.gmra.mrb[80].mxu0 %vm454_vm2, %v7819_v56  ;;  %10597 = vmatmul.mubr.msk.bf16.gmra.mrb[80].mxu1 %vm454_vm2, %v7819_v56 }
 0x563   : > { %7932 = vmatprep.mubr.bf16.mxu0 %v14640_v31  ;;  %8045 = vmatprep.mubr.bf16.mxu1 %v14640_v31 }
 0x56a   : > { %10589 = vmatmul.mubr.msk.bf16.gmra.mrb[84].mxu0 %vm454_vm2, %v7821_v2  ;;  %10598 = vmatmul.mubr.msk.bf16.gmra.mrb[84].mxu1 %vm454_vm2, %v7821_v2 }
 0x56b   : > { %7942 = vmatprep.mubr.bf16.mxu0 %v14640_v31  ;;  %8055 = vmatprep.mubr.bf16.mxu1 %v14640_v31 }
 0x572   : > { %10590 = vmatmul.mubr.msk.bf16.gmra.mrb[88].mxu0 %vm454_vm2, %v7823_v62  ;;  %10599 = vmatmul.mubr.msk.bf16.gmra.mrb[88].mxu1 %vm454_vm2, %v7823_v62 }
 0x573   : > { %7952 = vmatprep.mubr.bf16.mxu0 %v14640_v31  ;;  %8065 = vmatprep.mubr.bf16.mxu1 %v14640_v31 }
 0x57a   : > { %10591 = vmatmul.mubr.msk.bf16.gmra.mrb[92].mxu0 %vm454_vm2, %v7825_v25  ;;  %10600 = vmatmul.mubr.msk.bf16.gmra.mrb[92].mxu1 %vm454_vm2, %v7825_v25 }
 0x615   : > { %v7884_v43 = vpop.f32.mrb[64].mxu0  ;;  %v7997_v63 = vpop.f32.mrb[64].mxu1 }
 0x616   : > { %v8140_v16 = vadd.f32 %v7884_v43, %v13453_v1  ;;  %v8142_v15 = vadd.f32 %v7997_v63, %v13455_v4  ;;  %v7886_v19 = vpop.f32.mrb[65].mxu0  ;;  %v7999_v42 = vpop.f32.mrb[65].mxu1 }
 0x617   : > { %v8141_v26 = vadd.f32 %v7886_v19, %v13457_v58  ;;  %v8143_v5 = vadd.f32 %v7999_v42, %v13459_v59  ;;  %v7888_v6 = vpop.f32.mrb[66].mxu0  ;;  %v8001_v17 = vpop.f32.mrb[66].mxu1 }
 0x618   : > { %v8144_v52 = vadd.f32 %v7888_v6, %v13453_v1  ;;  %v8146_v56 = vadd.f32 %v8001_v17, %v13455_v4  ;;  %v7890_v3 = vpop.f32.mrb[67].mxu0  ;;  %v8003_v7 = vpop.f32.mrb[67].mxu1  ;;  %v8204_v53 = vmax.f32 %v8140_v16, 0.0  ;;  %v8206_v32 = vmax.f32 %v8142_v15, 0.0 }
 0x619   : > { %v8145_v61 = vadd.f32 %v7890_v3, %v13457_v58  ;;  %v8147_v0 = vadd.f32 %v8003_v7, %v13459_v59  ;;  %v8205_v57 = vmax.f32 %v8141_v26, 0.0  ;;  %v8207_v62 = vmax.f32 %v8143_v5, 0.0 }
 0x61a   : > { %v8208_v2 = vmax.f32 %v8144_v52, 0.0  ;;  %v8210_v22 = vmax.f32 %v8146_v56, 0.0 }
 0x61b   : > { %v8209_v60 = vmax.f32 %v8145_v61, 0.0  ;;  %v8211_v27 = vmax.f32 %v8147_v0, 0.0 }
 0x61c   : > { %v8268_v25 = vpack.c.bf16 %v8208_v2, %v8204_v53  ;;  %v8270_v43 = vpack.c.bf16 %v8210_v22, %v8206_v32 }
 0x61d   : > { %v8269_v63 = vpack.c.bf16 %v8209_v60, %v8205_v57  ;;  %v8271_v19 = vpack.c.bf16 %v8211_v27, %v8207_v62  ;;  %v7894_v42 = vpop.f32.mrb[68].mxu0  ;;  %v8007_v6 = vpop.f32.mrb[68].mxu1 }
 0x61e   : > { %v8148_v17 = vadd.f32 %v7894_v42, %v13453_v1  ;;  %v8150_v3 = vadd.f32 %v8007_v6, %v13455_v4  ;;  %v7896_v55 = vpop.f32.mrb[69].mxu0  ;;  %v8009_v7 = vpop.f32.mrb[69].mxu1 }
 0x61f   : > { %v8149_v16 = vadd.f32 %v7896_v55, %v13457_v58  ;;  %v8151_v15 = vadd.f32 %v8009_v7, %v13459_v59  ;;  %v7898_v26 = vpop.f32.mrb[70].mxu0  ;;  %v8011_v5 = vpop.f32.mrb[70].mxu1  ;;  %8332 = vmatprep.mubr.bf16.mxu0 %v8269_v63  ;;  %8429 = vmatprep.mubr.bf16.mxu1 %v8271_v19 }
 0x620   : > { %v8152_v52 = vadd.f32 %v7898_v26, %v13453_v1  ;;  %v8154_v56 = vadd.f32 %v8011_v5, %v13455_v4  ;;  %v7900_v61 = vpop.f32.mrb[71].mxu0  ;;  %v8013_v0 = vpop.f32.mrb[71].mxu1  ;;  %8333 = vmatmul.mubr.bf16.vlgmr.msra.gmra.mrb[96].mxu0 %v8268_v25  ;;  %8430 = vmatmul.mubr.bf16.vlgmr.msra.gmra.mrb[96].mxu1 %v8270_v43  ;;  %v8212_v55 = vmax.f32 %v8148_v17, 0.0  ;;  %v8214_v2 = vmax.f32 %v8150_v3, 0.0 }
 0x621   : > { %v8153_v53 = vadd.f32 %v7900_v61, %v13457_v58  ;;  %v8155_v32 = vadd.f32 %v8013_v0, %v13459_v59  ;;  %8555 = vmatpush1.bf16.msra.mxu0 %v12643_v18  ;;  %8608 = vmatpush1.bf16.msra.mxu1 %v12648_v20  ;;  %v8213_v62 = vmax.f32 %v8149_v16, 0.0  ;;  %v8215_v60 = vmax.f32 %v8151_v15, 0.0 }
 0x622   : > { %v8216_v22 = vmax.f32 %v8152_v52, 0.0  ;;  %v8218_v57 = vmax.f32 %v8154_v56, 0.0  ;;  %10610 = vmatprep.subr.msk.bf16.mxu0 %vm479_vm0, %v12656_v23  ;;  %10613 = vmatprep.subr.msk.bf16.mxu1 %vm479_vm0, %v12658_v24 }
 0x623   : > { %v8217_v27 = vmax.f32 %v8153_v53, 0.0  ;;  %v8219_v25 = vmax.f32 %v8155_v32, 0.0 }
 0x624   : > { %v8272_v43 = vpack.c.bf16 %v8216_v22, %v8212_v55  ;;  %v8274_v63 = vpack.c.bf16 %v8218_v57, %v8214_v2 }
 0x625   : > { %v8273_v19 = vpack.c.bf16 %v8217_v27, %v8213_v62  ;;  %v8275_v18 = vpack.c.bf16 %v8219_v25, %v8215_v60  ;;  %v7904_v42 = vpop.f32.mrb[72].mxu0  ;;  %v8017_v20 = vpop.f32.mrb[72].mxu1 }
 0x626   : > { %v8156_v6 = vadd.f32 %v7904_v42, %v13453_v1  ;;  %v8158_v17 = vadd.f32 %v8017_v20, %v13455_v4  ;;  %v7906_v3 = vpop.f32.mrb[73].mxu0  ;;  %v8019_v7 = vpop.f32.mrb[73].mxu1 }
 0x627   : > { %v8157_v23 = vadd.f32 %v7906_v3, %v13457_v58  ;;  %v8159_v24 = vadd.f32 %v8019_v7, %v13459_v59  ;;  %v7908_v16 = vpop.f32.mrb[74].mxu0  ;;  %v8021_v15 = vpop.f32.mrb[74].mxu1  ;;  %8340 = vmatprep.mubr.bf16.mxu0 %v8273_v19  ;;  %8437 = vmatprep.mubr.bf16.mxu1 %v8275_v18 }
 0x628   : > { %v8160_v26 = vadd.f32 %v7908_v16, %v13453_v1  ;;  %v8162_v5 = vadd.f32 %v8021_v15, %v13455_v4  ;;  %v7910_v52 = vpop.f32.mrb[75].mxu0  ;;  %v8023_v56 = vpop.f32.mrb[75].mxu1  ;;  %8341 = vmatmul.mubr.bf16.gmra.mrb[100].mxu0 %v8272_v43  ;;  %8438 = vmatmul.mubr.bf16.gmra.mrb[100].mxu1 %v8274_v63  ;;  %v8220_v53 = vmax.f32 %v8156_v6, 0.0  ;;  %v8222_v32 = vmax.f32 %v8158_v17, 0.0 }
 0x629   : > { %v8161_v61 = vadd.f32 %v7910_v52, %v13457_v58  ;;  %v8163_v0 = vadd.f32 %v8023_v56, %v13459_v59  ;;  %v8221_v22 = vmax.f32 %v8157_v23, 0.0  ;;  %v8223_v57 = vmax.f32 %v8159_v24, 0.0 }
 0x62a   : > { %v8224_v55 = vmax.f32 %v8160_v26, 0.0  ;;  %v8226_v2 = vmax.f32 %v8162_v5, 0.0 }
 0x62b   : > { %v8225_v62 = vmax.f32 %v8161_v61, 0.0  ;;  %v8227_v60 = vmax.f32 %v8163_v0, 0.0 }
 0x62c   : > { %v8276_v27 = vpack.c.bf16 %v8224_v55, %v8220_v53  ;;  %v8278_v25 = vpack.c.bf16 %v8226_v2, %v8222_v32 }
 0x62d   : > { %v8277_v19 = vpack.c.bf16 %v8225_v62, %v8221_v22  ;;  %v8279_v18 = vpack.c.bf16 %v8227_v60, %v8223_v57  ;;  %v7914_v42 = vpop.f32.mrb[76].mxu0  ;;  %v8027_v20 = vpop.f32.mrb[76].mxu1 }
 0x62e   : > { %v8164_v43 = vadd.f32 %v7914_v42, %v13453_v1  ;;  %v8166_v63 = vadd.f32 %v8027_v20, %v13455_v4  ;;  %v7916_v3 = vpop.f32.mrb[77].mxu0  ;;  %v8029_v7 = vpop.f32.mrb[77].mxu1 }
 0x62f   : > { %v8165_v6 = vadd.f32 %v7916_v3, %v13457_v58  ;;  %v8167_v17 = vadd.f32 %v8029_v7, %v13459_v59  ;;  %v7918_v23 = vpop.f32.mrb[78].mxu0  ;;  %v8031_v24 = vpop.f32.mrb[78].mxu1  ;;  %8348 = vmatprep.mubr.bf16.mxu0 %v8277_v19  ;;  %8445 = vmatprep.mubr.bf16.mxu1 %v8279_v18 }
 0x630   : > { %v8168_v16 = vadd.f32 %v7918_v23, %v13453_v1  ;;  %v8170_v15 = vadd.f32 %v8031_v24, %v13455_v4  ;;  %v7920_v26 = vpop.f32.mrb[79].mxu0  ;;  %v8033_v5 = vpop.f32.mrb[79].mxu1  ;;  %8349 = vmatmul.mubr.bf16.gmra.mrb[104].mxu0 %v8276_v27  ;;  %8446 = vmatmul.mubr.bf16.gmra.mrb[104].mxu1 %v8278_v25  ;;  %v8228_v61 = vmax.f32 %v8164_v43, 0.0  ;;  %v8230_v0 = vmax.f32 %v8166_v63, 0.0 }
 0x631   : > { %v8169_v52 = vadd.f32 %v7920_v26, %v13457_v58  ;;  %v8171_v56 = vadd.f32 %v8033_v5, %v13459_v59  ;;  %v8229_v55 = vmax.f32 %v8165_v6, 0.0  ;;  %v8231_v2 = vmax.f32 %v8167_v17, 0.0 }
 0x632   : > { %v8232_v53 = vmax.f32 %v8168_v16, 0.0  ;;  %v8234_v32 = vmax.f32 %v8170_v15, 0.0 }
 0x633   : > { %v8233_v22 = vmax.f32 %v8169_v52, 0.0  ;;  %v8235_v57 = vmax.f32 %v8171_v56, 0.0 }
 0x634   : > { %v8280_v62 = vpack.c.bf16 %v8232_v53, %v8228_v61  ;;  %v8282_v60 = vpack.c.bf16 %v8234_v32, %v8230_v0 }
 0x635   : > { %v8281_v19 = vpack.c.bf16 %v8233_v22, %v8229_v55  ;;  %v8283_v18 = vpack.c.bf16 %v8235_v57, %v8231_v2  ;;  %v7924_v42 = vpop.f32.mrb[80].mxu0  ;;  %v8037_v20 = vpop.f32.mrb[80].mxu1 }
 0x636   : > { %v8172_v27 = vadd.f32 %v7924_v42, %v13453_v1  ;;  %v8174_v25 = vadd.f32 %v8037_v20, %v13455_v4  ;;  %v7926_v3 = vpop.f32.mrb[81].mxu0  ;;  %v8039_v7 = vpop.f32.mrb[81].mxu1 }
 0x637   : > { %v8173_v43 = vadd.f32 %v7926_v3, %v13457_v58  ;;  %v8175_v63 = vadd.f32 %v8039_v7, %v13459_v59  ;;  %v7928_v6 = vpop.f32.mrb[82].mxu0  ;;  %v8041_v17 = vpop.f32.mrb[82].mxu1  ;;  %8356 = vmatprep.mubr.bf16.mxu0 %v8281_v19  ;;  %8453 = vmatprep.mubr.bf16.mxu1 %v8283_v18 }
 0x638   : > { %v8176_v23 = vadd.f32 %v7928_v6, %v13453_v1  ;;  %v8178_v24 = vadd.f32 %v8041_v17, %v13455_v4  ;;  %v7930_v16 = vpop.f32.mrb[83].mxu0  ;;  %v8043_v15 = vpop.f32.mrb[83].mxu1  ;;  %8357 = vmatmul.mubr.bf16.gmra.mrb[108].mxu0 %v8280_v62  ;;  %8454 = vmatmul.mubr.bf16.gmra.mrb[108].mxu1 %v8282_v60  ;;  %v8236_v52 = vmax.f32 %v8172_v27, 0.0  ;;  %v8238_v56 = vmax.f32 %v8174_v25, 0.0 }
 0x639   : > { %v8177_v26 = vadd.f32 %v7930_v16, %v13457_v58  ;;  %v8179_v5 = vadd.f32 %v8043_v15, %v13459_v59  ;;  %v8237_v53 = vmax.f32 %v8173_v43, 0.0  ;;  %v8239_v32 = vmax.f32 %v8175_v63, 0.0 }
 0x63a   : > { %v8240_v61 = vmax.f32 %v8176_v23, 0.0  ;;  %v8242_v0 = vmax.f32 %v8178_v24, 0.0 }
 0x63b   : > { %v8241_v55 = vmax.f32 %v8177_v26, 0.0  ;;  %v8243_v2 = vmax.f32 %v8179_v5, 0.0 }
 0x63c   : > { %v8284_v22 = vpack.c.bf16 %v8240_v61, %v8236_v52  ;;  %v8286_v57 = vpack.c.bf16 %v8242_v0, %v8238_v56 }
 0x63d   : > { %v8285_v19 = vpack.c.bf16 %v8241_v55, %v8237_v53  ;;  %v8287_v18 = vpack.c.bf16 %v8243_v2, %v8239_v32  ;;  %v7934_v42 = vpop.f32.mrb[84].mxu0  ;;  %v8047_v20 = vpop.f32.mrb[84].mxu1 }
 0x63e   : > { %v8180_v62 = vadd.f32 %v7934_v42, %v13453_v1  ;;  %v8182_v60 = vadd.f32 %v8047_v20, %v13455_v4  ;;  %v7936_v3 = vpop.f32.mrb[85].mxu0  ;;  %v8049_v7 = vpop.f32.mrb[85].mxu1 }
 0x63f   : > { %v8181_v27 = vadd.f32 %v7936_v3, %v13457_v58  ;;  %v8183_v25 = vadd.f32 %v8049_v7, %v13459_v59  ;;  %v7938_v43 = vpop.f32.mrb[86].mxu0  ;;  %v8051_v63 = vpop.f32.mrb[86].mxu1  ;;  %8364 = vmatprep.mubr.bf16.mxu0 %v8285_v19  ;;  %8461 = vmatprep.mubr.bf16.mxu1 %v8287_v18 }
 0x640   : > { %v8184_v6 = vadd.f32 %v7938_v43, %v13453_v1  ;;  %v8186_v17 = vadd.f32 %v8051_v63, %v13455_v4  ;;  %v7940_v23 = vpop.f32.mrb[87].mxu0  ;;  %v8053_v24 = vpop.f32.mrb[87].mxu1  ;;  %8365 = vmatmul.mubr.bf16.gmra.mrb[112].mxu0 %v8284_v22  ;;  %8462 = vmatmul.mubr.bf16.gmra.mrb[112].mxu1 %v8286_v57  ;;  %v8244_v26 = vmax.f32 %v8180_v62, 0.0  ;;  %v8246_v5 = vmax.f32 %v8182_v60, 0.0 }
 0x641   : > { %v8185_v16 = vadd.f32 %v7940_v23, %v13457_v58  ;;  %v8187_v15 = vadd.f32 %v8053_v24, %v13459_v59  ;;  %v8245_v61 = vmax.f32 %v8181_v27, 0.0  ;;  %v8247_v0 = vmax.f32 %v8183_v25, 0.0 }
 0x642   : > { %v8248_v52 = vmax.f32 %v8184_v6, 0.0  ;;  %v8250_v56 = vmax.f32 %v8186_v17, 0.0 }
 0x643   : > { %v8249_v53 = vmax.f32 %v8185_v16, 0.0  ;;  %v8251_v32 = vmax.f32 %v8187_v15, 0.0 }
 0x644   : > { %v8288_v55 = vpack.c.bf16 %v8248_v52, %v8244_v26  ;;  %v8290_v2 = vpack.c.bf16 %v8250_v56, %v8246_v5 }
 0x645   : > { %v8289_v19 = vpack.c.bf16 %v8249_v53, %v8245_v61  ;;  %v8291_v18 = vpack.c.bf16 %v8251_v32, %v8247_v0  ;;  %v7944_v42 = vpop.f32.mrb[88].mxu0  ;;  %v8057_v20 = vpop.f32.mrb[88].mxu1 }
 0x646   : > { %v8188_v22 = vadd.f32 %v7944_v42, %v13453_v1  ;;  %v8190_v57 = vadd.f32 %v8057_v20, %v13455_v4  ;;  %v7946_v3 = vpop.f32.mrb[89].mxu0  ;;  %v8059_v7 = vpop.f32.mrb[89].mxu1 }
 0x647   : > { %v8189_v62 = vadd.f32 %v7946_v3, %v13457_v58  ;;  %v8191_v60 = vadd.f32 %v8059_v7, %v13459_v59  ;;  %v7948_v27 = vpop.f32.mrb[90].mxu0  ;;  %v8061_v25 = vpop.f32.mrb[90].mxu1  ;;  %8372 = vmatprep.mubr.bf16.mxu0 %v8289_v19  ;;  %8469 = vmatprep.mubr.bf16.mxu1 %v8291_v18 }
 0x648   : > { %v8192_v43 = vadd.f32 %v7948_v27, %v13453_v1  ;;  %v8194_v63 = vadd.f32 %v8061_v25, %v13455_v4  ;;  %v7950_v6 = vpop.f32.mrb[91].mxu0  ;;  %v8063_v17 = vpop.f32.mrb[91].mxu1  ;;  %8373 = vmatmul.mubr.bf16.gmra.mrb[116].mxu0 %v8288_v55  ;;  %8470 = vmatmul.mubr.bf16.gmra.mrb[116].mxu1 %v8290_v2  ;;  %v8252_v16 = vmax.f32 %v8188_v22, 0.0  ;;  %v8254_v15 = vmax.f32 %v8190_v57, 0.0  ;;  %v14246_v2 = vld [vmem:[%s12637_s15 + $0x80] sm:$0xff]  }
 0x649   : > { %v8193_v23 = vadd.f32 %v7950_v6, %v13457_v58  ;;  %v8195_v24 = vadd.f32 %v8063_v17, %v13459_v59  ;;  %v8253_v52 = vmax.f32 %v8189_v62, 0.0  ;;  %v8255_v56 = vmax.f32 %v8191_v60, 0.0 }
 0x64a   : > { %v8256_v26 = vmax.f32 %v8192_v43, 0.0  ;;  %v8258_v5 = vmax.f32 %v8194_v63, 0.0 }
 0x64b   : > { %v8257_v61 = vmax.f32 %v8193_v23, 0.0  ;;  %v8259_v0 = vmax.f32 %v8195_v24, 0.0  ;;  %v12378_v24 = vld [vmem:[%s12637_s15 + $0x88] sm:$0xff]  }
 0x64c   : > { %v8292_v53 = vpack.c.bf16 %v8256_v26, %v8252_v16  ;;  %v8294_v32 = vpack.c.bf16 %v8258_v5, %v8254_v15  ;;  %v8531_v16 = vshll.u32 %v14246_v2, 16 }
 0x64d   : > { %v8293_v19 = vpack.c.bf16 %v8257_v61, %v8253_v52  ;;  %v8295_v18 = vpack.c.bf16 %v8259_v0, %v8255_v56  ;;  %v7954_v42 = vpop.f32.mrb[92].mxu0  ;;  %v8067_v55 = vpop.f32.mrb[92].mxu1 }
 0x64e   : > { %v8196_v20 = vadd.f32 %v7954_v42, %v13453_v1  ;;  %v8198_v3 = vadd.f32 %v8067_v55, %v13455_v4  ;;  %v7956_v22 = vpop.f32.mrb[93].mxu0  ;;  %v8069_v57 = vpop.f32.mrb[93].mxu1 }
 0x64f   : > { %v8197_v7 = vadd.f32 %v7956_v22, %v13457_v58  ;;  %v8199_v62 = vadd.f32 %v8069_v57, %v13459_v59  ;;  %v7958_v60 = vpop.f32.mrb[94].mxu0  ;;  %v8071_v27 = vpop.f32.mrb[94].mxu1  ;;  %8380 = vmatprep.mubr.bf16.mxu0 %v8293_v19  ;;  %8477 = vmatprep.mubr.bf16.mxu1 %v8295_v18  ;;  %v8533_v22 = vrot.slane %v8531_v16, 1  ;;  %v8536_v57 = vshll.u32 %v12378_v24, 16 }
 0x650   : > { %v8200_v25 = vadd.f32 %v7958_v60, %v13453_v1  ;;  %v8202_v43 = vadd.f32 %v8071_v27, %v13455_v4  ;;  %v7960_v63 = vpop.f32.mrb[95].mxu0  ;;  %v8073_v6 = vpop.f32.mrb[95].mxu1  ;;  %8381 = vmatmul.mubr.bf16.gmra.mrb[120].mxu0 %v8292_v53  ;;  %8478 = vmatmul.mubr.bf16.gmra.mrb[120].mxu1 %v8294_v32  ;;  %v8260_v15 = vmax.f32 %v8196_v20, 0.0  ;;  %v8262_v26 = vmax.f32 %v8198_v3, 0.0 }
 0x651   : > { %v8201_v17 = vadd.f32 %v7960_v63, %v13457_v58  ;;  %v8203_v23 = vadd.f32 %v8073_v6, %v13459_v59  ;;  %v8261_v56 = vmax.f32 %v8197_v7, 0.0  ;;  %v8263_v61 = vmax.f32 %v8199_v62, 0.0  ;;  %v12379_v7 = vld [vmem:[%s12637_s15 + $0x90] ss:$0 sps:$4 sm:$0x11]  }
 0x652   : > { %v8264_v5 = vmax.f32 %v8200_v25, 0.0  ;;  %v8266_v52 = vmax.f32 %v8202_v43, 0.0  ;;  %v8529_v53 = vshrl.u32 %v14246_v2, 16  ;;  %v8538_v3 = vrot.slane %v8536_v57, 1  ;;  %v12389_v57 = vld [vmem:[%s12637_s15 + $0x88] sm:$0xfc]  }
 0x653   : > { %v8265_v0 = vmax.f32 %v8201_v17, 0.0  ;;  %v8267_v19 = vmax.f32 %v8203_v23, 0.0  ;;  %v8540_v60 = vshrl.u32 %v12378_v24, 16  ;;  %v8544_v27 = vshll.u32 %v12379_v7, 16  ;;  %v12386_v17 = vld [vmem:[%s12637_s15 + $0x88] sm:$0xfe]  }
 0x654   : > { %v8296_v18 = vpack.c.bf16 %v8264_v5, %v8260_v15  ;;  %v8298_v42 = vpack.c.bf16 %v8266_v52, %v8262_v26  ;;  %v8534_v20 = vor.u32 %v8533_v22, %v8529_v53  ;;  %v12385_v23 = vld [vmem:[%s12637_s15 + $0x98] ss:$0 sps:$4 sm:$0x11]   ;;  %v9094_v15 = vshll.u32 %v12386_v17, 16 }
 0x655   : > { %v8297_v32 = vpack.c.bf16 %v8265_v0, %v8261_v56  ;;  %v8299_v55 = vpack.c.bf16 %v8267_v19, %v8263_v61  ;;  %v8542_v25 = vor.u32 %v8540_v60, %v8538_v3  ;;  %v8546_v43 = vrot.slane %v8544_v27, 1  ;;  %v12388_v0 = vld [vmem:[%s12637_s15 + $0x98] ss:$0 sps:$4 sm:$0x33]   ;;  %v12395_v27 = vld [vmem:[%s12637_s15 + $0x90] sm:$0xfc]  }
 0x656   : > { %v8539_v62 = vsel %vm367_vm1, %v8534_v20, %v8538_v3  ;;  %v8942_v16 = vrot.slane %v12385_v23, 1  ;;  %v12390_v20 = vld [vmem:[%s12637_s15 + $0x90] sm:$0xff]   ;;  %v12391_v3 = vld [vmem:[%s12637_s15 + $0x98] ss:$0 sps:$4 sm:$0x33]   ;;  %v12433_v23 = vld [vmem:[%s14627_s3 + $0x40] sm:$0xff]  }
 0x657   : > { %8388 = vmatprep.mubr.bf16.mxu0 %v8297_v32  ;;  %8485 = vmatprep.mubr.bf16.mxu1 %v8299_v55  ;;  %v8547_v63 = vsel %vm367_vm1, %v8542_v25, %v8546_v43  ;;  %v12394_v25 = vld [vmem:[%s12637_s15 + $0xa0] ss:$0 sps:$4 sm:$0x33]   ;;  %v12396_v43 = vld [vmem:[%s12637_s15 + $0x98] sm:$0xff]  }
 0x658   : > { %8389 = vmatmul.mubr.bf16.gmra.mrb[124].mxu0 %v8296_v18  ;;  %8486 = vmatmul.mubr.bf16.gmra.mrb[124].mxu1 %v8298_v42  ;;  %v9108_v18 = vshrl.u32 %v12388_v0, 16 }
 0x659   : > { %8586 = vmatprep.mubr.bf16.mxu0 %v14640_v31  ;;  %8639 = vmatprep.mubr.bf16.mxu1 %v14640_v31 }
 0x65a   : > { %v9110_v53 = vrot.slane %v9108_v18, 1  ;;  %v12441_v18 = vld [vmem:[%s14627_s3 + $0x50] sm:$0xff]  }
 0x660   : > { %10605 = vmatmul.mubr.msk.bf16.vlgmr.msra.gmra.mrb[128].mxu0 %vm454_vm2, %v8539_v62  ;;  %10608 = vmatmul.mubr.msk.bf16.vlgmr.msra.gmra.mrb[128].mxu1 %vm454_vm2, %v8539_v62  ;;  %v12392_v62 = vld [vmem:[%s12637_s15 + $0x90] sm:$0xfc]  }
 0x661   : > { %8665 = vmatpush1.bf16.msra.mxu0 %v12685_v36  ;;  %8718 = vmatpush1.bf16.msra.mxu1 %v12688_v37  ;;  %v12380_v36 = vld [vmem:[%s12637_s15 + $0x80] sm:$0xfe]   ;;  %v12381_v37 = vld [vmem:[%s12637_s15 + $0x88] sm:$0xff]  }
 0x662   : > { %8596 = vmatprep.mubr.bf16.mxu0 %v14640_v31  ;;  %8649 = vmatprep.mubr.bf16.mxu1 %v14640_v31 }
 0x663   : > { %10619 = vmatprep.subr.msk.bf16.mxu0 %vm479_vm0, %v12693_v39  ;;  %10622 = vmatprep.subr.msk.bf16.mxu1 %vm479_vm0, %v12697_v40  ;;  %v8788_v39 = vrot.slane %v12380_v36, 1  ;;  %v8789_v40 = vrot.slane %v12381_v37, 1  ;;  %v9568_v36 = vshll.u32 %v12395_v27, 16  ;;  %v9573_v37 = vshrl.u32 %v12396_v43, 16 }
 0x668   : > { %10606 = vmatmul.mubr.msk.bf16.gmra.mrb[132].mxu0 %vm454_vm2, %v8547_v63  ;;  %10609 = vmatmul.mubr.msk.bf16.gmra.mrb[132].mxu1 %vm454_vm2, %v8547_v63  ;;  %v9416_v63 = vrot.slane %v12394_v25, 2 }
 0x669   : > { %8696 = vmatprep.mubr.bf16.mxu0 %v14640_v31  ;;  %8749 = vmatprep.mubr.bf16.mxu1 %v14640_v31 }
 0x670   : > { %10611 = vmatmul.mubr.msk.bf16.vlgmr.msra.gmra.mrb[128].mxu0 %vm454_vm2, %v14246_v2  ;;  %10614 = vmatmul.mubr.msk.bf16.vlgmr.msra.gmra.mrb[128].mxu1 %vm454_vm2, %v14246_v2  ;;  %v12383_v2 = vld [vmem:[%s12637_s15 + $0x88] sm:$0xfe]  }
 0x671   : > { %8800 = vmatpush1.bf16.msra.mxu0 %v12776_v30  ;;  %8853 = vmatpush1.bf16.msra.mxu1 %v12780_v33  ;;  %v8790_v30 = vsel %vm1050_vm3, %v8788_v39, %v8789_v40  ;;  %v12382_v33 = vld [vmem:[%s12637_s15 + $0x90] ss:$0 sps:$4 sm:$0x11]   ;;  %v9576_v39 = vshll.u32 %v12396_v43, 16 }
 0x672   : > { %8706 = vmatprep.mubr.bf16.mxu0 %v14640_v31  ;;  %8759 = vmatprep.mubr.bf16.mxu1 %v14640_v31 }
 0x673   : > { %10628 = vmatprep.subr.msk.bf16.mxu0 %vm479_vm0, %v12784_v38  ;;  %10631 = vmatprep.subr.msk.bf16.mxu1 %vm479_vm0, %v12786_v41  ;;  %v8791_v38 = vrot.slane %v12382_v33, 1  ;;  %v9575_v33 = vrot.slane %v9573_v37, 2  ;;  %v14490_v37 = vld [vmem:[%s14628_s4] ss:$0 sm:$0xff] }
 0x675   : > { %v8792_v41 = vsel %vm1050_vm3, %v8789_v40, %v8791_v38  ;;  %v12397_v38 = vld [vmem:[%s12637_s15 + $0xa0] ss:$0 sps:$4 sm:$0x77]  }
 0x678   : > { %10612 = vmatmul.mubr.msk.bf16.gmra.mrb[132].mxu0 %vm454_vm2, %v12378_v24  ;;  %10615 = vmatmul.mubr.msk.bf16.gmra.mrb[132].mxu1 %vm454_vm2, %v12378_v24  ;;  %v12387_v24 = vld [vmem:[%s12637_s15 + $0x90] sm:$0xff]  }
 0x679   : > { %8831 = vmatprep.mubr.bf16.mxu0 %v14640_v31  ;;  %8884 = vmatprep.mubr.bf16.mxu1 %v14640_v31  ;;  %v9099_v26 = vshrl.u32 %v12387_v24, 16  ;;  %v9102_v5 = vshll.u32 %v12387_v24, 16  ;;  %v12434_v24 = vld [vmem:[%s14627_s3 + $0xc0] sm:$0xff]  }
 0x67b   : > { %v9101_v61 = vrot.slane %v9099_v26, 1 }
 0x680   : > { %10620 = vmatmul.mubr.msk.bf16.vlgmr.msra.gmra.mrb[128].mxu0 %vm454_vm2, %v8790_v30  ;;  %10623 = vmatmul.mubr.msk.bf16.vlgmr.msra.gmra.mrb[128].mxu1 %vm454_vm2, %v8790_v30 }
 0x681   : > { %8951 = vmatpush1.bf16.msra.mxu0 %v12855_v46  ;;  %9004 = vmatpush1.bf16.msra.mxu1 %v12858_v47  ;;  %v12384_v46 = vld [vmem:[%s12637_s15 + $0x90] sm:$0xff]   ;;  %v8939_v47 = vrot.slane %v12383_v2, 1  ;;  %v9582_v2 = vshrl.u32 %v12397_v38, 16 }
 0x682   : > { %8841 = vmatprep.mubr.bf16.mxu0 %v14640_v31  ;;  %8894 = vmatprep.mubr.bf16.mxu1 %v14640_v31  ;;  %v8940_v6 = vrot.slane %v12384_v46, 1  ;;  %v9585_v46 = vshll.u32 %v12397_v38, 16 }
 0x683   : > { %10637 = vmatprep.subr.msk.bf16.mxu0 %vm479_vm0, %v12863_v49  ;;  %10640 = vmatprep.subr.msk.bf16.mxu1 %vm479_vm0, %v12867_v50  ;;  %v9091_v50 = vshrl.u32 %v12386_v17, 16  ;;  %v14643_v17 = vld [vmem:[#allocation7_spill] sm:$0xff] }
 0x684   : > { %v8941_v49 = vsel %vm1050_vm3, %v8939_v47, %v8940_v6  ;;  %v8943_v56 = vsel %vm1050_vm3, %v8940_v6, %v8942_v16  ;;  %v9584_v47 = vrot.slane %v9582_v2, 2  ;;  %v9587_v6 = vrot.slane %v9585_v46, 3  ;;  %v12399_v16 = vld [vmem:[%s12637_s15 + $0x98] sm:$0xff]  }
 0x685   : > { %v9093_v52 = vrot.slane %v9091_v50, 1  ;;  %v12398_v50 = vld [vmem:[%s12637_s15 + $0x90] sm:$0xf8]   ;;  %v9737_v26 = vrot.slane %v12399_v16, 3 }
 0x688   : > { %10621 = vmatmul.mubr.msk.bf16.gmra.mrb[132].mxu0 %vm454_vm2, %v8792_v41  ;;  %10624 = vmatmul.mubr.msk.bf16.gmra.mrb[132].mxu1 %vm454_vm2, %v8792_v41 }
 0x689   : > { %8982 = vmatprep.mubr.bf16.mxu0 %v14640_v31  ;;  %9035 = vmatprep.mubr.bf16.mxu1 %v14640_v31 }
 0x690   : > { %10629 = vmatmul.mubr.msk.bf16.vlgmr.msra.gmra.mrb[128].mxu0 %vm454_vm2, %v8941_v49  ;;  %10632 = vmatmul.mubr.msk.bf16.vlgmr.msra.gmra.mrb[128].mxu1 %vm454_vm2, %v8941_v49  ;;  %v9588_v49 = vor.u32 %v9587_v6, %v9584_v47  ;;  %v12462_v47 = vld [vmem:[%s14627_s3 + $0x78] sm:$0xff]  }
 0x691   : > { %9123 = vmatpush1.bf16.msra.mxu0 %v12935_v29  ;;  %9176 = vmatpush1.bf16.msra.mxu1 %v12939_v34  ;;  %v9096_v29 = vrot.slane %v9094_v15, 2  ;;  %v9104_v34 = vrot.slane %v9102_v5, 2  ;;  %v9736_v15 = vrot.slane %v12398_v50, 3  ;;  %v12463_v6 = vld [vmem:[%s14627_s3 + $0xf8] sm:$0xff]  }
 0x692   : > { %8992 = vmatprep.mubr.bf16.mxu0 %v14640_v31  ;;  %9045 = vmatprep.mubr.bf16.mxu1 %v14640_v31 }
 0x693   : > { %10646 = vmatprep.subr.msk.bf16.mxu0 %vm479_vm0, %v12943_v35  ;;  %10649 = vmatprep.subr.msk.bf16.mxu1 %vm479_vm0, %v12947_v21  ;;  %v9097_v19 = vor.u32 %v9096_v29, %v9093_v52  ;;  %v9105_v35 = vor.u32 %v9104_v34, %v9101_v61  ;;  %v9111_v21 = vshll.u32 %v12388_v0, 16  ;;  %v9738_v5 = vsel %vm3706_vm7, %v9736_v15, %v9737_v26  ;;  %v12400_v52 = vld [vmem:[%s12637_s15 + $0xa0] ss:$0 sps:$4 sm:$0x77]   ;;  %v12437_v34 = vld [vmem:[%s14627_s3 + $0x48] sm:$0xff]  }
 0x694   : > { %v12435_v29 = vld [vmem:[%s14627_s3] sm:$0xff]  }
 0x695   : > { %v9106_v42 = vsel %vm1893_vm4, %v9097_v19, %v9105_v35  ;;  %v9113_v32 = vrot.slane %v9111_v21, 2  ;;  %v12436_v61 = vld [vmem:[%s14627_s3 + $0x80] sm:$0xff]   ;;  %v12439_v19 = vld [vmem:[%s14627_s3 + $0x8] sm:$0xff]   ;;  %v12442_v21 = vld [vmem:[%s14627_s3 + $0xd0] sm:$0xff]  }
 0x697   : > { %v9114_v55 = vor.u32 %v9113_v32, %v9110_v53  ;;  %v12444_v53 = vld [vmem:[%s14627_s3 + $0x90] sm:$0xff]   ;;  %v12445_v32 = vld [vmem:[%s14627_s3 + $0x58] sm:$0xff]  }
 0x698   : > { %10630 = vmatmul.mubr.msk.bf16.gmra.mrb[132].mxu0 %vm454_vm2, %v8943_v56  ;;  %10633 = vmatmul.mubr.msk.bf16.gmra.mrb[132].mxu1 %vm454_vm2, %v8943_v56  ;;  %v9739_v56 = vrot.slane %v12400_v52, 3 }
 0x699   : > { %9154 = vmatprep.mubr.bf16.mxu0 %v14640_v31  ;;  %9207 = vmatprep.mubr.bf16.mxu1 %v14640_v31  ;;  %v9115_v22 = vsel %vm1893_vm4, %v9105_v35, %v9114_v55  ;;  %v12440_v35 = vld [vmem:[%s14627_s3 + $0x88] sm:$0xff]   ;;  %v12446_v55 = vld [vmem:[%s14627_s3 + $0xd8] sm:$0xff]  }
 0x69a   : > { %v9740_v0 = vsel %vm3706_vm7, %v9737_v26, %v9739_v56  ;;  %v12464_v26 = vld [vmem:[%s14627_s3 + $0x38] sm:$0xff]  }
 0x6a0   : > { %10638 = vmatmul.mubr.msk.bf16.vlgmr.msra.gmra.mrb[128].mxu0 %vm454_vm2, %v9106_v42  ;;  %10641 = vmatmul.mubr.msk.bf16.vlgmr.msra.gmra.mrb[128].mxu1 %vm454_vm2, %v9106_v42  ;;  %v12443_v42 = vld [vmem:[%s14627_s3 + $0x10] sm:$0xff]  }
 0x6a1   : > { %9274 = vmatpush1.bf16.msra.mxu0 %v13016_v44  ;;  %9327 = vmatpush1.bf16.msra.mxu1 %v13020_v45  ;;  %v9262_v44 = vrot.slane %v12389_v57, 2  ;;  %v9263_v45 = vrot.slane %v12390_v20, 2  ;;  %v12448_v57 = vld [vmem:[%s14627_s3 + $0x98] sm:$0xff]   ;;  %v12449_v20 = vld [vmem:[%s14627_s3 + $0x60] sm:$0xff]  }
 0x6a2   : > { %9164 = vmatprep.mubr.bf16.mxu0 %v14640_v31  ;;  %9217 = vmatprep.mubr.bf16.mxu1 %v14640_v31 }
 0x6a3   : > { %10655 = vmatprep.subr.msk.bf16.mxu0 %vm479_vm0, %v13024_v48  ;;  %10658 = vmatprep.subr.msk.bf16.mxu1 %vm479_vm0, %v13028_v51  ;;  %v9264_v48 = vsel %vm2378_vm5, %v9262_v44, %v9263_v45  ;;  %v9265_v51 = vrot.slane %v12391_v3, 2  ;;  %v12450_v44 = vld [vmem:[%s14627_s3 + $0xe0] sm:$0xff]  }
 0x6a5   : > { %v9266_v7 = vsel %vm2378_vm5, %v9263_v45, %v9265_v51  ;;  %v12451_v45 = vld [vmem:[%s14627_s3 + $0x20] sm:$0xff]  }
 0x6a8   : > { %10639 = vmatmul.mubr.msk.bf16.gmra.mrb[132].mxu0 %vm454_vm2, %v9115_v22  ;;  %10642 = vmatmul.mubr.msk.bf16.gmra.mrb[132].mxu1 %vm454_vm2, %v9115_v22  ;;  %v12447_v22 = vld [vmem:[%s14627_s3 + $0x18] sm:$0xff]  }
 0x6a9   : > { %9305 = vmatprep.mubr.bf16.mxu0 %v14640_v31  ;;  %9358 = vmatprep.mubr.bf16.mxu1 %v14640_v31 }
 0x6b0   : > { %10647 = vmatmul.mubr.msk.bf16.vlgmr.msra.gmra.mrb[128].mxu0 %vm454_vm2, %v9264_v48  ;;  %10650 = vmatmul.mubr.msk.bf16.vlgmr.msra.gmra.mrb[128].mxu1 %vm454_vm2, %v9264_v48  ;;  %v12452_v48 = vld [vmem:[%s14627_s3 + $0xa0] sm:$0xff]  }
 0x6b1   : > { %9425 = vmatpush1.bf16.msra.mxu0 %v13095_v8  ;;  %9478 = vmatpush1.bf16.msra.mxu1 %v13099_v9  ;;  %v12393_v8 = vld [vmem:[%s12637_s15 + $0x98] sm:$0xff]   ;;  %v9413_v9 = vrot.slane %v12392_v62, 2  ;;  %v12454_v62 = vld [vmem:[%s14627_s3 + $0xe8] sm:$0xff]  }
 0x6b2   : > { %9315 = vmatprep.mubr.bf16.mxu0 %v14640_v31  ;;  %9368 = vmatprep.mubr.bf16.mxu1 %v14640_v31  ;;  %v9414_v60 = vrot.slane %v12393_v8, 2 }
 0x6b3   : > { %10664 = vmatprep.subr.msk.bf16.mxu0 %vm479_vm0, %v13103_v11  ;;  %10667 = vmatprep.subr.msk.bf16.mxu1 %vm479_vm0, %v13107_v12  ;;  %v9565_v12 = vshrl.u32 %v12395_v27, 16 }
 0x6b4   : > { %v9415_v11 = vsel %vm2378_vm5, %v9413_v9, %v9414_v60  ;;  %v9417_v30 = vsel %vm2378_vm5, %v9414_v60, %v9416_v63  ;;  %v12455_v63 = vld [vmem:[%s14627_s3 + $0x28] sm:$0xff]  }
 0x6b5   : > { %v9567_v40 = vrot.slane %v9565_v12, 2 }
 0x6b8   : > { %10648 = vmatmul.mubr.msk.bf16.gmra.mrb[132].mxu0 %vm454_vm2, %v9266_v7  ;;  %10651 = vmatmul.mubr.msk.bf16.gmra.mrb[132].mxu1 %vm454_vm2, %v9266_v7  ;;  %v12453_v7 = vld [vmem:[%s14627_s3 + $0x68] sm:$0xff]  }
 0x6b9   : > { %9456 = vmatprep.mubr.bf16.mxu0 %v14640_v31  ;;  %9509 = vmatprep.mubr.bf16.mxu1 %v14640_v31 }
 0x6c0   : > { %10656 = vmatmul.mubr.msk.bf16.vlgmr.msra.gmra.mrb[128].mxu0 %vm454_vm2, %v9415_v11  ;;  %10659 = vmatmul.mubr.msk.bf16.vlgmr.msra.gmra.mrb[128].mxu1 %vm454_vm2, %v9415_v11 }
 0x6c1   : > { %9597 = vmatpush1.bf16.msra.mxu0 %v13175_v28  ;;  %9650 = vmatpush1.bf16.msra.mxu1 %v13179_v13  ;;  %v9570_v28 = vrot.slane %v9568_v36, 3  ;;  %v9578_v13 = vrot.slane %v9576_v39, 3  ;;  %v12456_v36 = vld [vmem:[%s14627_s3 + $0xa8] sm:$0xff]  }
 0x6c2   : > { %9466 = vmatprep.mubr.bf16.mxu0 %v14640_v31  ;;  %9519 = vmatprep.mubr.bf16.mxu1 %v14640_v31 }
 0x6c3   : > { %10673 = vmatprep.subr.msk.bf16.mxu0 %vm479_vm0, %v13183_v14  ;;  %10676 = vmatprep.subr.msk.bf16.mxu1 %vm479_vm0, %v13187_v10  ;;  %v9571_v41 = vor.u32 %v9570_v28, %v9567_v40  ;;  %v9579_v14 = vor.u32 %v9578_v13, %v9575_v33  ;;  %v12458_v28 = vld [vmem:[%s14627_s3 + $0x70] sm:$0xff]  }
 0x6c4   : > { %v12459_v33 = vld [vmem:[%s14627_s3 + $0xf0] sm:$0xff]  }
 0x6c5   : > { %v9580_v10 = vsel %vm3221_vm6, %v9571_v41, %v9579_v14  ;;  %v12460_v41 = vld [vmem:[%s14627_s3 + $0x30] sm:$0xff]  }
 0x6c8   : > { %10657 = vmatmul.mubr.msk.bf16.gmra.mrb[132].mxu0 %vm454_vm2, %v9417_v30  ;;  %10660 = vmatmul.mubr.msk.bf16.gmra.mrb[132].mxu1 %vm454_vm2, %v9417_v30 }
 0x6c9   : > { %9628 = vmatprep.mubr.bf16.mxu0 %v14640_v31  ;;  %9681 = vmatprep.mubr.bf16.mxu1 %v14640_v31 }
 0x6d0   : > { %10665 = vmatmul.mubr.msk.bf16.vlgmr.msra.gmra.mrb[128].mxu0 %vm454_vm2, %v9580_v10  ;;  %10668 = vmatmul.mubr.msk.bf16.vlgmr.msra.gmra.mrb[128].mxu1 %vm454_vm2, %v9580_v10 }
 0x6d1   : > { %9748 = vmatpush1.bf16.msra.mxu0 %v13247_v54  ;;  %9801 = vmatpush1.bf16.msra.mxu1 %v14643_v17  ;;  %v9589_v54 = vsel %vm3221_vm6, %v9579_v14, %v9588_v49  ;;  %v12461_v14 = vld [vmem:[%s14627_s3 + $0xb0] sm:$0xff]  }
 0x6d2   : > { %9638 = vmatprep.mubr.bf16.mxu0 %v14640_v31  ;;  %9691 = vmatprep.mubr.bf16.mxu1 %v14640_v31 }
 0x6d3   : > { %10938 = vmatprep.subr.bf16.mxu0 %v12433_v23  ;;  %10966 = vmatprep.subr.bf16.mxu1 %v12434_v24 }
 0x6d8   : > { %10666 = vmatmul.mubr.msk.bf16.gmra.mrb[132].mxu0 %vm454_vm2, %v9589_v54  ;;  %10669 = vmatmul.mubr.msk.bf16.gmra.mrb[132].mxu1 %vm454_vm2, %v9589_v54 }
 0x6d9   : > { %9779 = vmatprep.mubr.bf16.mxu0 %v14640_v31  ;;  %9832 = vmatprep.mubr.bf16.mxu1 %v14640_v31 }
 0x6e0   : > { %10674 = vmatmul.mubr.msk.bf16.vlgmr.msra.gmra.mrb[128].mxu0 %vm454_vm2, %v9738_v5  ;;  %10677 = vmatmul.mubr.msk.bf16.vlgmr.msra.gmra.mrb[128].mxu1 %vm454_vm2, %v9738_v5  ;;  %v12465_v5 = vld [vmem:[%s14627_s3 + $0xb8] sm:$0xff]  }
 0x6e1   : > { %9789 = vmatprep.mubr.bf16.mxu0 %v14640_v31  ;;  %9842 = vmatprep.mubr.bf16.mxu1 %v14640_v31  ;;  %v12438_v31 = vld [vmem:[%s14627_s3 + $0xc8] sm:$0xff]  }
 0x6e2   : > { %10939 = vmatpush3.bf16.msra.mxu0 %v12435_v29  ;;  %10967 = vmatpush3.bf16.msra.mxu1 %v12436_v61 }
 0x6e3   : > { %10940 = vmatprep.subr.bf16.mxu0 %v12437_v34  ;;  %10968 = vmatprep.subr.bf16.mxu1 %v12438_v31 }
 0x6e6   : > { %10941 = vmatpush3.bf16.msra.mxu0 %v12439_v19  ;;  %10969 = vmatpush3.bf16.msra.mxu1 %v12440_v35 }
 0x6e7   : > { %10942 = vmatprep.subr.bf16.mxu0 %v12441_v18  ;;  %10970 = vmatprep.subr.bf16.mxu1 %v12442_v21 }
 0x6e8   : > { %10675 = vmatmul.mubr.msk.bf16.gmra.mrb[132].mxu0 %vm454_vm2, %v9740_v0  ;;  %10678 = vmatmul.mubr.msk.bf16.gmra.mrb[132].mxu1 %vm454_vm2, %v9740_v0 }
 0x6ea   : > { %10943 = vmatpush3.bf16.msra.mxu0 %v12443_v42  ;;  %10971 = vmatpush3.bf16.msra.mxu1 %v12444_v53 }
 0x6eb   : > { %10944 = vmatprep.subr.bf16.mxu0 %v12445_v32  ;;  %10972 = vmatprep.subr.bf16.mxu1 %v12446_v55 }
 0x6ee   : > { %10945 = vmatpush3.bf16.msra.mxu0 %v12447_v22  ;;  %10973 = vmatpush3.bf16.msra.mxu1 %v12448_v57 }
 0x6ef   : > { %10946 = vmatprep.subr.bf16.mxu0 %v12449_v20  ;;  %10974 = vmatprep.subr.bf16.mxu1 %v12450_v44 }
 0x6f2   : > { %10947 = vmatpush3.bf16.msra.mxu0 %v12451_v45  ;;  %10975 = vmatpush3.bf16.msra.mxu1 %v12452_v48 }
 0x6f3   : > { %v10826_v3 = vpop.f32.mrb[96].mxu0  ;;  %v10890_v51 = vpop.f32.mrb[96].mxu1  ;;  %10948 = vmatprep.subr.bf16.mxu0 %v12453_v7  ;;  %10976 = vmatprep.subr.bf16.mxu1 %v12454_v62 }
 0x6f4   : > { %v10827_v8 = vpop.f32.mrb[97].mxu0  ;;  %v10891_v9 = vpop.f32.mrb[97].mxu1 }
 0x6f5   : > { %v10828_v60 = vadd.f32 %v10827_v8, %v10826_v3  ;;  %v10892_v27 = vadd.f32 %v10891_v9, %v10890_v51  ;;  %v10829_v11 = vpop.f32.mrb[98].mxu0  ;;  %v10893_v25 = vpop.f32.mrb[98].mxu1 }
 0x6f6   : > { %v10830_v43 = vpop.f32.mrb[99].mxu0  ;;  %v10894_v12 = vpop.f32.mrb[99].mxu1  ;;  %10949 = vmatpush3.bf16.msra.mxu0 %v12455_v63  ;;  %10977 = vmatpush3.bf16.msra.mxu1 %v12456_v36 }
 0x6f7   : > { %v8335_v39 = vadd.f32 %v14490_v37, %v10828_v60  ;;  %v10831_v40 = vadd.f32 %v10830_v43, %v10829_v11  ;;  %v10895_v30 = vadd.f32 %v10894_v12, %v10893_v25  ;;  %10950 = vmatprep.subr.bf16.mxu0 %v12458_v28  ;;  %10978 = vmatprep.subr.bf16.mxu1 %v12459_v33 }
 0x6f9   : > { %v8432_v13 = vadd.f32 %v10892_v27, %v8335_v39  ;;  %v8338_v38 = vadd.f32 %v14490_v37, %v10831_v40 }
 0x6fa   : > { %10951 = vmatpush3.bf16.msra.mxu0 %v12460_v41  ;;  %10979 = vmatpush3.bf16.msra.mxu1 %v12461_v14 }
 0x6fb   : > { %8494 = vst [vmem:[%s13710_s7 + $0x80] sm:$0xff] %v8432_v13  ;;  %v8435_v2 = vadd.f32 %v10895_v30, %v8338_v38  ;;  %v10832_v46 = vpop.f32.mrb[100].mxu0  ;;  %v10896_v10 = vpop.f32.mrb[100].mxu1  ;;  %10952 = vmatprep.subr.bf16.mxu0 %v12462_v47  ;;  %10980 = vmatprep.subr.bf16.mxu1 %v12463_v6 }
 0x6fc   : > { %v10833_v17 = vpop.f32.mrb[101].mxu0  ;;  %v10897_v49 = vpop.f32.mrb[101].mxu1 }
 0x6fd   : > { %8495 = vst [vmem:[%s13710_s7 + $0x88] sm:$0xff] %v8435_v2  ;;  %v10834_v23 = vadd.f32 %v10833_v17, %v10832_v46  ;;  %v10898_v24 = vadd.f32 %v10897_v49, %v10896_v10  ;;  %v10835_v54 = vpop.f32.mrb[102].mxu0  ;;  %v10899_v50 = vpop.f32.mrb[102].mxu1 }
 0x6fe   : > { %v10836_v16 = vpop.f32.mrb[103].mxu0  ;;  %v10900_v15 = vpop.f32.mrb[103].mxu1  ;;  %10953 = vmatpush3.bf16.msra.mxu0 %v12464_v26  ;;  %10981 = vmatpush3.bf16.msra.mxu1 %v12465_v5 }
 0x6ff   : > { %v8343_v52 = vadd.f32 %v14490_v37, %v10834_v23  ;;  %v10837_v56 = vadd.f32 %v10836_v16, %v10835_v54  ;;  %v10901_v29 = vadd.f32 %v10900_v15, %v10899_v50 }
 0x701   : > { %v8440_v61 = vadd.f32 %v10898_v24, %v8343_v52  ;;  %v8346_v34 = vadd.f32 %v14490_v37, %v10837_v56 }
 0x703   : > { %8496 = vst [vmem:[%s13710_s7 + $0x90] sm:$0xff] %v8440_v61  ;;  %v8443_v31 = vadd.f32 %v10901_v29, %v8346_v34  ;;  %v10838_v0 = vpop.f32.mrb[104].mxu0  ;;  %v10902_v19 = vpop.f32.mrb[104].mxu1 }
 0x704   : > { %v10839_v35 = vpop.f32.mrb[105].mxu0  ;;  %v10903_v18 = vpop.f32.mrb[105].mxu1 }
 0x705   : > { %8497 = vst [vmem:[%s13710_s7 + $0x98] sm:$0xff] %v8443_v31  ;;  %v10840_v21 = vadd.f32 %v10839_v35, %v10838_v0  ;;  %v10904_v42 = vadd.f32 %v10903_v18, %v10902_v19  ;;  %v10841_v53 = vpop.f32.mrb[106].mxu0  ;;  %v10905_v32 = vpop.f32.mrb[106].mxu1 }
 0x706   : > { %v10842_v55 = vpop.f32.mrb[107].mxu0  ;;  %v10906_v22 = vpop.f32.mrb[107].mxu1 }
 0x707   : > { %v8351_v57 = vadd.f32 %v14490_v37, %v10840_v21  ;;  %v10843_v20 = vadd.f32 %v10842_v55, %v10841_v53  ;;  %v10907_v44 = vadd.f32 %v10906_v22, %v10905_v32 }
 0x709   : > { %v8448_v45 = vadd.f32 %v10904_v42, %v8351_v57  ;;  %v8354_v48 = vadd.f32 %v14490_v37, %v10843_v20 }
 0x70b   : > { %8498 = vst [vmem:[%s13710_s7 + $0xa0] sm:$0xff] %v8448_v45  ;;  %v8451_v3 = vadd.f32 %v10907_v44, %v8354_v48  ;;  %v10844_v51 = vpop.f32.mrb[108].mxu0  ;;  %v10908_v7 = vpop.f32.mrb[108].mxu1 }
 0x70c   : > { %v10845_v62 = vpop.f32.mrb[109].mxu0  ;;  %v10909_v8 = vpop.f32.mrb[109].mxu1 }
 0x70d   : > { %8499 = vst [vmem:[%s13710_s7 + $0xa8] sm:$0xff] %v8451_v3  ;;  %v10846_v9 = vadd.f32 %v10845_v62, %v10844_v51  ;;  %v10910_v60 = vadd.f32 %v10909_v8, %v10908_v7  ;;  %v10847_v27 = vpop.f32.mrb[110].mxu0  ;;  %v10911_v11 = vpop.f32.mrb[110].mxu1 }
 0x70e   : > { %v10848_v25 = vpop.f32.mrb[111].mxu0  ;;  %v10912_v43 = vpop.f32.mrb[111].mxu1 }
 0x70f   : > { %v8359_v12 = vadd.f32 %v14490_v37, %v10846_v9  ;;  %v10849_v63 = vadd.f32 %v10848_v25, %v10847_v27  ;;  %v10913_v36 = vadd.f32 %v10912_v43, %v10911_v11 }
 0x711   : > { %v8456_v39 = vadd.f32 %v10910_v60, %v8359_v12  ;;  %v8362_v40 = vadd.f32 %v14490_v37, %v10849_v63 }
 0x713   : > { %8500 = vst [vmem:[%s13710_s7 + $0xb0] sm:$0xff] %v8456_v39  ;;  %v8459_v30 = vadd.f32 %v10913_v36, %v8362_v40  ;;  %v10850_v28 = vpop.f32.mrb[112].mxu0  ;;  %v10914_v33 = vpop.f32.mrb[112].mxu1 }
 0x714   : > { %v10851_v13 = vpop.f32.mrb[113].mxu0  ;;  %v10915_v38 = vpop.f32.mrb[113].mxu1 }
 0x715   : > { %8501 = vst [vmem:[%s13710_s7 + $0xb8] sm:$0xff] %v8459_v30  ;;  %v10852_v41 = vadd.f32 %v10851_v13, %v10850_v28  ;;  %v10916_v14 = vadd.f32 %v10915_v38, %v10914_v33  ;;  %v10853_v2 = vpop.f32.mrb[114].mxu0  ;;  %v10917_v46 = vpop.f32.mrb[114].mxu1 }
 0x716   : > { %v10854_v10 = vpop.f32.mrb[115].mxu0  ;;  %v10918_v47 = vpop.f32.mrb[115].mxu1 }
 0x717   : > { %v8367_v6 = vadd.f32 %v14490_v37, %v10852_v41  ;;  %v10855_v17 = vadd.f32 %v10854_v10, %v10853_v2  ;;  %v10919_v49 = vadd.f32 %v10918_v47, %v10917_v46 }
 0x719   : > { %v8464_v23 = vadd.f32 %v10916_v14, %v8367_v6  ;;  %v8370_v24 = vadd.f32 %v14490_v37, %v10855_v17 }
 0x71b   : > { %8502 = vst [vmem:[%s13710_s7 + $0xc0] sm:$0xff] %v8464_v23  ;;  %v8467_v54 = vadd.f32 %v10919_v49, %v8370_v24  ;;  %v10856_v50 = vpop.f32.mrb[116].mxu0  ;;  %v10920_v16 = vpop.f32.mrb[116].mxu1 }
 0x71c   : > { %v10857_v15 = vpop.f32.mrb[117].mxu0  ;;  %v10921_v26 = vpop.f32.mrb[117].mxu1 }
 0x71d   : > { %8503 = vst [vmem:[%s13710_s7 + $0xc8] sm:$0xff] %v8467_v54  ;;  %v10858_v5 = vadd.f32 %v10857_v15, %v10856_v50  ;;  %v10922_v52 = vadd.f32 %v10921_v26, %v10920_v16  ;;  %v10859_v56 = vpop.f32.mrb[118].mxu0  ;;  %v10923_v29 = vpop.f32.mrb[118].mxu1 }
 0x71e   : > { %v10860_v61 = vpop.f32.mrb[119].mxu0  ;;  %v10924_v34 = vpop.f32.mrb[119].mxu1 }
 0x71f   : > { %v8375_v31 = vadd.f32 %v14490_v37, %v10858_v5  ;;  %v10861_v0 = vadd.f32 %v10860_v61, %v10859_v56  ;;  %v10925_v19 = vadd.f32 %v10924_v34, %v10923_v29 }
 0x721   : > { %v8472_v35 = vadd.f32 %v10922_v52, %v8375_v31  ;;  %v8378_v18 = vadd.f32 %v14490_v37, %v10861_v0 }
 0x723   : > { %8504 = vst [vmem:[%s13710_s7 + $0xd0] sm:$0xff] %v8472_v35  ;;  %v8475_v21 = vadd.f32 %v10925_v19, %v8378_v18  ;;  %v10862_v42 = vpop.f32.mrb[120].mxu0  ;;  %v10926_v53 = vpop.f32.mrb[120].mxu1 }
 0x724   : > { %v10863_v32 = vpop.f32.mrb[121].mxu0  ;;  %v10927_v55 = vpop.f32.mrb[121].mxu1 }
 0x725   : > { %8505 = vst [vmem:[%s13710_s7 + $0xd8] sm:$0xff] %v8475_v21  ;;  %v10864_v22 = vadd.f32 %v10863_v32, %v10862_v42  ;;  %v10928_v57 = vadd.f32 %v10927_v55, %v10926_v53  ;;  %v10865_v20 = vpop.f32.mrb[122].mxu0  ;;  %v10929_v44 = vpop.f32.mrb[122].mxu1 }
 0x726   : > { %v10866_v45 = vpop.f32.mrb[123].mxu0  ;;  %v10930_v48 = vpop.f32.mrb[123].mxu1 }
 0x727   : > { %v8383_v3 = vadd.f32 %v14490_v37, %v10864_v22  ;;  %v10867_v51 = vadd.f32 %v10866_v45, %v10865_v20  ;;  %v10931_v7 = vadd.f32 %v10930_v48, %v10929_v44 }
 0x729   : > { %v8480_v62 = vadd.f32 %v10928_v57, %v8383_v3  ;;  %v8386_v8 = vadd.f32 %v14490_v37, %v10867_v51 }
 0x72b   : > { %8506 = vst [vmem:[%s13710_s7 + $0xe0] sm:$0xff] %v8480_v62  ;;  %v8483_v9 = vadd.f32 %v10931_v7, %v8386_v8  ;;  %v10868_v60 = vpop.f32.mrb[124].mxu0  ;;  %v10932_v27 = vpop.f32.mrb[124].mxu1 }
 0x72c   : > { %v10869_v11 = vpop.f32.mrb[125].mxu0  ;;  %v10933_v25 = vpop.f32.mrb[125].mxu1 }
 0x72d   : > { %8507 = vst [vmem:[%s13710_s7 + $0xe8] sm:$0xff] %v8483_v9  ;;  %v10870_v43 = vadd.f32 %v10869_v11, %v10868_v60  ;;  %v10934_v12 = vadd.f32 %v10933_v25, %v10932_v27  ;;  %v10871_v63 = vpop.f32.mrb[126].mxu0  ;;  %v10935_v36 = vpop.f32.mrb[126].mxu1 }
 0x72e   : > { %v10872_v39 = vpop.f32.mrb[127].mxu0  ;;  %v10936_v40 = vpop.f32.mrb[127].mxu1 }
 0x72f   : > { %v8391_v30 = vadd.f32 %v14490_v37, %v10870_v43  ;;  %v10873_v28 = vadd.f32 %v10872_v39, %v10871_v63  ;;  %v10937_v33 = vadd.f32 %v10936_v40, %v10935_v36 }
 0x731   : > { %v8488_v13 = vadd.f32 %v10934_v12, %v8391_v30  ;;  %v8394_v38 = vadd.f32 %v14490_v37, %v10873_v28 }
 0x733   : > { %8508 = vst [vmem:[%s13710_s7 + $0xf0] sm:$0xff] %v8488_v13  ;;  %v8491_v41 = vadd.f32 %v10937_v33, %v8394_v38 }
 0x735   : > { %8509 = vst [vmem:[%s13710_s7 + $0xf8] sm:$0xff] %v8491_v41 }
 0x7b3   : > { %v9781_v14 = vpop.f32.mrb[128].mxu0  ;;  %v9834_v2 = vpop.f32.mrb[128].mxu1 }
 0x7b4   : > { %v9869_v46 = vadd.f32 %v9781_v14, %v13453_v1  ;;  %v9871_v10 = vadd.f32 %v9834_v2, %v13455_v4  ;;  %v9783_v47 = vpop.f32.mrb[129].mxu0  ;;  %v9836_v6 = vpop.f32.mrb[129].mxu1 }
 0x7b5   : > { %v9870_v17 = vadd.f32 %v9783_v47, %v13457_v58  ;;  %v9872_v49 = vadd.f32 %v9836_v6, %v13459_v59  ;;  %v9785_v23 = vpop.f32.mrb[130].mxu0  ;;  %v9838_v24 = vpop.f32.mrb[130].mxu1 }
 0x7b6   : > { %v9873_v54 = vadd.f32 %v9785_v23, %v13453_v1  ;;  %v9875_v50 = vadd.f32 %v9838_v24, %v13455_v4  ;;  %v9787_v16 = vpop.f32.mrb[131].mxu0  ;;  %v9840_v15 = vpop.f32.mrb[131].mxu1  ;;  %v9885_v52 = vmax.f32 %v9869_v46, 0.0  ;;  %v9887_v56 = vmax.f32 %v9871_v10, 0.0 }
 0x7b7   : > { %v9874_v26 = vadd.f32 %v9787_v16, %v13457_v58  ;;  %v9876_v5 = vadd.f32 %v9840_v15, %v13459_v59  ;;  %v9886_v34 = vmax.f32 %v9870_v17, 0.0  ;;  %v9888_v31 = vmax.f32 %v9872_v49, 0.0 }
 0x7b8   : > { %v9889_v29 = vmax.f32 %v9873_v54, 0.0  ;;  %v9891_v61 = vmax.f32 %v9875_v50, 0.0 }
 0x7b9   : > { %v9890_v0 = vmax.f32 %v9874_v26, 0.0  ;;  %v9892_v19 = vmax.f32 %v9876_v5, 0.0 }
 0x7ba   : > { %v9901_v35 = vpack.c.bf16 %v9889_v29, %v9885_v52  ;;  %v9903_v18 = vpack.c.bf16 %v9891_v61, %v9887_v56 }
 0x7bb   : > { %v9902_v21 = vpack.c.bf16 %v9890_v0, %v9886_v34  ;;  %v9904_v42 = vpack.c.bf16 %v9892_v19, %v9888_v31  ;;  %v9791_v53 = vpop.f32.mrb[132].mxu0  ;;  %v9844_v32 = vpop.f32.mrb[132].mxu1 }
 0x7bc   : > { %v9877_v55 = vadd.f32 %v9791_v53, %v13453_v1  ;;  %v9879_v22 = vadd.f32 %v9844_v32, %v13455_v4  ;;  %v9793_v57 = vpop.f32.mrb[133].mxu0  ;;  %v9846_v20 = vpop.f32.mrb[133].mxu1 }
 0x7bd   : > { %v9878_v44 = vadd.f32 %v9793_v57, %v13457_v58  ;;  %v9880_v45 = vadd.f32 %v9846_v20, %v13459_v59  ;;  %v9795_v48 = vpop.f32.mrb[134].mxu0  ;;  %v9848_v3 = vpop.f32.mrb[134].mxu1  ;;  %9941 = vmatprep.mubr.bf16.mxu0 %v9902_v21  ;;  %9990 = vmatprep.mubr.bf16.mxu1 %v9904_v42 }
 0x7be   : > { %v9881_v51 = vadd.f32 %v9795_v48, %v13453_v1  ;;  %v9883_v7 = vadd.f32 %v9848_v3, %v13455_v4  ;;  %v9797_v62 = vpop.f32.mrb[135].mxu0  ;;  %v9850_v8 = vpop.f32.mrb[135].mxu1  ;;  %9942 = vmatmul.mubr.bf16.vlgmr.msra.gmra.mrb[136].mxu0 %v9901_v35  ;;  %9991 = vmatmul.mubr.bf16.vlgmr.msra.gmra.mrb[136].mxu1 %v9903_v18  ;;  %v9893_v27 = vmax.f32 %v9877_v55, 0.0  ;;  %v9895_v11 = vmax.f32 %v9879_v22, 0.0 }
 0x7bf   : > { %v9882_v9 = vadd.f32 %v9797_v62, %v13457_v58  ;;  %v9884_v60 = vadd.f32 %v9850_v8, %v13459_v59  ;;  %v9894_v12 = vmax.f32 %v9878_v44, 0.0  ;;  %v9896_v63 = vmax.f32 %v9880_v45, 0.0 }
 0x7c0   : > { %v9897_v25 = vmax.f32 %v9881_v51, 0.0  ;;  %v9899_v43 = vmax.f32 %v9883_v7, 0.0 }
 0x7c1   : > { %v9898_v36 = vmax.f32 %v9882_v9, 0.0  ;;  %v9900_v39 = vmax.f32 %v9884_v60, 0.0 }
 0x7c2   : > { %v9905_v40 = vpack.c.bf16 %v9897_v25, %v9893_v27  ;;  %v9907_v1 = vpack.c.bf16 %v9899_v43, %v9895_v11 }
 0x7c3   : > { %v9906_v30 = vpack.c.bf16 %v9898_v36, %v9894_v12  ;;  %v9908_v4 = vpack.c.bf16 %v9900_v39, %v9896_v63 }
 0x7c5   : > { %9949 = vmatprep.mubr.bf16.mxu0 %v9906_v30  ;;  %9998 = vmatprep.mubr.bf16.mxu1 %v9908_v4 }
 0x7c6   : > { %9950 = vmatmul.mubr.bf16.gmra.mrb[140].mxu0 %v9905_v40  ;;  %9999 = vmatmul.mubr.bf16.gmra.mrb[140].mxu1 %v9907_v1 }
 0x891   : > { %v10954_v58 = vpop.f32.mrb[136].mxu0  ;;  %v10982_v28 = vpop.f32.mrb[136].mxu1 }
 0x892   : > { %v10955_v59 = vpop.f32.mrb[137].mxu0  ;;  %v10983_v33 = vpop.f32.mrb[137].mxu1 }
 0x893   : > { %v10956_v13 = vadd.f32 %v10955_v59, %v10954_v58  ;;  %v10984_v38 = vadd.f32 %v10983_v33, %v10982_v28  ;;  %v10957_v41 = vpop.f32.mrb[138].mxu0  ;;  %v10985_v14 = vpop.f32.mrb[138].mxu1 }
 0x894   : > { %v10958_v2 = vpop.f32.mrb[139].mxu0  ;;  %v10986_v46 = vpop.f32.mrb[139].mxu1 }
 0x895   : > { %v9944_v10 = vadd.f32 %v14490_v37, %v10956_v13  ;;  %v10959_v47 = vadd.f32 %v10958_v2, %v10957_v41  ;;  %v10987_v6 = vadd.f32 %v10986_v46, %v10985_v14 }
 0x897   : > { %v9993_v17 = vadd.f32 %v10984_v38, %v9944_v10  ;;  %v9947_v49 = vadd.f32 %v14490_v37, %v10959_v47 }
 0x899   : > { %10007 = vst [vmem:[%s13710_s7 + $0x100] sm:$0xff] %v9993_v17  ;;  %v9996_v23 = vadd.f32 %v10987_v6, %v9947_v49  ;;  %v10960_v24 = vpop.f32.mrb[140].mxu0  ;;  %v10988_v54 = vpop.f32.mrb[140].mxu1 }
 0x89a   : > { %v10961_v50 = vpop.f32.mrb[141].mxu0  ;;  %v10989_v16 = vpop.f32.mrb[141].mxu1 }
 0x89b   : > { %10008 = vst [vmem:[%s13710_s7 + $0x108] sm:$0xff] %v9996_v23  ;;  %v10962_v15 = vadd.f32 %v10961_v50, %v10960_v24  ;;  %v10990_v26 = vadd.f32 %v10989_v16, %v10988_v54  ;;  %v10963_v5 = vpop.f32.mrb[142].mxu0  ;;  %v10991_v52 = vpop.f32.mrb[142].mxu1 }
 0x89c   : > { %v10964_v56 = vpop.f32.mrb[143].mxu0  ;;  %v10992_v29 = vpop.f32.mrb[143].mxu1 }
 0x89d   : > { %v9952_v61 = vadd.f32 %v14490_v37, %v10962_v15  ;;  %v10965_v34 = vadd.f32 %v10964_v56, %v10963_v5  ;;  %v10993_v31 = vadd.f32 %v10992_v29, %v10991_v52 }
 0x89f   : > { %v10001_v0 = vadd.f32 %v10990_v26, %v9952_v61  ;;  %v9955_v19 = vadd.f32 %v14490_v37, %v10965_v34 }
 0x8a1   : > { %10009 = vst [vmem:[%s13710_s7 + $0x110] sm:$0xff] %v10001_v0  ;;  %v10004_v35 = vadd.f32 %v10993_v31, %v9955_v19 }
 0x8a3   : > { %10010 = vst [vmem:[%s13710_s7 + $0x118] sm:$0xff] %v10004_v35 }
 0x8a4   : > { %12479 = shalt.err (!%p12476_p3)
}
 0x8a5   : > { %s12480_s25 = scalar_lea.hbm %s14575_s6, 4608  ;;  %s12484_s13 = scalar_lea.hbm %s14629_s5, 9216 }
 0x8a6   : > { %p12481_p4 = scmp.ne.s32.totalorder %s14575_s6, %s12480_s25  ;;  %p12485_p9 = scmp.lt.u32.totalorder %s14575_s6, %s14629_s5 }
 0x8a7   : > { %p12486_p10 = scmp.lt.u32.totalorder %s12484_s13, %s12480_s25  ;;  %p12488_p12 = scmp.lt.u32.totalorder %s12480_s25, %s14575_s6 }
 0x8a8   : > { %p12482_p7 = pnand %p12481_p4, %p12603_p5 }
 0x8a9   : > { %p12487_p11 = por %p12486_p10, %p12485_p9 }
 0x8aa   : > { %p12483_p8 = pneg %p12482_p7 }
 0x8ab   : > { %p12489_p13 = por %p12488_p12, %p12487_p11 }
 0x8ad   : > { %p12490_p0 = pnand %p12489_p13, %p12483_p8 }
 0x8af   : > { %12493 = shalt.err (!%p12490_p0)
}
 0x8b0   : > { %s12533_s16 = smov 128   ;;  %s12534_s17 = smov 8  }
 0x8b1   : > { %12149 = dma.vmem_to_hbm [thread:$0]  (%p12603_p5), %s14577_s23, 4608, %s14575_s6, %s14583_s22, %s12533_s16, %s12533_s16, %s12534_s17  }
 0x8b2 PF: > { %p12155_p1 = scmp.ge.s32.totalorder %s12528_s21, 2  ;;  %s10040_s26 = sand.u32 1, %s12516_s18  }
 0x8b3   : > { %s10041_s30 = scalar_lea.sflag [#allocation3], %s10040_s26 }
 0x8b4   : > { %p12152_p2 = pnand %p12155_p1, %p12607_p6 }
 0x8b6   : > { %12511 = dma.done.wait (!%p12152_p2), %s10041_s30, 4608  }
 0x8b7   : > { %12513 = vsyncadd (!%p12152_p2), %s10041_s30, 4294962688  ;;  %p15_p3 = scmp.ge.s32.totalorder %s12590_s24, 4   ;;  %s14644_s18 = smov %s12520_s19 }
 0x8b8   : > { %s14645_s19 = smov %s12524_s20  ;;  %s14646_s20 = smov %s12601_s27 }
 0x8b9   : > { %s14647_s21 = smov %s12590_s24  ;;  %17 = sbr.rel (!%p15_p3) target bundleno = 3 (0x3), region = 83 }
 0x8c0   :  { %10046 = vsyncpa [#allocation3], 1 }
 0x8c1   :  { %10048 = vsyncpa [#allocation3 + $0x1], 1 }

</bundles_post_ra>
